<compile_context>
chip_gen: v6e
topology: v6e:2x2x1
jax: 0.10.0
libtpu: 0.0.40
codegen_flags: <defaults>
</compile_context>

<pallas_src>
import functools

import jax
import jax.numpy as jnp
from jax.experimental import pallas as pl
from jax.experimental.pallas import tpu as pltpu  # noqa: F401  (TPU backend)


# ----------------------------- Pallas kernels -----------------------------

def _linear_kernel(x_ref, w_ref, b_ref, o_ref):
    """o = x @ w + b.  bf16 MXU operands, f32 accumulate/epilogue."""
    y = jnp.dot(x_ref[...], w_ref[...], preferred_element_type=jnp.float32)
    o_ref[...] = (y + b_ref[...]).astype(o_ref.dtype)


def _tconv_bn_relu_kernel(p_ref, w_ref, b_ref, g_ref, be_ref, o_ref, *, eps):
    """Fused: 4 per-phase GEMMs + conv bias + training-mode BatchNorm2d + ReLU.

    p_ref: (4, M, K) bf16 per-phase 2x2 patches (M = B*H*W, K = 4*Cin)
    w_ref: (4, K, C) bf16 per-phase weights
    b/g/be: (1, C) f32 conv bias / BN gamma / BN beta
    o_ref: (4*M, C)  (row = phase*M + b*H*W + h*W + w)
    """
    ys = [jnp.dot(p_ref[i], w_ref[i], preferred_element_type=jnp.float32)
          for i in range(4)]
    y = jnp.concatenate(ys, axis=0) + b_ref[...]            # (4M, C) f32
    # BatchNorm2d with batch statistics (biased variance) over all N*H*W positions.
    mean = jnp.mean(y, axis=0, keepdims=True)                # (1, C)
    var = jnp.mean(jnp.square(y - mean), axis=0, keepdims=True)
    scale = g_ref[...] * jax.lax.rsqrt(var + eps)
    yn = (y - mean) * scale + be_ref[...]
    o_ref[...] = jnp.maximum(yn, 0.0).astype(o_ref.dtype)


def _tconv_tanh_kernel(p_ref, w_ref, b_ref, o_ref):
    """Fused: 4 per-phase GEMMs + conv bias + tanh (final layer, no BN)."""
    ys = [jnp.dot(p_ref[i], w_ref[i], preferred_element_type=jnp.float32)
          for i in range(4)]
    y = jnp.concatenate(ys, axis=0) + b_ref[...]             # (4M, C) f32
    o_ref[...] = jnp.tanh(y).astype(o_ref.dtype)


# ----------------------------- kernel wrappers -----------------------------

def linear(x, w, b):
    B = x.shape[0]
    N = w.shape[1]
    return pl.pallas_call(
        _linear_kernel,
        out_shape=jax.ShapeDtypeStruct((B, N), jnp.bfloat16),
    )(x.astype(jnp.bfloat16), w, b)


def tconv_bn_relu(patches, w_phase, b, gamma, beta, eps=1e-5):
    _, M, _ = patches.shape
    C = w_phase.shape[-1]
    kern = functools.partial(_tconv_bn_relu_kernel, eps=eps)
    return pl.pallas_call(
        kern,
        out_shape=jax.ShapeDtypeStruct((4 * M, C), jnp.bfloat16),
    )(patches, w_phase, b, gamma, beta)


def tconv_tanh(patches, w_phase, b):
    _, M, _ = patches.shape
    C = w_phase.shape[-1]
    return pl.pallas_call(
        _tconv_tanh_kernel,
        out_shape=jax.ShapeDtypeStruct((4 * M, C), jnp.float32),
    )(patches, w_phase, b)


# ------------------------------- thin JAX glue ------------------------------

def phase_patches(x_nhwc):
    """Per-phase 2x2 patches for ConvTranspose2d(k=4, s=2, p=1).

    x_nhwc: (B, H, W, Cin)  ->  (4, B*H*W, 4*Cin)
    Phase p = 2*dh + dw produces output pixels (2h+dh, 2w+dw); its patch is the
    2x2 window of the 1-padded input starting at (h+dh, w+dw)."""
    B, H, W, Cin = x_nhwc.shape
    xp = jnp.pad(x_nhwc, ((0, 0), (1, 1), (1, 1), (0, 0)))
    phases = []
    for dh in range(2):
        for dw in range(2):
            taps = [xp[:, dh + a:dh + a + H, dw + b:dw + b + W, :]
                    for a in range(2) for b in range(2)]
            phases.append(jnp.concatenate(taps, axis=-1).reshape(B * H * W, 4 * Cin))
    return jnp.stack(phases, axis=0)


def interleave_phases(y2d, B, H, W, C):
    """(4*B*H*W, C) per-phase output -> NHWC (B, 2H, 2W, C)."""
    y = y2d.reshape(2, 2, B, H, W, C)                 # (dh, dw, b, h, w, c)
    y = jnp.transpose(y, (2, 3, 0, 4, 1, 5))          # (b, h, dh, w, dw, c)
    return y.reshape(B, 2 * H, 2 * W, C)


def phase_weights(wt):
    """PyTorch ConvTranspose2d weight (Cin, Cout, 4, 4) -> per-phase GEMM weights
    (4, 4*Cin, Cout).  Phase (dh, dw), tap (a, b) uses Wt[:, :, 3-dh-2a, 3-dw-2b]."""
    phases = []
    for dh in range(2):
        for dw in range(2):
            taps = [wt[:, :, 3 - dh - 2 * a, 3 - dw - 2 * b]
                    for a in range(2) for b in range(2)]
            phases.append(jnp.concatenate(taps, axis=0))      # (4*Cin, Cout)
    return jnp.stack(phases, axis=0)


def prepare_params(params, conv_dim):
    """Precompute all GEMM-layout weights once (not per forward)."""
    c4 = conv_dim * 4
    # fc1: reorder output columns from torch's (c, h, w) flat order to (h, w, c) so the
    # GEMM result reshapes directly to NHWC (no per-step transpose).
    hw = jnp.arange(16)
    cc = jnp.arange(c4)
    src = (cc[None, :] * 16 + hw[:, None]).reshape(-1)        # new o' -> old torch flat o
    return {
        "fc1_w": params["fc1_w"].T[:, src].astype(jnp.bfloat16),
        "fc1_b": params["fc1_b"][src].reshape(1, -1).astype(jnp.float32),
        "tc1_w": phase_weights(params["tc1_w"]).astype(jnp.bfloat16),
        "tc1_b": params["tc1_b"].reshape(1, -1).astype(jnp.float32),
        "tc2_w": phase_weights(params["tc2_w"]).astype(jnp.bfloat16),
        "tc2_b": params["tc2_b"].reshape(1, -1).astype(jnp.float32),
        "tc3_w": phase_weights(params["tc3_w"]).astype(jnp.bfloat16),
        "tc3_b": params["tc3_b"].reshape(1, -1).astype(jnp.float32),
        "bn1_g": params["bn1_g"].reshape(1, -1).astype(jnp.float32),
        "bn1_b": params["bn1_b"].reshape(1, -1).astype(jnp.float32),
        "bn2_g": params["bn2_g"].reshape(1, -1).astype(jnp.float32),
        "bn2_b": params["bn2_b"].reshape(1, -1).astype(jnp.float32),
    }


def generator_forward(z, gp, conv_dim):
    B = z.shape[0]
    c4, c2, c1 = conv_dim * 4, conv_dim * 2, conv_dim

    # fc1 (columns pre-permuted so the result is already NHWC-ordered)
    h = linear(z, gp["fc1_w"], gp["fc1_b"])                   # (B, 4*4*c4) bf16
    x = h.reshape(B, 4, 4, c4)                                # NHWC

    # t_conv1 + BatchNorm1 + ReLU (single fused kernel)
    p = phase_patches(x)                                      # (4, B*16, 4*c4)
    y = tconv_bn_relu(p, gp["tc1_w"], gp["tc1_b"], gp["bn1_g"], gp["bn1_b"])
    x = interleave_phases(y, B, 4, 4, c2)                     # (B, 8, 8, c2)

    # t_conv2 + BatchNorm2 + ReLU (single fused kernel)
    p = phase_patches(x)                                      # (4, B*64, 4*c2)
    y = tconv_bn_relu(p, gp["tc2_w"], gp["tc2_b"], gp["bn2_g"], gp["bn2_b"])
    x = interleave_phases(y, B, 8, 8, c1)                     # (B, 16, 16, c1)

    # t_conv3 + tanh (single fused kernel)
    p = phase_patches(x)                                      # (4, B*256, 4*c1)
    y = tconv_tanh(p, gp["tc3_w"], gp["tc3_b"])
    x = interleave_phases(y, B, 16, 16, 3)                    # (B, 32, 32, 3)

    # NCHW only at the external boundary
    return jnp.transpose(x, (0, 3, 1, 2)).astype(jnp.float32)  # (B, 3, 32, 32)


def init_params(key, z_size, conv_dim):
    c4, c2, c1 = conv_dim * 4, conv_dim * 2, conv_dim
    ks = jax.random.split(key, 8)
    scale = 0.05
    return {
        "fc1_w": scale * jax.random.normal(ks[0], (4 * 4 * c4, z_size), jnp.float32),
        "fc1_b": scale * jax.random.normal(ks[1], (4 * 4 * c4,), jnp.float32),
        "tc1_w": scale * jax.random.normal(ks[2], (c4, c2, 4, 4), jnp.float32),
        "tc1_b": scale * jax.random.normal(ks[3], (c2,), jnp.float32),
        "tc2_w": scale * jax.random.normal(ks[4], (c2, c1, 4, 4), jnp.float32),
        "tc2_b": scale * jax.random.normal(ks[5], (c1,), jnp.float32),
        "tc3_w": scale * jax.random.normal(ks[6], (c1, 3, 4, 4), jnp.float32),
        "tc3_b": scale * jax.random.normal(ks[7], (3,), jnp.float32),
        # BatchNorm2d affine params (PyTorch default init: gamma=1, beta=0)
        "bn1_g": jnp.ones((c2,), jnp.float32),
        "bn1_b": jnp.zeros((c2,), jnp.float32),
        "bn2_g": jnp.ones((c1,), jnp.float32),
        "bn2_b": jnp.zeros((c1,), jnp.float32),
    }


if __name__ == "__main__":
    Z_SIZE = 64
    CONV_DIM = 16
    BATCH = 2

    key = jax.random.PRNGKey(0)
    k_params, k_z = jax.random.split(key)
    params = init_params(k_params, Z_SIZE, CONV_DIM)
    gp = prepare_params(params, CONV_DIM)          # GEMM-layout weights, computed once
    z = jax.random.normal(k_z, (BATCH, Z_SIZE), jnp.float32)

    fwd = jax.jit(functools.partial(generator_forward, conv_dim=CONV_DIM))
    out = jax.block_until_ready(fwd(z, gp))

    assert out.shape == (BATCH, 3, 32, 32), out.shape
    assert bool(jnp.all(jnp.isfinite(out)))
    print("KERNEL_OK")
</pallas_src>

<mosaic_0001>
module attributes {stable_mosaic.version = 11 : i64} {
  func.func @_linear_kernel(%arg0: memref<2x64xbf16, #tpu.memory_space<vmem>>, %arg1: memref<64x1024xbf16, #tpu.memory_space<vmem>>, %arg2: memref<1x1024xf32, #tpu.memory_space<vmem>>, %arg3: memref<2x1024xbf16, #tpu.memory_space<vmem>>) attributes {dimension_semantics = [], scalar_prefetch = 0 : i64, scratch_operands = 0 : i64, tpu.core_type = #tpu.core_type<tc>} {
    %c0 = arith.constant 0 : index
    %c0_0 = arith.constant 0 : index
    %0 = vector.load %arg0[%c0, %c0_0] : memref<2x64xbf16, #tpu.memory_space<vmem>>, vector<2x64xbf16>
    %c0_1 = arith.constant 0 : index
    %c0_2 = arith.constant 0 : index
    %1 = vector.load %arg1[%c0_1, %c0_2] : memref<64x1024xbf16, #tpu.memory_space<vmem>>, vector<64x1024xbf16>
    %cst = arith.constant dense<0.000000e+00> : vector<2x1024xf32>
    %2 = tpu.matmul %0, %1, %cst {dimension_numbers = #tpu.dot_dimension_numbers<[1], [0], [0], [1], [0, 0, 1, 1], [], []>} : vector<2x64xbf16>, vector<64x1024xbf16>, vector<2x1024xf32> -> vector<2x1024xf32>
    %c0_3 = arith.constant 0 : index
    %c0_4 = arith.constant 0 : index
    %3 = vector.load %arg2[%c0_3, %c0_4] : memref<1x1024xf32, #tpu.memory_space<vmem>>, vector<1x1024xf32>
    %4 = vector.broadcast %3 : vector<1x1024xf32> to vector<2x1024xf32>
    %5 = arith.addf %2, %4 : vector<2x1024xf32>
    %6 = arith.truncf %5 : vector<2x1024xf32> to vector<2x1024xbf16>
    %c0_5 = arith.constant 0 : index
    %c0_6 = arith.constant 0 : index
    %7 = vector.load %arg3[%c0_5, %c0_6] : memref<2x1024xbf16, #tpu.memory_space<vmem>>, vector<2x1024xbf16>
    tpu.vector_store %arg3[%c0_5, %c0_6], %6 {strides = array<i32>} : memref<2x1024xbf16, #tpu.memory_space<vmem>>, vector<2x1024xbf16>,
    return
  }
}

module attributes {stable_mosaic.version = 11 : i64} {
  func.func @_tconv_bn_relu_kernel(%arg0: memref<4x32x256xbf16, #tpu.memory_space<vmem>>, %arg1: memref<4x256x32xbf16, #tpu.memory_space<vmem>>, %arg2: memref<1x32xf32, #tpu.memory_space<vmem>>, %arg3: memref<1x32xf32, #tpu.memory_space<vmem>>, %arg4: memref<1x32xf32, #tpu.memory_space<vmem>>, %arg5: memref<128x32xbf16, #tpu.memory_space<vmem>>) attributes {dimension_semantics = [], scalar_prefetch = 0 : i64, scratch_operands = 0 : i64, tpu.core_type = #tpu.core_type<tc>} {
    %c0 = arith.constant 0 : index
    %c0_0 = arith.constant 0 : index
    %c0_1 = arith.constant 0 : index
    %0 = vector.load %arg0[%c0, %c0_0, %c0_1] : memref<4x32x256xbf16, #tpu.memory_space<vmem>>, vector<1x32x256xbf16>
    %1 = vector.shape_cast %0 : vector<1x32x256xbf16> to vector<32x256xbf16>
    %c0_2 = arith.constant 0 : index
    %c0_3 = arith.constant 0 : index
    %c0_4 = arith.constant 0 : index
    %2 = vector.load %arg1[%c0_2, %c0_3, %c0_4] : memref<4x256x32xbf16, #tpu.memory_space<vmem>>, vector<1x256x32xbf16>
    %3 = vector.shape_cast %2 : vector<1x256x32xbf16> to vector<256x32xbf16>
    %cst = arith.constant dense<0.000000e+00> : vector<32x32xf32>
    %4 = tpu.matmul %1, %3, %cst {dimension_numbers = #tpu.dot_dimension_numbers<[1], [0], [0], [1], [0, 0, 1, 1], [], []>} : vector<32x256xbf16>, vector<256x32xbf16>, vector<32x32xf32> -> vector<32x32xf32>
    %c1 = arith.constant 1 : index
    %c0_5 = arith.constant 0 : index
    %c0_6 = arith.constant 0 : index
    %5 = vector.load %arg0[%c1, %c0_5, %c0_6] : memref<4x32x256xbf16, #tpu.memory_space<vmem>>, vector<1x32x256xbf16>
    %6 = vector.shape_cast %5 : vector<1x32x256xbf16> to vector<32x256xbf16>
    %c1_7 = arith.constant 1 : index
    %c0_8 = arith.constant 0 : index
    %c0_9 = arith.constant 0 : index
    %7 = vector.load %arg1[%c1_7, %c0_8, %c0_9] : memref<4x256x32xbf16, #tpu.memory_space<vmem>>, vector<1x256x32xbf16>
    %8 = vector.shape_cast %7 : vector<1x256x32xbf16> to vector<256x32xbf16>
    %cst_10 = arith.constant dense<0.000000e+00> : vector<32x32xf32>
    %9 = tpu.matmul %6, %8, %cst_10 {dimension_numbers = #tpu.dot_dimension_numbers<[1], [0], [0], [1], [0, 0, 1, 1], [], []>} : vector<32x256xbf16>, vector<256x32xbf16>, vector<32x32xf32> -> vector<32x32xf32>
    %c2 = arith.constant 2 : index
    %c0_11 = arith.constant 0 : index
    %c0_12 = arith.constant 0 : index
    %10 = vector.load %arg0[%c2, %c0_11, %c0_12] : memref<4x32x256xbf16, #tpu.memory_space<vmem>>, vector<1x32x256xbf16>
    %11 = vector.shape_cast %10 : vector<1x32x256xbf16> to vector<32x256xbf16>
    %c2_13 = arith.constant 2 : index
    %c0_14 = arith.constant 0 : index
    %c0_15 = arith.constant 0 : index
    %12 = vector.load %arg1[%c2_13, %c0_14, %c0_15] : memref<4x256x32xbf16, #tpu.memory_space<vmem>>, vector<1x256x32xbf16>
    %13 = vector.shape_cast %12 : vector<1x256x32xbf16> to vector<256x32xbf16>
    %cst_16 = arith.constant dense<0.000000e+00> : vector<32x32xf32>
    %14 = tpu.matmul %11, %13, %cst_16 {dimension_numbers = #tpu.dot_dimension_numbers<[1], [0], [0], [1], [0, 0, 1, 1], [], []>} : vector<32x256xbf16>, vector<256x32xbf16>, vector<32x32xf32> -> vector<32x32xf32>
    %c3 = arith.constant 3 : index
    %c0_17 = arith.constant 0 : index
    %c0_18 = arith.constant 0 : index
    %15 = vector.load %arg0[%c3, %c0_17, %c0_18] : memref<4x32x256xbf16, #tpu.memory_space<vmem>>, vector<1x32x256xbf16>
    %16 = vector.shape_cast %15 : vector<1x32x256xbf16> to vector<32x256xbf16>
    %c3_19 = arith.constant 3 : index
    %c0_20 = arith.constant 0 : index
    %c0_21 = arith.constant 0 : index
    %17 = vector.load %arg1[%c3_19, %c0_20, %c0_21] : memref<4x256x32xbf16, #tpu.memory_space<vmem>>, vector<1x256x32xbf16>
    %18 = vector.shape_cast %17 : vector<1x256x32xbf16> to vector<256x32xbf16>
    %cst_22 = arith.constant dense<0.000000e+00> : vector<32x32xf32>
    %19 = tpu.matmul %16, %18, %cst_22 {dimension_numbers = #tpu.dot_dimension_numbers<[1], [0], [0], [1], [0, 0, 1, 1], [], []>} : vector<32x256xbf16>, vector<256x32xbf16>, vector<32x32xf32> -> vector<32x32xf32>
    %20 = tpu.concatenate %4, %9, %14, %19 in 0 : vector<32x32xf32>, vector<32x32xf32>, vector<32x32xf32>, vector<32x32xf32> -> vector<128x32xf32>
    %c0_23 = arith.constant 0 : index
    %c0_24 = arith.constant 0 : index
    %21 = vector.load %arg2[%c0_23, %c0_24] : memref<1x32xf32, #tpu.memory_space<vmem>>, vector<1x32xf32>
    %22 = vector.broadcast %21 : vector<1x32xf32> to vector<128x32xf32>
    %23 = arith.addf %20, %22 : vector<128x32xf32>
    %cst_25 = arith.constant dense<0.000000e+00> : vector<32xf32>
    %24 = vector.multi_reduction <add>, %23, %cst_25 [0] : vector<128x32xf32> to vector<32xf32>
    %25 = vector.shape_cast %24 : vector<32xf32> to vector<1x32xf32>
    %cst_26 = arith.constant 1.280000e+02 : f32
    %26 = vector.broadcast %cst_26 : f32 to vector<1x32xf32>
    %27 = arith.divf %25, %26 : vector<1x32xf32>
    %28 = vector.broadcast %27 : vector<1x32xf32> to vector<128x32xf32>
    %29 = arith.subf %23, %28 : vector<128x32xf32>
    %30 = arith.mulf %29, %29 : vector<128x32xf32>
    %cst_27 = arith.constant dense<0.000000e+00> : vector<32xf32>
    %31 = vector.multi_reduction <add>, %30, %cst_27 [0] : vector<128x32xf32> to vector<32xf32>
    %32 = vector.shape_cast %31 : vector<32xf32> to vector<1x32xf32>
    %cst_28 = arith.constant 1.280000e+02 : f32
    %33 = vector.broadcast %cst_28 : f32 to vector<1x32xf32>
    %34 = arith.divf %32, %33 : vector<1x32xf32>
    %c0_29 = arith.constant 0 : index
    %c0_30 = arith.constant 0 : index
    %35 = vector.load %arg3[%c0_29, %c0_30] : memref<1x32xf32, #tpu.memory_space<vmem>>, vector<1x32xf32>
    %cst_31 = arith.constant 9.99999974E-6 : f32
    %36 = vector.broadcast %cst_31 : f32 to vector<1x32xf32>
    %37 = arith.addf %34, %36 : vector<1x32xf32>
    %38 = math.rsqrt %37 : vector<1x32xf32>
    %39 = arith.mulf %35, %38 : vector<1x32xf32>
    %40 = vector.broadcast %27 : vector<1x32xf32> to vector<128x32xf32>
    %41 = arith.subf %23, %40 : vector<128x32xf32>
    %42 = vector.broadcast %39 : vector<1x32xf32> to vector<128x32xf32>
    %43 = arith.mulf %41, %42 : vector<128x32xf32>
    %c0_32 = arith.constant 0 : index
    %c0_33 = arith.constant 0 : index
    %44 = vector.load %arg4[%c0_32, %c0_33] : memref<1x32xf32, #tpu.memory_space<vmem>>, vector<1x32xf32>
    %45 = vector.broadcast %44 : vector<1x32xf32> to vector<128x32xf32>
    %46 = arith.addf %43, %45 : vector<128x32xf32>
    %cst_34 = arith.constant 0.000000e+00 : f32
    %47 = vector.broadcast %cst_34 : f32 to vector<128x32xf32>
    %48 = arith.maximumf %46, %47 : vector<128x32xf32>
    %49 = arith.truncf %48 : vector<128x32xf32> to vector<128x32xbf16>
    %c0_35 = arith.constant 0 : index
    %c0_36 = arith.constant 0 : index
    %50 = vector.load %arg5[%c0_35, %c0_36] : memref<128x32xbf16, #tpu.memory_space<vmem>>, vector<128x32xbf16>
    tpu.vector_store %arg5[%c0_35, %c0_36], %49 {strides = array<i32>} : memref<128x32xbf16, #tpu.memory_space<vmem>>, vector<128x32xbf16>,
    return
  }
}

module attributes {stable_mosaic.version = 11 : i64} {
  func.func @_tconv_bn_relu_kernel(%arg0: memref<4x128x128xbf16, #tpu.memory_space<vmem>>, %arg1: memref<4x128x16xbf16, #tpu.memory_space<vmem>>, %arg2: memref<1x16xf32, #tpu.memory_space<vmem>>, %arg3: memref<1x16xf32, #tpu.memory_space<vmem>>, %arg4: memref<1x16xf32, #tpu.memory_space<vmem>>, %arg5: memref<512x16xbf16, #tpu.memory_space<vmem>>) attributes {dimension_semantics = [], scalar_prefetch = 0 : i64, scratch_operands = 0 : i64, tpu.core_type = #tpu.core_type<tc>} {
    %c0 = arith.constant 0 : index
    %c0_0 = arith.constant 0 : index
    %c0_1 = arith.constant 0 : index
    %0 = vector.load %arg0[%c0, %c0_0, %c0_1] : memref<4x128x128xbf16, #tpu.memory_space<vmem>>, vector<1x128x128xbf16>
    %1 = vector.shape_cast %0 : vector<1x128x128xbf16> to vector<128x128xbf16>
    %c0_2 = arith.constant 0 : index
    %c0_3 = arith.constant 0 : index
    %c0_4 = arith.constant 0 : index
    %2 = vector.load %arg1[%c0_2, %c0_3, %c0_4] : memref<4x128x16xbf16, #tpu.memory_space<vmem>>, vector<1x128x16xbf16>
    %3 = vector.shape_cast %2 : vector<1x128x16xbf16> to vector<128x16xbf16>
    %cst = arith.constant dense<0.000000e+00> : vector<128x16xf32>
    %4 = tpu.matmul %1, %3, %cst {dimension_numbers = #tpu.dot_dimension_numbers<[1], [0], [0], [1], [0, 0, 1, 1], [], []>} : vector<128x128xbf16>, vector<128x16xbf16>, vector<128x16xf32> -> vector<128x16xf32>
    %c1 = arith.constant 1 : index
    %c0_5 = arith.constant 0 : index
    %c0_6 = arith.constant 0 : index
    %5 = vector.load %arg0[%c1, %c0_5, %c0_6] : memref<4x128x128xbf16, #tpu.memory_space<vmem>>, vector<1x128x128xbf16>
    %6 = vector.shape_cast %5 : vector<1x128x128xbf16> to vector<128x128xbf16>
    %c1_7 = arith.constant 1 : index
    %c0_8 = arith.constant 0 : index
    %c0_9 = arith.constant 0 : index
    %7 = vector.load %arg1[%c1_7, %c0_8, %c0_9] : memref<4x128x16xbf16, #tpu.memory_space<vmem>>, vector<1x128x16xbf16>
    %8 = vector.shape_cast %7 : vector<1x128x16xbf16> to vector<128x16xbf16>
    %cst_10 = arith.constant dense<0.000000e+00> : vector<128x16xf32>
    %9 = tpu.matmul %6, %8, %cst_10 {dimension_numbers = #tpu.dot_dimension_numbers<[1], [0], [0], [1], [0, 0, 1, 1], [], []>} : vector<128x128xbf16>, vector<128x16xbf16>, vector<128x16xf32> -> vector<128x16xf32>
    %c2 = arith.constant 2 : index
    %c0_11 = arith.constant 0 : index
    %c0_12 = arith.constant 0 : index
    %10 = vector.load %arg0[%c2, %c0_11, %c0_12] : memref<4x128x128xbf16, #tpu.memory_space<vmem>>, vector<1x128x128xbf16>
    %11 = vector.shape_cast %10 : vector<1x128x128xbf16> to vector<128x128xbf16>
    %c2_13 = arith.constant 2 : index
    %c0_14 = arith.constant 0 : index
    %c0_15 = arith.constant 0 : index
    %12 = vector.load %arg1[%c2_13, %c0_14, %c0_15] : memref<4x128x16xbf16, #tpu.memory_space<vmem>>, vector<1x128x16xbf16>
    %13 = vector.shape_cast %12 : vector<1x128x16xbf16> to vector<128x16xbf16>
    %cst_16 = arith.constant dense<0.000000e+00> : vector<128x16xf32>
    %14 = tpu.matmul %11, %13, %cst_16 {dimension_numbers = #tpu.dot_dimension_numbers<[1], [0], [0], [1], [0, 0, 1, 1], [], []>} : vector<128x128xbf16>, vector<128x16xbf16>, vector<128x16xf32> -> vector<128x16xf32>
    %c3 = arith.constant 3 : index
    %c0_17 = arith.constant 0 : index
    %c0_18 = arith.constant 0 : index
    %15 = vector.load %arg0[%c3, %c0_17, %c0_18] : memref<4x128x128xbf16, #tpu.memory_space<vmem>>, vector<1x128x128xbf16>
    %16 = vector.shape_cast %15 : vector<1x128x128xbf16> to vector<128x128xbf16>
    %c3_19 = arith.constant 3 : index
    %c0_20 = arith.constant 0 : index
    %c0_21 = arith.constant 0 : index
    %17 = vector.load %arg1[%c3_19, %c0_20, %c0_21] : memref<4x128x16xbf16, #tpu.memory_space<vmem>>, vector<1x128x16xbf16>
    %18 = vector.shape_cast %17 : vector<1x128x16xbf16> to vector<128x16xbf16>
    %cst_22 = arith.constant dense<0.000000e+00> : vector<128x16xf32>
    %19 = tpu.matmul %16, %18, %cst_22 {dimension_numbers = #tpu.dot_dimension_numbers<[1], [0], [0], [1], [0, 0, 1, 1], [], []>} : vector<128x128xbf16>, vector<128x16xbf16>, vector<128x16xf32> -> vector<128x16xf32>
    %20 = tpu.concatenate %4, %9, %14, %19 in 0 : vector<128x16xf32>, vector<128x16xf32>, vector<128x16xf32>, vector<128x16xf32> -> vector<512x16xf32>
    %c0_23 = arith.constant 0 : index
    %c0_24 = arith.constant 0 : index
    %21 = vector.load %arg2[%c0_23, %c0_24] : memref<1x16xf32, #tpu.memory_space<vmem>>, vector<1x16xf32>
    %22 = vector.broadcast %21 : vector<1x16xf32> to vector<512x16xf32>
    %23 = arith.addf %20, %22 : vector<512x16xf32>
    %cst_25 = arith.constant dense<0.000000e+00> : vector<16xf32>
    %24 = vector.multi_reduction <add>, %23, %cst_25 [0] : vector<512x16xf32> to vector<16xf32>
    %25 = vector.shape_cast %24 : vector<16xf32> to vector<1x16xf32>
    %cst_26 = arith.constant 5.120000e+02 : f32
    %26 = vector.broadcast %cst_26 : f32 to vector<1x16xf32>
    %27 = arith.divf %25, %26 : vector<1x16xf32>
    %28 = vector.broadcast %27 : vector<1x16xf32> to vector<512x16xf32>
    %29 = arith.subf %23, %28 : vector<512x16xf32>
    %30 = arith.mulf %29, %29 : vector<512x16xf32>
    %cst_27 = arith.constant dense<0.000000e+00> : vector<16xf32>
    %31 = vector.multi_reduction <add>, %30, %cst_27 [0] : vector<512x16xf32> to vector<16xf32>
    %32 = vector.shape_cast %31 : vector<16xf32> to vector<1x16xf32>
    %cst_28 = arith.constant 5.120000e+02 : f32
    %33 = vector.broadcast %cst_28 : f32 to vector<1x16xf32>
    %34 = arith.divf %32, %33 : vector<1x16xf32>
    %c0_29 = arith.constant 0 : index
    %c0_30 = arith.constant 0 : index
    %35 = vector.load %arg3[%c0_29, %c0_30] : memref<1x16xf32, #tpu.memory_space<vmem>>, vector<1x16xf32>
    %cst_31 = arith.constant 9.99999974E-6 : f32
    %36 = vector.broadcast %cst_31 : f32 to vector<1x16xf32>
    %37 = arith.addf %34, %36 : vector<1x16xf32>
    %38 = math.rsqrt %37 : vector<1x16xf32>
    %39 = arith.mulf %35, %38 : vector<1x16xf32>
    %40 = vector.broadcast %27 : vector<1x16xf32> to vector<512x16xf32>
    %41 = arith.subf %23, %40 : vector<512x16xf32>
    %42 = vector.broadcast %39 : vector<1x16xf32> to vector<512x16xf32>
    %43 = arith.mulf %41, %42 : vector<512x16xf32>
    %c0_32 = arith.constant 0 : index
    %c0_33 = arith.constant 0 : index
    %44 = vector.load %arg4[%c0_32, %c0_33] : memref<1x16xf32, #tpu.memory_space<vmem>>, vector<1x16xf32>
    %45 = vector.broadcast %44 : vector<1x16xf32> to vector<512x16xf32>
    %46 = arith.addf %43, %45 : vector<512x16xf32>
    %cst_34 = arith.constant 0.000000e+00 : f32
    %47 = vector.broadcast %cst_34 : f32 to vector<512x16xf32>
    %48 = arith.maximumf %46, %47 : vector<512x16xf32>
    %49 = arith.truncf %48 : vector<512x16xf32> to vector<512x16xbf16>
    %c0_35 = arith.constant 0 : index
    %c0_36 = arith.constant 0 : index
    %50 = vector.load %arg5[%c0_35, %c0_36] : memref<512x16xbf16, #tpu.memory_space<vmem>>, vector<512x16xbf16>
    tpu.vector_store %arg5[%c0_35, %c0_36], %49 {strides = array<i32>} : memref<512x16xbf16, #tpu.memory_space<vmem>>, vector<512x16xbf16>,
    return
  }
}

module attributes {stable_mosaic.version = 11 : i64} {
  func.func @_tconv_tanh_kernel(%arg0: memref<4x512x64xbf16, #tpu.memory_space<vmem>>, %arg1: memref<4x64x3xbf16, #tpu.memory_space<vmem>>, %arg2: memref<1x3xf32, #tpu.memory_space<vmem>>, %arg3: memref<2048x3xf32, #tpu.memory_space<vmem>>) attributes {dimension_semantics = [], scalar_prefetch = 0 : i64, scratch_operands = 0 : i64, tpu.core_type = #tpu.core_type<tc>} {
    %c0 = arith.constant 0 : index
    %c0_0 = arith.constant 0 : index
    %c0_1 = arith.constant 0 : index
    %0 = vector.load %arg0[%c0, %c0_0, %c0_1] : memref<4x512x64xbf16, #tpu.memory_space<vmem>>, vector<1x512x64xbf16>
    %1 = vector.shape_cast %0 : vector<1x512x64xbf16> to vector<512x64xbf16>
    %c0_2 = arith.constant 0 : index
    %c0_3 = arith.constant 0 : index
    %c0_4 = arith.constant 0 : index
    %2 = vector.load %arg1[%c0_2, %c0_3, %c0_4] : memref<4x64x3xbf16, #tpu.memory_space<vmem>>, vector<1x64x3xbf16>
    %3 = vector.shape_cast %2 : vector<1x64x3xbf16> to vector<64x3xbf16>
    %cst = arith.constant dense<0.000000e+00> : vector<512x3xf32>
    %4 = tpu.matmul %1, %3, %cst {dimension_numbers = #tpu.dot_dimension_numbers<[1], [0], [0], [1], [0, 0, 1, 1], [], []>} : vector<512x64xbf16>, vector<64x3xbf16>, vector<512x3xf32> -> vector<512x3xf32>
    %c1 = arith.constant 1 : index
    %c0_5 = arith.constant 0 : index
    %c0_6 = arith.constant 0 : index
    %5 = vector.load %arg0[%c1, %c0_5, %c0_6] : memref<4x512x64xbf16, #tpu.memory_space<vmem>>, vector<1x512x64xbf16>
    %6 = vector.shape_cast %5 : vector<1x512x64xbf16> to vector<512x64xbf16>
    %c1_7 = arith.constant 1 : index
    %c0_8 = arith.constant 0 : index
    %c0_9 = arith.constant 0 : index
    %7 = vector.load %arg1[%c1_7, %c0_8, %c0_9] : memref<4x64x3xbf16, #tpu.memory_space<vmem>>, vector<1x64x3xbf16>
    %8 = vector.shape_cast %7 : vector<1x64x3xbf16> to vector<64x3xbf16>
    %cst_10 = arith.constant dense<0.000000e+00> : vector<512x3xf32>
    %9 = tpu.matmul %6, %8, %cst_10 {dimension_numbers = #tpu.dot_dimension_numbers<[1], [0], [0], [1], [0, 0, 1, 1], [], []>} : vector<512x64xbf16>, vector<64x3xbf16>, vector<512x3xf32> -> vector<512x3xf32>
    %c2 = arith.constant 2 : index
    %c0_11 = arith.constant 0 : index
    %c0_12 = arith.constant 0 : index
    %10 = vector.load %arg0[%c2, %c0_11, %c0_12] : memref<4x512x64xbf16, #tpu.memory_space<vmem>>, vector<1x512x64xbf16>
    %11 = vector.shape_cast %10 : vector<1x512x64xbf16> to vector<512x64xbf16>
    %c2_13 = arith.constant 2 : index
    %c0_14 = arith.constant 0 : index
    %c0_15 = arith.constant 0 : index
    %12 = vector.load %arg1[%c2_13, %c0_14, %c0_15] : memref<4x64x3xbf16, #tpu.memory_space<vmem>>, vector<1x64x3xbf16>
    %13 = vector.shape_cast %12 : vector<1x64x3xbf16> to vector<64x3xbf16>
    %cst_16 = arith.constant dense<0.000000e+00> : vector<512x3xf32>
    %14 = tpu.matmul %11, %13, %cst_16 {dimension_numbers = #tpu.dot_dimension_numbers<[1], [0], [0], [1], [0, 0, 1, 1], [], []>} : vector<512x64xbf16>, vector<64x3xbf16>, vector<512x3xf32> -> vector<512x3xf32>
    %c3 = arith.constant 3 : index
    %c0_17 = arith.constant 0 : index
    %c0_18 = arith.constant 0 : index
    %15 = vector.load %arg0[%c3, %c0_17, %c0_18] : memref<4x512x64xbf16, #tpu.memory_space<vmem>>, vector<1x512x64xbf16>
    %16 = vector.shape_cast %15 : vector<1x512x64xbf16> to vector<512x64xbf16>
    %c3_19 = arith.constant 3 : index
    %c0_20 = arith.constant 0 : index
    %c0_21 = arith.constant 0 : index
    %17 = vector.load %arg1[%c3_19, %c0_20, %c0_21] : memref<4x64x3xbf16, #tpu.memory_space<vmem>>, vector<1x64x3xbf16>
    %18 = vector.shape_cast %17 : vector<1x64x3xbf16> to vector<64x3xbf16>
    %cst_22 = arith.constant dense<0.000000e+00> : vector<512x3xf32>
    %19 = tpu.matmul %16, %18, %cst_22 {dimension_numbers = #tpu.dot_dimension_numbers<[1], [0], [0], [1], [0, 0, 1, 1], [], []>} : vector<512x64xbf16>, vector<64x3xbf16>, vector<512x3xf32> -> vector<512x3xf32>
    %20 = tpu.concatenate %4, %9, %14, %19 in 0 : vector<512x3xf32>, vector<512x3xf32>, vector<512x3xf32>, vector<512x3xf32> -> vector<2048x3xf32>
    %c0_23 = arith.constant 0 : index
    %c0_24 = arith.constant 0 : index
    %21 = vector.load %arg2[%c0_23, %c0_24] : memref<1x3xf32, #tpu.memory_space<vmem>>, vector<1x3xf32>
    %22 = vector.broadcast %21 : vector<1x3xf32> to vector<2048x3xf32>
    %23 = arith.addf %20, %22 : vector<2048x3xf32>
    %24 = math.tanh %23 : vector<2048x3xf32>
    %c0_25 = arith.constant 0 : index
    %c0_26 = arith.constant 0 : index
    %25 = vector.load %arg3[%c0_25, %c0_26] : memref<2048x3xf32, #tpu.memory_space<vmem>>, vector<2048x3xf32>
    tpu.vector_store %arg3[%c0_25, %c0_26], %24 {strides = array<i32>} : memref<2048x3xf32, #tpu.memory_space<vmem>>, vector<2048x3xf32>,
    return
  }
}

</mosaic_0001>

<bundles_post_ra>
// kernel: generator_forward.4
= control target key start
LH: loop header
LB: loop body
LE: loop exit
PB: predicated region body
PF: predicated region fallthrough
CT: control target
= control target key end

     0   :  { %8 = vsyncpa [#allocation3], 0  ;;  %s653_s0 = inlined_call_operand.vmem [shape: bf16[2,64], index: 0, kind: input, shape index: {}]   ;;  %s654_s1 = inlined_call_operand.hbm [shape: bf16[64,1024], index: 1, kind: input, shape index: {}]   ;;  %s655_s2 = inlined_call_operand.hbm [shape: f32[1,1024], index: 2, kind: input, shape index: {}]   ;;  %s656_s3 = inlined_call_operand.vmem [shape: bf16[2,1024], index: 3, kind: output, shape index: {}]  }
   0x1   :  { %9 = vsyncpa [#allocation5], 0  ;;  %s607_s12 = smov [#allocation2]  }
   0x2   :  { %s17_s13 = sshll.u32 %s607_s12, 4  ;;  %s18_s13 = int_to_ptr.vmem [resolvable:$true] %s17_s13 }
   0x3   :  { %s571_s14 = scalar_lea.vmem %s18_s13, 4096  ;;  %p576_p1 = scmp.lt.s32.totalorder %s18_s13, %s18_s13 }
   0x4   :  { %p572_p0 = scmp.ne.s32.totalorder %s18_s13, %s571_s14  ;;  %p577_p2 = scmp.lt.s32.totalorder %s571_s14, %s571_s14 }
   0x6   :  { %p578_p3 = por %p577_p2, %p576_p1 }
   0x8   :  { %p579_p4 = pnand %p578_p3, %p572_p0 }
   0xa   :  { %582 = shalt.err (!%p579_p4)
}
   0xb   :  { %s608_s15 = smov 512   ;;  %s609_s16 = smov 32  }
   0xc   :  { %23 = dma.hbm_to_vmem [thread:$0]  %s654_s1, 4096, %s18_s13, [#allocation3], %s608_s15, %s608_s15, %s609_s16  }
   0xd   :  { %s610_s19 = smov [#allocation4]  }
   0xe   :  { %s30_s20 = sshll.u32 %s610_s19, 4  ;;  %s31_s20 = int_to_ptr.vmem [resolvable:$true] %s30_s20 }
   0xf   :  { %s591_s21 = scalar_lea.vmem %s31_s20, 128  ;;  %p596_p6 = scmp.lt.s32.totalorder %s31_s20, %s31_s20 }
  0x10   :  { %p592_p5 = scmp.ne.s32.totalorder %s31_s20, %s591_s21  ;;  %p597_p7 = scmp.lt.s32.totalorder %s591_s21, %s591_s21 }
  0x12   :  { %p598_p8 = por %p597_p7, %p596_p6 }
  0x14   :  { %p599_p9 = pnand %p598_p8, %p592_p5 }
  0x16   :  { %602 = shalt.err (!%p599_p9)
}
  0x17   :  { %33 = dma.hbm_to_vmem [thread:$0]  %s655_s2, 128, %s31_s20, [#allocation5]  }
  0x18   :  { %603 = dma.done.wait [#allocation3], 4096  }
  0x19   :  { %604 = vsyncadd [#allocation3], 4294963200 }
  0x1a   :  { %605 = dma.done.wait [#allocation5], 128  }
  0x1b   :  { %606 = vsyncadd [#allocation5], 4294967168  ;;  %v611_v0 = vmov 0   ;;  %v66_v1 = vld [vmem:[#allocation2 + $0xc0] sm:$0xff]  ;;  %v67_v3 = vld [vmem:[#allocation2 + $0xc8] sm:$0xff]  ;;  %vm276_vm0 = vcmask 523264  }
  0x1c   :  { %312 = vmatprep.mubr.bf16.mxu0 %v611_v0  ;;  %353 = vmatprep.mubr.bf16.mxu1 %v611_v0  ;;  %v70_v2 = vld [vmem:[#allocation2 + $0xe0] sm:$0xff]  ;;  %v71_v5 = vld [vmem:[#allocation2 + $0xe8] sm:$0xff]  ;;  %v68_v31 = vld [vmem:[#allocation2 + $0xd0] sm:$0xff] }
  0x1d   :  { %v542_v4 = vcombine.high %v66_v1, %v70_v2  ;;  %v541_v6 = vcombine.low %v66_v1, %v70_v2  ;;  %v58_v7 = vld [vmem:[#allocation2 + $0x80] sm:$0xff]  ;;  %v544_v9 = vcombine.high %v67_v3, %v71_v5  ;;  %v543_v10 = vcombine.low %v67_v3, %v71_v5  ;;  %v59_v12 = vld [vmem:[#allocation2 + $0x88] sm:$0xff]  ;;  %v72_v32 = vld [vmem:[#allocation2 + $0xf0] sm:$0xff] }
  0x1e   :  { %v62_v8 = vld [vmem:[#allocation2 + $0xa0] sm:$0xff]  ;;  %v63_v13 = vld [vmem:[#allocation2 + $0xa8] sm:$0xff]  ;;  %v69_v33 = vld [vmem:[#allocation2 + $0xd8] sm:$0xff]  ;;  %v546_v37 = vcombine.high %v68_v31, %v72_v32  ;;  %v545_v44 = vcombine.low %v68_v31, %v72_v32 }
  0x1f   :  { %v534_v11 = vcombine.high %v58_v7, %v62_v8  ;;  %v50_v14 = vld [vmem:[#allocation2 + $0x40] sm:$0xff]  ;;  %288 = vmatprep.subr.bf16.mxu0 %v542_v4  ;;  %v536_v15 = vcombine.high %v59_v12, %v63_v13  ;;  %v51_v17 = vld [vmem:[#allocation2 + $0x48] sm:$0xff]  ;;  %329 = vmatprep.subr.bf16.mxu1 %v544_v9  ;;  %v533_v19 = vcombine.low %v58_v7, %v62_v8  ;;  %v73_v34 = vld [vmem:[#allocation2 + $0xf8] sm:$0xff] }
  0x20   :  { %v54_v16 = vld [vmem:[#allocation2 + $0x60] sm:$0xff]  ;;  %v55_v18 = vld [vmem:[#allocation2 + $0x68] sm:$0xff]  ;;  %289 = vmatpush1.bf16.msra.mxu0 %v541_v6  ;;  %330 = vmatpush1.bf16.msra.mxu1 %v543_v10  ;;  %v535_v20 = vcombine.low %v59_v12, %v63_v13  ;;  %v548_v38 = vcombine.high %v69_v33, %v73_v34  ;;  %v60_v39 = vld [vmem:[#allocation2 + $0x90] sm:$0xff]  ;;  %v547_v45 = vcombine.low %v69_v33, %v73_v34 }
  0x21   :  { %290 = vmatprep.subr.bf16.mxu0 %v534_v11  ;;  %v526_v21 = vcombine.high %v50_v14, %v54_v16  ;;  %331 = vmatprep.subr.bf16.mxu1 %v536_v15  ;;  %v528_v22 = vcombine.high %v51_v17, %v55_v18  ;;  %v42_v23 = vld [vmem:[#allocation2] sm:$0xff]  ;;  %v43_v25 = vld [vmem:[#allocation2 + $0x8] sm:$0xff]  ;;  %v525_v27 = vcombine.low %v50_v14, %v54_v16  ;;  %v64_v40 = vld [vmem:[#allocation2 + $0xb0] sm:$0xff]  ;;  %v612_v15 = vmov 1966171168  }
  0x22   :  { %v46_v24 = vld [vmem:[#allocation2 + $0x20] sm:$0xff]  ;;  %v47_v26 = vld [vmem:[#allocation2 + $0x28] sm:$0xff]  ;;  %v527_v28 = vcombine.low %v51_v17, %v55_v18  ;;  %v61_v41 = vld [vmem:[#allocation2 + $0x98] sm:$0xff]  ;;  %v538_v46 = vcombine.high %v60_v39, %v64_v40  ;;  %v537_v52 = vcombine.low %v60_v39, %v64_v40  ;;  %v465_v16 = vunpack.c.l.s4 %v612_v15 }
  0x23   :  { %v518_v29 = vcombine.high %v42_v23, %v46_v24  ;;  %v520_v30 = vcombine.high %v43_v25, %v47_v26  ;;  %v517_v35 = vcombine.low %v42_v23, %v46_v24  ;;  %v519_v36 = vcombine.low %v43_v25, %v47_v26  ;;  %v65_v42 = vld [vmem:[#allocation2 + $0xb8] sm:$0xff]  ;;  %v41_v43 = vld [vmem:[%s653_s0] sm:$0x1]  ;;  %v52_v48 = vld [vmem:[#allocation2 + $0x50] sm:$0xff] }
  0x24   :  { %291 = vmatpush1.bf16.msra.mxu0 %v533_v19  ;;  %332 = vmatpush1.bf16.msra.mxu1 %v535_v20  ;;  %v540_v47 = vcombine.high %v61_v41, %v65_v42  ;;  %v56_v49 = vld [vmem:[#allocation2 + $0x70] sm:$0xff]  ;;  %v53_v50 = vld [vmem:[#allocation2 + $0x58] sm:$0xff]  ;;  %v539_v53 = vcombine.low %v61_v41, %v65_v42  ;;  %v74_v13 = vld [vmem:[#allocation4] sm:$0xff]  ;;  %v466_v23 = vunpack.c.0.s8 %v465_v16 }
  0x25   :  { %292 = vmatprep.subr.bf16.mxu0 %v526_v21  ;;  %333 = vmatprep.subr.bf16.mxu1 %v528_v22  ;;  %v57_v51 = vld [vmem:[#allocation2 + $0x78] sm:$0xff]  ;;  %v530_v54 = vcombine.high %v52_v48, %v56_v49  ;;  %v44_v56 = vld [vmem:[#allocation2 + $0x10] sm:$0xff]  ;;  %v529_v60 = vcombine.low %v52_v48, %v56_v49 }
  0x26   :  { %v532_v55 = vcombine.high %v53_v50, %v57_v51  ;;  %v48_v57 = vld [vmem:[#allocation2 + $0x30] sm:$0xff]  ;;  %v45_v58 = vld [vmem:[#allocation2 + $0x18] sm:$0xff]  ;;  %v531_v61 = vcombine.low %v53_v50, %v57_v51 }
  0x27   :  { %v49_v59 = vld [vmem:[#allocation2 + $0x38] sm:$0xff]  ;;  %v522_v62 = vcombine.high %v44_v56, %v48_v57  ;;  %v521_v1 = vcombine.low %v44_v56, %v48_v57 }
  0x28   :  { %293 = vmatpush1.bf16.msra.mxu0 %v525_v27  ;;  %334 = vmatpush1.bf16.msra.mxu1 %v527_v28  ;;  %v524_v63 = vcombine.high %v45_v58, %v49_v59  ;;  %v523_v2 = vcombine.low %v45_v58, %v49_v59 }
  0x29   :  { %294 = vmatprep.subr.bf16.mxu0 %v518_v29  ;;  %335 = vmatprep.subr.bf16.mxu1 %v520_v30 }
  0x2c   :  { %295 = vmatpush1.bf16.msra.mxu0 %v517_v35  ;;  %336 = vmatpush1.bf16.msra.mxu1 %v519_v36 }
  0x2d   :  { %370 = vmatprep.subr.bf16.mxu0 %v546_v37  ;;  %411 = vmatprep.subr.bf16.mxu1 %v548_v38 }
  0x2f   :  { %549 = vmatmul.mubr.msk.bf16.vlgmr.msra.gmra.mxu0 %vm276_vm0, %v41_v43  ;;  %550 = vmatmul.mubr.msk.bf16.vlgmr.msra.gmra.mxu1 %vm276_vm0, %v41_v43 }
  0x30   :  { %371 = vmatpush1.bf16.msra.mxu0 %v545_v44  ;;  %412 = vmatpush1.bf16.msra.mxu1 %v547_v45 }
  0x31   :  { %372 = vmatprep.subr.bf16.mxu0 %v538_v46  ;;  %413 = vmatprep.subr.bf16.mxu1 %v540_v47 }
  0x32   :  { %394 = vmatprep.mubr.bf16.mxu0 %v611_v0  ;;  %435 = vmatprep.mubr.bf16.mxu1 %v611_v0  ;;  %v76_v0 = vlaneseq }
  0x34   :  { %373 = vmatpush1.bf16.msra.mxu0 %v537_v52  ;;  %414 = vmatpush1.bf16.msra.mxu1 %v539_v53  ;;  %v77_v3 = vshrl.u32 %v76_v0, 7 }
  0x35   :  { %374 = vmatprep.subr.bf16.mxu0 %v530_v54  ;;  %415 = vmatprep.subr.bf16.mxu1 %v532_v55 }
  0x36   :  { %v78_v8 = vsub.s32 0, %v77_v3  ;;  %v86_v9 = vsub.s32 2, %v77_v3  ;;  %v82_v10 = vsub.s32 1, %v77_v3  ;;  %v90_v11 = vsub.s32 3, %v77_v3 }
  0x37   :  { %v94_v24 = vsub.s32 4, %v77_v3  ;;  %v102_v25 = vsub.s32 6, %v77_v3  ;;  %v98_v26 = vsub.s32 5, %v77_v3  ;;  %v106_v27 = vsub.s32 7, %v77_v3 }
  0x38   :  { %375 = vmatpush1.bf16.msra.mxu0 %v529_v60  ;;  %416 = vmatpush1.bf16.msra.mxu1 %v531_v61  ;;  %v79_v19 = vrot.slane %v74_v13, %v78_v8  ;;  %v87_v20 = vrot.slane %v74_v13, %v86_v9  ;;  %v83_v21 = vrot.slane %v74_v13, %v82_v10 }
  0x39   :  { %376 = vmatprep.subr.bf16.mxu0 %v522_v62  ;;  %417 = vmatprep.subr.bf16.mxu1 %v524_v63  ;;  %v91_v22 = vrot.slane %v74_v13, %v90_v11  ;;  %v469_v32 = vsub.s32 %v466_v23, %v77_v3  ;;  %v95_v33 = vrot.slane %v74_v13, %v94_v24 }
  0x3a   :  { %v99_v34 = vrot.slane %v74_v13, %v98_v26  ;;  %v103_v38 = vrot.slane %v74_v13, %v102_v25  ;;  %v107_v39 = vrot.slane %v74_v13, %v106_v27 }
  0x3c   :  { %377 = vmatpush1.bf16.msra.mxu0 %v521_v1  ;;  %418 = vmatpush1.bf16.msra.mxu1 %v523_v2 }
  0x3f   :  { %551 = vmatmul.mubr.msk.bf16.vlgmr.msra.gmra.mxu0 %vm276_vm0, %v41_v43  ;;  %552 = vmatmul.mubr.msk.bf16.vlgmr.msra.gmra.mxu1 %vm276_vm0, %v41_v43 }
  0xef   :  { %v314_v4 = vpop.f32.mrf.mxu0  ;;  %v355_v5 = vpop.f32.mrf.mxu1 }
  0xf0   :  { %v315_v28 = vadd.f32 %v314_v4, %v79_v19  ;;  %v356_v29 = vadd.f32 %v355_v5, %v87_v20 }
  0xf1   :  { %v316_v6 = vpop.f32.mrf.mxu0  ;;  %v357_v7 = vpop.f32.mrf.mxu1 }
  0xf2   :  { %v317_v30 = vadd.f32 %v316_v6, %v83_v21  ;;  %v358_v31 = vadd.f32 %v357_v7, %v91_v22 }
  0xf3   :  { %v318_v12 = vpop.f32.mrf.mxu0  ;;  %v359_v14 = vpop.f32.mrf.mxu1 }
  0xf4   :  { %v553_v35 = vpack.c.bf16 %v317_v30, %v315_v28  ;;  %v554_v36 = vpack.c.bf16 %v358_v31, %v356_v29 }
  0xf5   :  { %v319_v17 = vpop.f32.mrf.mxu0  ;;  %v360_v18 = vpop.f32.mrf.mxu1 }
  0xf6   :  { %v470_v45 = vrot.slane %v553_v35, %v469_v32  ;;  %v477_v46 = vrot.slane %v554_v36, %v469_v32 }
  0xf8   :  { %v492_v56 = vcombine.low %v470_v45, %v477_v46 }
  0xfa   :  { %v500_v59 = vrot.slane %v492_v56, %v469_v32 }
  0xff   :  { %v396_v37 = vpop.f32.mrf.mxu0  ;;  %v437_v40 = vpop.f32.mrf.mxu1 }
 0x100   :  { %v397_v42 = vadd.f32 %v396_v37, %v95_v33  ;;  %v438_v47 = vadd.f32 %v437_v40, %v103_v38 }
 0x101   :  { %v398_v41 = vpop.f32.mrf.mxu0  ;;  %v439_v44 = vpop.f32.mrf.mxu1 }
 0x102   :  { %v399_v43 = vadd.f32 %v398_v41, %v99_v34  ;;  %v440_v48 = vadd.f32 %v439_v44, %v107_v39 }
 0x103   :  { %v400_v49 = vpop.f32.mrf.mxu0  ;;  %v441_v51 = vpop.f32.mrf.mxu1 }
 0x104   :  { %v555_v50 = vpack.c.bf16 %v399_v43, %v397_v42  ;;  %v556_v52 = vpack.c.bf16 %v440_v48, %v438_v47 }
 0x105   :  { %v401_v53 = vpop.f32.mrf.mxu0  ;;  %v442_v55 = vpop.f32.mrf.mxu1 }
 0x106   :  { %v484_v54 = vrot.slane %v555_v50, %v469_v32  ;;  %v491_v57 = vrot.slane %v556_v52, %v469_v32 }
 0x108   :  { %v493_v58 = vcombine.low %v484_v54, %v491_v57 }
 0x10a   :  { %v507_v60 = vrot.slane %v493_v58, %v469_v32 }
 0x10c   :  { %v508_v61 = vcombine.low %v500_v59, %v507_v60 }
 0x10e   :  { %510 = vst [vmem:[%s656_s3] sm:$0xff] %v508_v61 }
 0x10f   :  { %515 = vsyncpa [#allocation3], 1 }
 0x110   :  { %516 = vsyncpa [#allocation5], 1 }

// kernel: generator_forward.5
= control target key start
LH: loop header
LB: loop body
LE: loop exit
PB: predicated region body
PF: predicated region fallthrough
CT: control target
= control target key end

     0   :  { %10 = vsyncpa [#allocation3], 0  ;;  %s2136_s0 = inlined_call_operand.vmem [shape: bf16[4,32,256], index: 0, kind: input, shape index: {}]   ;;  %s2137_s1 = inlined_call_operand.vmem [shape: bf16[4,256,32], index: 1, kind: input, shape index: {}]   ;;  %s2138_s2 = inlined_call_operand.hbm [shape: f32[1,32], index: 2, kind: input, shape index: {}]   ;;  %s2139_s3 = inlined_call_operand.hbm [shape: f32[1,32], index: 3, kind: input, shape index: {}]   ;;  %s2140_s4 = inlined_call_operand.hbm [shape: f32[1,32], index: 4, kind: input, shape index: {}]   ;;  %s2141_s5 = inlined_call_operand.vmem [shape: bf16[128,32], index: 5, kind: output, shape index: {}]  }
   0x1   :  { %11 = vsyncpa [#allocation5], 0  ;;  %s1642_s18 = smov [#allocation4]   ;;  %s1643_s20 = smov [#allocation2]  }
   0x2   :  { %s32_s19 = sshll.u32 %s1642_s18, 4  ;;  %s22_s21 = sshll.u32 %s1643_s20, 4  ;;  %s33_s19 = int_to_ptr.vmem [resolvable:$true] %s32_s19  ;;  %s23_s21 = int_to_ptr.vmem [resolvable:$true] %s22_s21 }
   0x3   :  { %s1586_s22 = scalar_lea.vmem %s33_s19, 16  ;;  %s1590_s23 = scalar_lea.vmem %s33_s19, 32 }
   0x4   :  { %p1587_p0 = scmp.ne.s32.totalorder %s33_s19, %s1586_s22  ;;  %p1591_p1 = scmp.lt.s32.totalorder %s33_s19, %s33_s19 }
   0x5   :  { %p1592_p2 = scmp.lt.s32.totalorder %s1590_s23, %s1586_s22 }
   0x7   :  { %p1593_p3 = por %p1592_p2, %p1591_p1 }
   0x9   :  { %p1594_p4 = pnand %p1593_p3, %p1587_p0 }
   0xb   :  { %1597 = shalt.err (!%p1594_p4)
}
   0xc   :  { %35 = dma.hbm_to_vmem [thread:$0]  %s2139_s3, 16, %s33_s19, [#allocation5]  }
   0xd   :  { %s1606_s26 = scalar_lea.vmem %s23_s21, 16  ;;  %s1610_s27 = scalar_lea.vmem %s23_s21, 32 }
   0xe   :  { %p1607_p5 = scmp.ne.s32.totalorder %s23_s21, %s1606_s26  ;;  %p1611_p6 = scmp.lt.s32.totalorder %s23_s21, %s23_s21 }
   0xf   :  { %p1612_p7 = scmp.lt.s32.totalorder %s1610_s27, %s1606_s26 }
  0x11   :  { %p1613_p8 = por %p1612_p7, %p1611_p6 }
  0x13   :  { %p1614_p9 = pnand %p1613_p8, %p1607_p5 }
  0x15   :  { %1617 = shalt.err (!%p1614_p9)
}
  0x16   :  { %25 = dma.hbm_to_vmem [thread:$0]  %s2138_s2, 16, %s23_s21, [#allocation3]  }
  0x17   :  { %s1644_s30 = smov [#allocation6]  }
  0x18   :  { %s42_s6 = sshll.u32 %s1644_s30, 4  ;;  %s43_s6 = int_to_ptr.vmem [resolvable:$true] %s42_s6 }
  0x19   :  { %s1626_s7 = scalar_lea.vmem %s43_s6, 16  ;;  %s1630_s8 = scalar_lea.vmem %s43_s6, 32 }
  0x1a   :  { %p1627_p10 = scmp.ne.s32.totalorder %s43_s6, %s1626_s7  ;;  %p1631_p11 = scmp.lt.s32.totalorder %s43_s6, %s43_s6 }
  0x1b   :  { %p1632_p12 = scmp.lt.s32.totalorder %s1630_s8, %s1626_s7 }
  0x1d   :  { %p1633_p13 = por %p1632_p12, %p1631_p11 }
  0x1f   :  { %p1634_p0 = pnand %p1633_p13, %p1627_p10 }
  0x21   :  { %1637 = shalt.err (!%p1634_p0)
}
  0x22   :  { %45 = dma.hbm_to_vmem [thread:$0]  %s2140_s4, 16, %s43_s6, [#allocation5]  }
  0x23   :  { %1638 = dma.done.wait [#allocation3], 16  }
  0x24   :  { %1639 = vsyncadd [#allocation3], 4294967280 }
  0x25   :  { %1640 = dma.done.wait [#allocation5], 32  }
  0x26   :  { %1641 = vsyncadd [#allocation5], 4294967264  ;;  %v1488_v0 = vld [vmem:[%s2137_s1 + $0x78] sm:$0xff]   ;;  %v1492_v4 = vld [vmem:[%s2137_s1 + $0x70] sm:$0xff]   ;;  %vm889_vm0 = vcmask 261120   ;;  %vm1128_vm1 = vcmask 257024  }
  0x27   :  { %v1489_v1 = vld [vmem:[%s2137_s1 + $0x38] sm:$0xff]   ;;  %1373 = vmatprep.subr.bf16.mxu0 %v1488_v0  ;;  %v1493_v5 = vld [vmem:[%s2137_s1 + $0x30] sm:$0xff]   ;;  %v1496_v8 = vld [vmem:[%s2137_s1 + $0x68] sm:$0xff]  }
  0x28   :  { %v1490_v2 = vld [vmem:[%s2137_s1 + $0xf8] sm:$0xff]   ;;  %1374 = vmatpush3.bf16.msra.mxu0 %v1489_v1  ;;  %v1494_v6 = vld [vmem:[%s2137_s1 + $0xf0] sm:$0xff]   ;;  %v1497_v9 = vld [vmem:[%s2137_s1 + $0x28] sm:$0xff]  }
  0x29   :  { %v1491_v3 = vld [vmem:[%s2137_s1 + $0xb8] sm:$0xff]   ;;  %1401 = vmatprep.subr.bf16.mxu1 %v1490_v2  ;;  %1375 = vmatprep.subr.bf16.mxu0 %v1492_v4  ;;  %v1495_v7 = vld [vmem:[%s2137_s1 + $0xb0] sm:$0xff]   ;;  %v1498_v10 = vld [vmem:[%s2137_s1 + $0xe8] sm:$0xff]  }
  0x2a   :  { %1402 = vmatpush3.bf16.msra.mxu1 %v1491_v3  ;;  %v1499_v11 = vld [vmem:[%s2137_s1 + $0xa8] sm:$0xff]   ;;  %v1500_v12 = vld [vmem:[%s2137_s1 + $0x60] sm:$0xff]   ;;  %v1504_v16 = vld [vmem:[%s2137_s1 + $0x58] sm:$0xff]  }
  0x2b   :  { %1403 = vmatprep.subr.bf16.mxu1 %v1494_v6  ;;  %v1501_v13 = vld [vmem:[%s2137_s1 + $0x20] sm:$0xff]   ;;  %v1505_v17 = vld [vmem:[%s2137_s1 + $0x18] sm:$0xff]   ;;  %v1508_v20 = vld [vmem:[%s2137_s1 + $0x50] sm:$0xff]  }
  0x2c   :  { %1376 = vmatpush3.bf16.msra.mxu0 %v1493_v5  ;;  %v1502_v14 = vld [vmem:[%s2137_s1 + $0xe0] sm:$0xff]   ;;  %v1506_v18 = vld [vmem:[%s2137_s1 + $0xd8] sm:$0xff]   ;;  %v1509_v21 = vld [vmem:[%s2137_s1 + $0x10] sm:$0xff]  }
  0x2d   :  { %1377 = vmatprep.subr.bf16.mxu0 %v1496_v8  ;;  %v1503_v15 = vld [vmem:[%s2137_s1 + $0xa0] sm:$0xff]   ;;  %v1507_v19 = vld [vmem:[%s2137_s1 + $0x98] sm:$0xff]   ;;  %v1510_v22 = vld [vmem:[%s2137_s1 + $0xd0] sm:$0xff]  }
  0x2e   :  { %1404 = vmatpush3.bf16.msra.mxu1 %v1495_v7  ;;  %v1511_v23 = vld [vmem:[%s2137_s1 + $0x90] sm:$0xff]   ;;  %v1512_v24 = vld [vmem:[%s2137_s1 + $0x48] sm:$0xff]   ;;  %v1516_v28 = vld [vmem:[%s2137_s1 + $0x40] sm:$0xff]  }
  0x2f   :  { %1405 = vmatprep.subr.bf16.mxu1 %v1498_v10  ;;  %v1513_v25 = vld [vmem:[%s2137_s1 + $0x8] sm:$0xff]   ;;  %v1517_v29 = vld [vmem:[%s2137_s1] sm:$0xff]   ;;  %v1523_v34 = vld [vmem:[%s2137_s1 + $0x178] sm:$0xff]  }
  0x30   :  { %1378 = vmatpush3.bf16.msra.mxu0 %v1497_v9  ;;  %v1514_v26 = vld [vmem:[%s2137_s1 + $0xc8] sm:$0xff]   ;;  %v1518_v30 = vld [vmem:[%s2137_s1 + $0xc0] sm:$0xff]   ;;  %v1524_v35 = vld [vmem:[%s2137_s1 + $0x138] sm:$0xff]  }
  0x31   :  { %1379 = vmatprep.subr.bf16.mxu0 %v1500_v12  ;;  %v1515_v27 = vld [vmem:[%s2137_s1 + $0x88] sm:$0xff]   ;;  %v1522_v33 = vld [vmem:[%s2137_s1 + $0x80] sm:$0xff]   ;;  %v1528_v38 = vld [vmem:[%s2137_s1 + $0x1f8] sm:$0xff]  }
  0x32   :  { %1406 = vmatpush3.bf16.msra.mxu1 %v1499_v11  ;;  %v1519_v31 = vld [vmem:[%s2136_s0] ss:$8 sps:$4 sm:$0xff]   ;;  %v1521_v32 = vld [vmem:[%s2136_s0 + $0x4] ss:$8 sps:$4 sm:$0xff]   ;;  %v1529_v39 = vld [vmem:[%s2137_s1 + $0x1b8] sm:$0xff]  }
  0x33   :  { %1407 = vmatprep.subr.bf16.mxu1 %v1502_v14  ;;  %240 = vmatprep.mubr.bf16.mxu0 %v1521_v32  ;;  %v1525_v36 = vld [vmem:[%s2136_s0 + $0x20] ss:$8 sps:$4 sm:$0xff]   ;;  %v1527_v37 = vld [vmem:[%s2136_s0 + $0x24] ss:$8 sps:$4 sm:$0xff]   ;;  %v1530_v40 = vld [vmem:[%s2137_s1 + $0x170] sm:$0xff]  }
  0x34   :  { %1380 = vmatpush3.bf16.msra.mxu0 %v1501_v13  ;;  %443 = vmatprep.mubr.bf16.mxu1 %v1527_v37  ;;  %v1531_v41 = vld [vmem:[%s2137_s1 + $0x130] sm:$0xff]   ;;  %v1537_v46 = vld [vmem:[%s2137_s1 + $0x168] sm:$0xff]   ;;  %v1541_v50 = vld [vmem:[%s2137_s1 + $0x160] sm:$0xff]  }
  0x35   :  { %1381 = vmatprep.subr.bf16.mxu0 %v1504_v16  ;;  %v1532_v42 = vld [vmem:[%s2137_s1 + $0x1f0] sm:$0xff]   ;;  %v1538_v47 = vld [vmem:[%s2137_s1 + $0x128] sm:$0xff]   ;;  %v1542_v51 = vld [vmem:[%s2137_s1 + $0x120] sm:$0xff]  }
  0x36   :  { %1408 = vmatpush3.bf16.msra.mxu1 %v1503_v15  ;;  %v1533_v43 = vld [vmem:[%s2136_s0 + $0x14] ss:$8 sps:$4 sm:$0xff]   ;;  %v1536_v45 = vld [vmem:[%s2136_s0 + $0x10] ss:$8 sps:$4 sm:$0xff]   ;;  %v1539_v48 = vld [vmem:[%s2137_s1 + $0x1e8] sm:$0xff]  }
  0x37   :  { %1409 = vmatprep.subr.bf16.mxu1 %v1506_v18  ;;  %v1535_v44 = vld [vmem:[%s2137_s1 + $0x1b0] sm:$0xff]   ;;  %v1540_v49 = vld [vmem:[%s2137_s1 + $0x1a8] sm:$0xff]   ;;  %v1543_v52 = vld [vmem:[%s2137_s1 + $0x1e0] sm:$0xff]  }
  0x38   :  { %1382 = vmatpush3.bf16.msra.mxu0 %v1505_v17  ;;  %v1544_v53 = vld [vmem:[%s2136_s0 + $0x34] ss:$8 sps:$4 sm:$0xff]   ;;  %v1546_v54 = vld [vmem:[%s2137_s1 + $0x1a0] sm:$0xff]   ;;  %v1547_v55 = vld [vmem:[%s2136_s0 + $0x30] ss:$8 sps:$4 sm:$0xff]  }
  0x39   :  { %1383 = vmatprep.subr.bf16.mxu0 %v1508_v20  ;;  %v1548_v56 = vld [vmem:[%s2137_s1 + $0x158] sm:$0xff]   ;;  %v1552_v60 = vld [vmem:[%s2137_s1 + $0x150] sm:$0xff]   ;;  %v1556_v0 = vld [vmem:[%s2137_s1 + $0x148] sm:$0xff]  }
  0x3a   :  { %1410 = vmatpush3.bf16.msra.mxu1 %v1507_v19  ;;  %v1549_v57 = vld [vmem:[%s2137_s1 + $0x118] sm:$0xff]   ;;  %v1553_v61 = vld [vmem:[%s2137_s1 + $0x110] sm:$0xff]   ;;  %v1557_v1 = vld [vmem:[%s2137_s1 + $0x108] sm:$0xff]  }
  0x3b   :  { %1411 = vmatprep.subr.bf16.mxu1 %v1510_v22  ;;  %v1550_v58 = vld [vmem:[%s2137_s1 + $0x1d8] sm:$0xff]   ;;  %v1554_v62 = vld [vmem:[%s2137_s1 + $0x1d0] sm:$0xff]   ;;  %v1558_v2 = vld [vmem:[%s2137_s1 + $0x1c8] sm:$0xff]  }
  0x3c   :  { %1384 = vmatpush3.bf16.msra.mxu0 %v1509_v21  ;;  %v1551_v59 = vld [vmem:[%s2137_s1 + $0x198] sm:$0xff]   ;;  %v1555_v63 = vld [vmem:[%s2137_s1 + $0x190] sm:$0xff]   ;;  %v1559_v3 = vld [vmem:[%s2137_s1 + $0x188] sm:$0xff]  }
  0x3d   :  { %1385 = vmatprep.subr.bf16.mxu0 %v1512_v24  ;;  %v1560_v4 = vld [vmem:[%s2137_s1 + $0x140] sm:$0xff]   ;;  %v1570_v12 = vld [vmem:[%s2136_s0 + $0x54] ss:$8 sps:$4 sm:$0xff]   ;;  %v1572_v14 = vld [vmem:[%s2136_s0 + $0x50] ss:$8 sps:$4 sm:$0xff]  }
  0x3e   :  { %1412 = vmatpush3.bf16.msra.mxu1 %v1511_v23  ;;  %v1561_v5 = vld [vmem:[%s2137_s1 + $0x100] sm:$0xff]   ;;  %v1573_v13 = vld [vmem:[%s2136_s0 + $0x74] ss:$8 sps:$4 sm:$0xff]   ;;  %v1575_v15 = vld [vmem:[%s2136_s0 + $0x70] ss:$8 sps:$4 sm:$0xff]  }
  0x3f   :  { %1413 = vmatprep.subr.bf16.mxu1 %v1514_v26  ;;  %v1562_v6 = vld [vmem:[%s2137_s1 + $0x1c0] sm:$0xff]  }
  0x40   :  { %1386 = vmatpush3.bf16.msra.mxu0 %v1513_v25  ;;  %v1563_v7 = vld [vmem:[%s2136_s0 + $0x40] ss:$8 sps:$4 sm:$0xff]   ;;  %v1565_v8 = vld [vmem:[%s2136_s0 + $0x44] ss:$8 sps:$4 sm:$0xff]  }
  0x41   :  { %1387 = vmatprep.subr.bf16.mxu0 %v1516_v28  ;;  %v1566_v9 = vld [vmem:[%s2137_s1 + $0x180] sm:$0xff]  }
  0x42   :  { %1414 = vmatpush3.bf16.msra.mxu1 %v1515_v27  ;;  %v1567_v10 = vld [vmem:[%s2136_s0 + $0x60] ss:$8 sps:$4 sm:$0xff]   ;;  %v1569_v11 = vld [vmem:[%s2136_s0 + $0x64] ss:$8 sps:$4 sm:$0xff]  }
  0x43   :  { %1415 = vmatprep.subr.bf16.mxu1 %v1518_v30  ;;  %v1924_v30 = vld [vmem:[#allocation2] ss:$0 sm:$0xff] }
  0x44   :  { %1388 = vmatpush3.bf16.msra.mxu0 %v1517_v29 }
  0x45   :  { %1429 = vmatprep.subr.bf16.mxu0 %v1523_v34 }
  0x46   :  { %1416 = vmatpush3.bf16.msra.mxu1 %v1522_v33 }
  0x47   :  { %241 = vmatmul.mubr.bf16.vlgmr.msra.gmra.mxu0 %v1519_v31  ;;  %1457 = vmatprep.subr.bf16.mxu1 %v1528_v38 }
  0x48   :  { %1430 = vmatpush3.bf16.msra.mxu0 %v1524_v35  ;;  %248 = vmatprep.mubr.bf16.mxu0 %v1533_v43 }
  0x49   :  { %444 = vmatmul.mubr.bf16.vlgmr.msra.gmra.mxu1 %v1525_v36  ;;  %1431 = vmatprep.subr.bf16.mxu0 %v1530_v40 }
  0x4a   :  { %1458 = vmatpush3.bf16.msra.mxu1 %v1529_v39  ;;  %451 = vmatprep.mubr.bf16.mxu1 %v1544_v53 }
  0x4b   :  { %1459 = vmatprep.subr.bf16.mxu1 %v1532_v42 }
  0x4c   :  { %1432 = vmatpush3.bf16.msra.mxu0 %v1531_v41 }
  0x4d   :  { %1433 = vmatprep.subr.bf16.mxu0 %v1537_v46 }
  0x4e   :  { %1460 = vmatpush3.bf16.msra.mxu1 %v1535_v44 }
  0x4f   :  { %249 = vmatmul.mubr.bf16.gmra.mxu0 %v1536_v45  ;;  %1461 = vmatprep.subr.bf16.mxu1 %v1539_v48 }
  0x50   :  { %1434 = vmatpush3.bf16.msra.mxu0 %v1538_v47  ;;  %646 = vmatprep.mubr.bf16.mxu0 %v1565_v8 }
  0x51   :  { %1435 = vmatprep.subr.bf16.mxu0 %v1541_v50  ;;  %452 = vmatmul.mubr.bf16.gmra.mxu1 %v1547_v55 }
  0x52   :  { %1462 = vmatpush3.bf16.msra.mxu1 %v1540_v49  ;;  %849 = vmatprep.mubr.bf16.mxu1 %v1569_v11 }
  0x53   :  { %1463 = vmatprep.subr.bf16.mxu1 %v1543_v52 }
  0x54   :  { %1436 = vmatpush3.bf16.msra.mxu0 %v1542_v51 }
  0x55   :  { %1437 = vmatprep.subr.bf16.mxu0 %v1548_v56 }
  0x56   :  { %1464 = vmatpush3.bf16.msra.mxu1 %v1546_v54 }
  0x57   :  { %1465 = vmatprep.subr.bf16.mxu1 %v1550_v58 }
  0x58   :  { %1438 = vmatpush3.bf16.msra.mxu0 %v1549_v57 }
  0x59   :  { %1439 = vmatprep.subr.bf16.mxu0 %v1552_v60 }
  0x5a   :  { %1466 = vmatpush3.bf16.msra.mxu1 %v1551_v59 }
  0x5b   :  { %1467 = vmatprep.subr.bf16.mxu1 %v1554_v62 }
  0x5c   :  { %1440 = vmatpush3.bf16.msra.mxu0 %v1553_v61 }
  0x5d   :  { %1441 = vmatprep.subr.bf16.mxu0 %v1556_v0 }
  0x5e   :  { %1468 = vmatpush3.bf16.msra.mxu1 %v1555_v63 }
  0x5f   :  { %1469 = vmatprep.subr.bf16.mxu1 %v1558_v2 }
  0x60   :  { %1442 = vmatpush3.bf16.msra.mxu0 %v1557_v1 }
  0x61   :  { %1443 = vmatprep.subr.bf16.mxu0 %v1560_v4 }
  0x62   :  { %1470 = vmatpush3.bf16.msra.mxu1 %v1559_v3 }
  0x63   :  { %1471 = vmatprep.subr.bf16.mxu1 %v1562_v6 }
  0x64   :  { %1444 = vmatpush3.bf16.msra.mxu0 %v1561_v5 }
  0x66   :  { %1472 = vmatpush3.bf16.msra.mxu1 %v1566_v9 }
  0x67   :  { %647 = vmatmul.mubr.bf16.vlgmr.msra.gmra.mxu0 %v1563_v7 }
  0x68   :  { %654 = vmatprep.mubr.bf16.mxu0 %v1570_v12 }
  0x69   :  { %850 = vmatmul.mubr.bf16.vlgmr.msra.gmra.mxu1 %v1567_v10 }
  0x6a   :  { %857 = vmatprep.mubr.bf16.mxu1 %v1573_v13 }
  0x6f   :  { %655 = vmatmul.mubr.bf16.gmra.mxu0 %v1572_v14 }
  0x71   :  { %858 = vmatmul.mubr.bf16.gmra.mxu1 %v1575_v15 }
 0x107   :  { %v1389_v16 = vpop.f32.mrf.mxu0 }
 0x109   :  { %v1390_v17 = vpop.f32.mrf.mxu0  ;;  %v1417_v20 = vpop.f32.mrf.mxu1 }
 0x10a   :  { %v1391_v28 = vadd.f32 %v1390_v17, %v1389_v16 }
 0x10b   :  { %v1392_v18 = vpop.f32.mrf.mxu0  ;;  %v1418_v23 = vpop.f32.mrf.mxu1 }
 0x10c   :  { %v1930_v35 = vadd.f32 %v1391_v28, %v1924_v30  ;;  %v1419_v41 = vadd.f32 %v1418_v23, %v1417_v20 }
 0x10d   :  { %v1393_v19 = vpop.f32.mrf.mxu0  ;;  %v1420_v25 = vpop.f32.mrf.mxu1 }
 0x10e   :  { %v1394_v26 = vadd.f32 %v1393_v19, %v1392_v18  ;;  %v890_v40 = vsel %vm889_vm0, %v1930_v35, 0.0  ;;  %v1947_v47 = vadd.f32 %v1419_v41, %v1924_v30 }
 0x10f   :  { %v1395_v21 = vpop.f32.mrf.mxu0  ;;  %v1421_v31 = vpop.f32.mrf.mxu1 }
 0x110   :  { %v1927_v32 = vadd.f32 %v1394_v26, %v1924_v30  ;;  %v1422_v48 = vadd.f32 %v1421_v31, %v1420_v25  ;;  %v897_v52 = vsel %vm889_vm0, %v1947_v47, 0.0 }
 0x111   :  { %v1396_v22 = vpop.f32.mrf.mxu0  ;;  %v1423_v34 = vpop.f32.mrf.mxu1 }
 0x112   :  { %v1397_v29 = vadd.f32 %v1396_v22, %v1395_v21  ;;  %v891_v37 = vsel %vm889_vm0, %v1927_v32, 0.0  ;;  %v1952_v53 = vadd.f32 %v1422_v48, %v1924_v30 }
 0x113   :  { %v1398_v24 = vpop.f32.mrf.mxu0  ;;  %v1424_v39 = vpop.f32.mrf.mxu1  ;;  %v892_v43 = vadd.f32 %v891_v37, %v890_v40 }
 0x114   :  { %v1933_v36 = vadd.f32 %v1397_v29, %v1924_v30  ;;  %v1425_v50 = vadd.f32 %v1424_v39, %v1423_v34  ;;  %v899_v59 = vsel %vm889_vm0, %v1952_v53, 0.0 }
 0x115   :  { %v1399_v27 = vpop.f32.mrf.mxu0  ;;  %v1426_v46 = vpop.f32.mrf.mxu1 }
 0x116   :  { %v1400_v33 = vadd.f32 %v1399_v27, %v1398_v24  ;;  %v893_v42 = vsel %vm889_vm0, %v1933_v36, 0.0  ;;  %v1955_v56 = vadd.f32 %v1425_v50, %v1924_v30 }
 0x117   :  { %v894_v45 = vadd.f32 %v893_v42, %v892_v43  ;;  %v1427_v51 = vpop.f32.mrf.mxu1 }
 0x118   :  { %v1938_v38 = vadd.f32 %v1400_v33, %v1924_v30  ;;  %v1428_v57 = vadd.f32 %v1427_v51, %v1426_v46  ;;  %v901_v0 = vsel %vm889_vm0, %v1955_v56, 0.0 }
 0x11a   :  { %v895_v44 = vsel %vm889_vm0, %v1938_v38, 0.0  ;;  %v1962_v1 = vadd.f32 %v1428_v57, %v1924_v30 }
 0x11b   :  { %v896_v49 = vadd.f32 %v895_v44, %v894_v45 }
 0x11c   :  { %v903_v9 = vsel %vm889_vm0, %v1962_v1, 0.0 }
 0x11d   :  { %v898_v54 = vadd.f32 %v897_v52, %v896_v49 }
 0x11f   :  { %v900_v62 = vadd.f32 %v899_v59, %v898_v54 }
 0x121   :  { %v902_v7 = vadd.f32 %v901_v0, %v900_v62 }
 0x123   :  { %v904_v16 = vadd.f32 %v903_v9, %v902_v7 }
 0x127   :  { %v1445_v55 = vpop.f32.mrf.mxu0 }
 0x129   :  { %v1446_v58 = vpop.f32.mrf.mxu0  ;;  %v1473_v61 = vpop.f32.mrf.mxu1 }
 0x12a   :  { %v1447_v60 = vadd.f32 %v1446_v58, %v1445_v55 }
 0x12b   :  { %v1448_v63 = vpop.f32.mrf.mxu0  ;;  %v1474_v2 = vpop.f32.mrf.mxu1 }
 0x12c   :  { %v1965_v4 = vadd.f32 %v1447_v60, %v1924_v30  ;;  %v1475_v18 = vadd.f32 %v1474_v2, %v1473_v61 }
 0x12d   :  { %v1449_v3 = vpop.f32.mrf.mxu0  ;;  %v1476_v6 = vpop.f32.mrf.mxu1 }
 0x12e   :  { %v1450_v5 = vadd.f32 %v1449_v3, %v1448_v63  ;;  %v905_v13 = vsel %vm889_vm0, %v1965_v4, 0.0  ;;  %v1982_v29 = vadd.f32 %v1475_v18, %v1924_v30 }
 0x12f   :  { %v1451_v8 = vpop.f32.mrf.mxu0  ;;  %v1477_v11 = vpop.f32.mrf.mxu1  ;;  %v906_v22 = vadd.f32 %v905_v13, %v904_v16 }
 0x130   :  { %v1970_v10 = vadd.f32 %v1450_v5, %v1924_v30  ;;  %v1478_v24 = vadd.f32 %v1477_v11, %v1476_v6  ;;  %v913_v43 = vsel %vm889_vm0, %v1982_v29, 0.0 }
 0x131   :  { %v1452_v12 = vpop.f32.mrf.mxu0  ;;  %v1479_v15 = vpop.f32.mrf.mxu1 }
 0x132   :  { %v1453_v14 = vadd.f32 %v1452_v12, %v1451_v8  ;;  %v907_v19 = vsel %vm889_vm0, %v1970_v10, 0.0  ;;  %v886_v39 = vadd.f32 %v1478_v24, %v1924_v30 }
 0x133   :  { %v1454_v17 = vpop.f32.mrf.mxu0  ;;  %v1480_v21 = vpop.f32.mrf.mxu1  ;;  %v908_v28 = vadd.f32 %v907_v19, %v906_v22 }
 0x134   :  { %v1977_v20 = vadd.f32 %v1453_v14, %v1924_v30  ;;  %v1481_v31 = vadd.f32 %v1480_v21, %v1479_v15  ;;  %v915_v46 = vsel %vm889_vm0, %v886_v39, 0.0 }
 0x135   :  { %v1455_v23 = vpop.f32.mrf.mxu0  ;;  %v1482_v27 = vpop.f32.mrf.mxu1 }
 0x136   :  { %v909_v25 = vsel %vm889_vm0, %v1977_v20, 0.0  ;;  %v1456_v26 = vadd.f32 %v1455_v23, %v1454_v17  ;;  %v887_v44 = vadd.f32 %v1481_v31, %v1924_v30 }
 0x137   :  { %v1483_v34 = vpop.f32.mrf.mxu1  ;;  %v910_v37 = vadd.f32 %v909_v25, %v908_v28 }
 0x138   :  { %v884_v33 = vadd.f32 %v1456_v26, %v1924_v30  ;;  %v1484_v41 = vadd.f32 %v1483_v34, %v1482_v27  ;;  %v917_v50 = vsel %vm889_vm0, %v887_v44, 0.0 }
 0x13a   :  { %v911_v40 = vsel %vm889_vm0, %v884_v33, 0.0  ;;  %v888_v48 = vadd.f32 %v1484_v41, %v1924_v30 }
 0x13b   :  { %v912_v42 = vadd.f32 %v911_v40, %v910_v37 }
 0x13c   :  { %v919_v52 = vsel %vm889_vm0, %v888_v48, 0.0 }
 0x13d   :  { %v914_v45 = vadd.f32 %v913_v43, %v912_v42 }
 0x13f   :  { %v916_v49 = vadd.f32 %v915_v46, %v914_v45 }
 0x141   :  { %v918_v51 = vadd.f32 %v917_v50, %v916_v49 }
 0x143   :  { %v920_v54 = vadd.f32 %v919_v52, %v918_v51 }
 0x145   :  { %v921_v55 = vrot.slane %v920_v54, 4 }
 0x147   :  { %v922_v57 = vadd.f32 %v921_v55, %v920_v54 }
 0x149   :  { %v923_v58 = vrot.slane %v922_v57, 2 }
 0x14b   :  { %v924_v59 = vadd.f32 %v923_v58, %v922_v57 }
 0x14d   :  { %v925_v60 = vrot.slane %v924_v59, 1 }
 0x14f   :  { %v926_v61 = vadd.f32 %v925_v60, %v924_v59 }
 0x151   :  { %v928_v62 = vmul.f32 0.0078125, %v926_v61 }
 0x153   :  { %v1995_v63 = vsub.f32 %v1930_v35, %v928_v62  ;;  %v1998_v0 = vsub.f32 %v1927_v32, %v928_v62  ;;  %v2001_v30 = vsub.f32 %v1933_v36, %v928_v62  ;;  %v2004_v2 = vsub.f32 %v1938_v38, %v928_v62 }
 0x154   :  { %v2011_v6 = vsub.f32 %v1947_v47, %v928_v62  ;;  %v2016_v32 = vsub.f32 %v1952_v53, %v928_v62  ;;  %v2023_v9 = vsub.f32 %v1955_v56, %v928_v62  ;;  %v2029_v53 = vsub.f32 %v1962_v1, %v928_v62 }
 0x155   :  { %v945_v3 = vmul.f32 %v1995_v63, %v1995_v63  ;;  %v946_v5 = vmul.f32 %v1998_v0, %v1998_v0  ;;  %v947_v35 = vmul.f32 %v2001_v30, %v2001_v30  ;;  %v948_v36 = vmul.f32 %v2004_v2, %v2004_v2 }
 0x156   :  { %v949_v47 = vmul.f32 %v2011_v6, %v2011_v6  ;;  %v950_v13 = vmul.f32 %v2016_v32, %v2016_v32  ;;  %v2035_v16 = vsub.f32 %v1965_v4, %v928_v62  ;;  %v951_v56 = vmul.f32 %v2023_v9, %v2023_v9 }
 0x157   :  { %v961_v38 = vsel %vm889_vm0, %v945_v3, 0.0  ;;  %v962_v7 = vsel %vm889_vm0, %v946_v5, 0.0  ;;  %v964_v11 = vsel %vm889_vm0, %v947_v35, 0.0  ;;  %v966_v14 = vsel %vm889_vm0, %v948_v36, 0.0 }
 0x158   :  { %v963_v8 = vadd.f32 %v962_v7, %v961_v38  ;;  %v968_v17 = vsel %vm889_vm0, %v949_v47, 0.0  ;;  %v2041_v19 = vsub.f32 %v1970_v10, %v928_v62  ;;  %v952_v1 = vmul.f32 %v2029_v53, %v2029_v53 }
 0x159   :  { %v970_v21 = vsel %vm889_vm0, %v950_v13, 0.0  ;;  %v939_v23 = vsub.f32 %v1977_v20, %v928_v62  ;;  %v953_v4 = vmul.f32 %v2035_v16, %v2035_v16  ;;  %v972_v24 = vsel %vm889_vm0, %v951_v56, 0.0 }
 0x15a   :  { %v965_v12 = vadd.f32 %v964_v11, %v963_v8  ;;  %v940_v26 = vsub.f32 %v884_v33, %v928_v62  ;;  %v954_v27 = vmul.f32 %v2041_v19, %v2041_v19  ;;  %v974_v10 = vsel %vm889_vm0, %v952_v1, 0.0 }
 0x15b   :  { %v941_v31 = vsub.f32 %v1982_v29, %v928_v62  ;;  %v955_v34 = vmul.f32 %v939_v23, %v939_v23  ;;  %v976_v37 = vsel %vm889_vm0, %v953_v4, 0.0  ;;  %v942_v20 = vsub.f32 %v886_v39, %v928_v62 }
 0x15c   :  { %v967_v15 = vadd.f32 %v966_v14, %v965_v12  ;;  %v956_v41 = vmul.f32 %v940_v26, %v940_v26  ;;  %v978_v42 = vsel %vm889_vm0, %v954_v27, 0.0  ;;  %v943_v45 = vsub.f32 %v887_v44, %v928_v62  ;;  %v999_v12 = vld [vmem:[#allocation4] sm:$0x1]  ;;  %v1340_v27 = vld [vmem:[#allocation6] ss:$0 sm:$0xff] }
 0x15d   :  { %v957_v46 = vmul.f32 %v941_v31, %v941_v31  ;;  %v980_v33 = vsel %vm889_vm0, %v955_v34, 0.0  ;;  %v944_v50 = vsub.f32 %v888_v48, %v928_v62  ;;  %v958_v51 = vmul.f32 %v942_v20, %v942_v20 }
 0x15e   :  { %v969_v18 = vadd.f32 %v968_v17, %v967_v15  ;;  %v982_v52 = vsel %vm889_vm0, %v956_v41, 0.0  ;;  %v959_v29 = vmul.f32 %v943_v45, %v943_v45  ;;  %v1004_v47 = vlaneseq }
 0x15f   :  { %v984_v55 = vsel %vm889_vm0, %v957_v46, 0.0  ;;  %v960_v58 = vmul.f32 %v944_v50, %v944_v50  ;;  %v986_v39 = vsel %vm889_vm0, %v958_v51, 0.0 }
 0x160   :  { %v971_v22 = vadd.f32 %v970_v21, %v969_v18  ;;  %v988_v60 = vsel %vm889_vm0, %v959_v29, 0.0  ;;  %v1005_v11 = vshrl.u32 %v1004_v47, 7 }
 0x161   :  { %v990_v61 = vsel %vm889_vm0, %v960_v58, 0.0 }
 0x162   :  { %v973_v25 = vadd.f32 %v972_v24, %v971_v22  ;;  %v1006_v13 = vsub.s32 0, %v1005_v11 }
 0x164   :  { %v975_v28 = vadd.f32 %v974_v10, %v973_v25 }
 0x166   :  { %v977_v40 = vadd.f32 %v976_v37, %v975_v28 }
 0x168   :  { %v979_v43 = vadd.f32 %v978_v42, %v977_v40 }
 0x16a   :  { %v981_v49 = vadd.f32 %v980_v33, %v979_v43 }
 0x16c   :  { %v983_v54 = vadd.f32 %v982_v52, %v981_v49 }
 0x16e   :  { %v985_v57 = vadd.f32 %v984_v55, %v983_v54 }
 0x170   :  { %v987_v59 = vadd.f32 %v986_v39, %v985_v57 }
 0x172   :  { %v989_v44 = vadd.f32 %v988_v60, %v987_v59 }
 0x174   :  { %v991_v3 = vadd.f32 %v990_v61, %v989_v44 }
 0x176   :  { %v992_v5 = vrot.slane %v991_v3, 4 }
 0x178   :  { %v993_v48 = vadd.f32 %v992_v5, %v991_v3 }
 0x17a   :  { %v994_v62 = vrot.slane %v993_v48, 2 }
 0x17c   :  { %v995_v35 = vadd.f32 %v994_v62, %v993_v48 }
 0x17e   :  { %v996_v36 = vrot.slane %v995_v35, 1 }
 0x180   :  { %v997_v38 = vadd.f32 %v996_v36, %v995_v35 }
 0x182   :  { %v998_v7 = vmul.f32 0.0078125, %v997_v38 }
 0x184   :  { %v1000_v8 = vadd.f32 1e-05, %v998_v7 }
 0x186   :  { %1576 = vrsqrt.f32 %v1000_v8 }
 0x193   :  { %v1577_v14 = vpop.eup %1576 }
 0x194   :  { %v1002_v15 = vmul.f32 %v1577_v14, %v999_v12 }
 0x196   :  { %v1007_v56 = vrot.slane %v1002_v15, %v1006_v13 }
 0x198   :  { %v1009_v17 = vmul.f32 %v1007_v56, %v1995_v63  ;;  %v1010_v18 = vmul.f32 %v1007_v56, %v1998_v0  ;;  %v1011_v1 = vmul.f32 %v1007_v56, %v2001_v30  ;;  %v1012_v21 = vmul.f32 %v1007_v56, %v2004_v2 }
 0x199   :  { %v1013_v22 = vmul.f32 %v1007_v56, %v2011_v6  ;;  %v1014_v4 = vmul.f32 %v1007_v56, %v2016_v32  ;;  %v1015_v24 = vmul.f32 %v1007_v56, %v2023_v9  ;;  %v1016_v25 = vmul.f32 %v1007_v56, %v2029_v53 }
 0x19a   :  { %v1017_v10 = vmul.f32 %v1007_v56, %v2035_v16  ;;  %v1018_v28 = vmul.f32 %v1007_v56, %v2041_v19  ;;  %v1019_v63 = vmul.f32 %v1007_v56, %v939_v23  ;;  %v1020_v34 = vmul.f32 %v1007_v56, %v940_v26 }
 0x19b   :  { %v1021_v0 = vmul.f32 %v1007_v56, %v941_v31  ;;  %v1022_v37 = vmul.f32 %v1007_v56, %v942_v20  ;;  %v1023_v30 = vmul.f32 %v1007_v56, %v943_v45  ;;  %v1024_v40 = vmul.f32 %v1007_v56, %v944_v50 }
 0x19c   :  { %v1032_v2 = vadd.f32 %v1340_v27, %v1009_v17  ;;  %v1033_v6 = vadd.f32 %v1340_v27, %v1010_v18  ;;  %v1034_v41 = vadd.f32 %v1340_v27, %v1011_v1  ;;  %v1035_v32 = vadd.f32 %v1340_v27, %v1012_v21 }
 0x19d   :  { %v1036_v42 = vadd.f32 %v1340_v27, %v1013_v22  ;;  %v1037_v9 = vadd.f32 %v1340_v27, %v1014_v4  ;;  %v1038_v43 = vadd.f32 %v1340_v27, %v1015_v24  ;;  %v1039_v53 = vadd.f32 %v1340_v27, %v1016_v25 }
 0x19e   :  { %v1040_v46 = vadd.f32 %v1340_v27, %v1017_v10  ;;  %v1041_v33 = vadd.f32 %v1340_v27, %v1018_v28  ;;  %v1042_v16 = vadd.f32 %v1340_v27, %v1019_v63  ;;  %v1043_v49 = vadd.f32 %v1340_v27, %v1020_v34 }
 0x19f   :  { %v1044_v19 = vadd.f32 %v1340_v27, %v1021_v0  ;;  %v1045_v23 = vadd.f32 %v1340_v27, %v1022_v37  ;;  %v1046_v26 = vadd.f32 %v1340_v27, %v1023_v30  ;;  %v1047_v31 = vadd.f32 %v1340_v27, %v1024_v40 }
 0x1a0   :  { %v1048_v20 = vmax.f32 %v1032_v2, 0.0  ;;  %v1049_v45 = vmax.f32 %v1033_v6, 0.0  ;;  %v1050_v50 = vmax.f32 %v1034_v41, 0.0  ;;  %v1051_v51 = vmax.f32 %v1035_v32, 0.0 }
 0x1a1   :  { %v1052_v52 = vmax.f32 %v1036_v42, 0.0  ;;  %v1053_v54 = vmax.f32 %v1037_v9, 0.0  ;;  %v1054_v29 = vmax.f32 %v1038_v43, 0.0  ;;  %v1055_v55 = vmax.f32 %v1039_v53, 0.0 }
 0x1a2   :  { %v1056_v57 = vmax.f32 %v1040_v46, 0.0  ;;  %v1057_v58 = vmax.f32 %v1041_v33, 0.0  ;;  %v1058_v39 = vmax.f32 %v1042_v16, 0.0  ;;  %v1059_v59 = vmax.f32 %v1043_v49, 0.0 }
 0x1a3   :  { %v1060_v60 = vmax.f32 %v1044_v19, 0.0  ;;  %v1061_v44 = vmax.f32 %v1045_v23, 0.0  ;;  %v1062_v61 = vmax.f32 %v1046_v26, 0.0  ;;  %v1063_v3 = vmax.f32 %v1047_v31, 0.0 }
 0x1a4   :  { %v1357_v5 = vpack.c.bf16 %v1048_v20, %v1048_v20  ;;  %v1358_v48 = vpack.c.bf16 %v1049_v45, %v1049_v45  ;;  %v1359_v62 = vpack.c.bf16 %v1050_v50, %v1050_v50  ;;  %v1360_v35 = vpack.c.bf16 %v1051_v51, %v1051_v51 }
 0x1a5   :  { %v1361_v36 = vpack.c.bf16 %v1052_v52, %v1052_v52  ;;  %v1362_v38 = vpack.c.bf16 %v1053_v54, %v1053_v54  ;;  %v1363_v7 = vpack.c.bf16 %v1054_v29, %v1054_v29  ;;  %v1364_v8 = vpack.c.bf16 %v1055_v55, %v1055_v55 }
 0x1a6   :  { %v1365_v47 = vpack.c.bf16 %v1056_v57, %v1056_v57  ;;  %v1366_v11 = vpack.c.bf16 %v1057_v58, %v1057_v58  ;;  %v1367_v12 = vpack.c.bf16 %v1058_v39, %v1058_v39  ;;  %v1368_v13 = vpack.c.bf16 %v1059_v59, %v1059_v59  ;;  %1129 = vst.msk [vmem:[%s2141_s5] sm:$0xf] %vm1128_vm1, %v1357_v5 }
 0x1a7   :  { %1130 = vst.msk [vmem:[%s2141_s5 + $0x4] sm:$0xf] %vm1128_vm1, %v1358_v48  ;;  %1131 = vst.msk [vmem:[%s2141_s5 + $0x8] sm:$0xf] %vm1128_vm1, %v1359_v62  ;;  %v1369_v14 = vpack.c.bf16 %v1060_v60, %v1060_v60  ;;  %v1370_v15 = vpack.c.bf16 %v1061_v44, %v1061_v44  ;;  %v1371_v56 = vpack.c.bf16 %v1062_v61, %v1062_v61 }
 0x1a8   :  { %1132 = vst.msk [vmem:[%s2141_s5 + $0xc] sm:$0xf] %vm1128_vm1, %v1360_v35  ;;  %v1372_v17 = vpack.c.bf16 %v1063_v3, %v1063_v3  ;;  %1133 = vst.msk [vmem:[%s2141_s5 + $0x10] sm:$0xf] %vm1128_vm1, %v1361_v36 }
 0x1a9   :  { %1134 = vst.msk [vmem:[%s2141_s5 + $0x14] sm:$0xf] %vm1128_vm1, %v1362_v38  ;;  %1135 = vst.msk [vmem:[%s2141_s5 + $0x18] sm:$0xf] %vm1128_vm1, %v1363_v7 }
 0x1aa   :  { %1136 = vst.msk [vmem:[%s2141_s5 + $0x1c] sm:$0xf] %vm1128_vm1, %v1364_v8  ;;  %1137 = vst.msk [vmem:[%s2141_s5 + $0x20] sm:$0xf] %vm1128_vm1, %v1365_v47 }
 0x1ab   :  { %1138 = vst.msk [vmem:[%s2141_s5 + $0x24] sm:$0xf] %vm1128_vm1, %v1366_v11  ;;  %1139 = vst.msk [vmem:[%s2141_s5 + $0x28] sm:$0xf] %vm1128_vm1, %v1367_v12 }
 0x1ac   :  { %1140 = vst.msk [vmem:[%s2141_s5 + $0x2c] sm:$0xf] %vm1128_vm1, %v1368_v13  ;;  %1141 = vst.msk [vmem:[%s2141_s5 + $0x30] sm:$0xf] %vm1128_vm1, %v1369_v14 }
 0x1ad   :  { %1142 = vst.msk [vmem:[%s2141_s5 + $0x34] sm:$0xf] %vm1128_vm1, %v1370_v15  ;;  %1143 = vst.msk [vmem:[%s2141_s5 + $0x38] sm:$0xf] %vm1128_vm1, %v1371_v56 }
 0x1ae   :  { %1144 = vst.msk [vmem:[%s2141_s5 + $0x3c] sm:$0xf] %vm1128_vm1, %v1372_v17 }
 0x1af   :  { %1149 = vsyncpa [#allocation3], 1 }
 0x1b0   :  { %1150 = vsyncpa [#allocation5], 1 }

// kernel: generator_forward.6
= control target key start
LH: loop header
LB: loop body
LE: loop exit
PB: predicated region body
PF: predicated region fallthrough
CT: control target
= control target key end

     0   :  { %vm998_vm0 = vcmask 130048   ;;  %vm1861_vm1 = vcmask 125952   ;;  %s4533_s1 = inlined_call_operand.vmem [shape: bf16[4,128,16], index: 1, kind: input, shape index: {}]   ;;  %s4534_s0 = inlined_call_operand.vmem [shape: bf16[4,128,128], index: 0, kind: input, shape index: {}]   ;;  %s4535_s2 = inlined_call_operand.vmem [shape: f32[1,16], index: 2, kind: input, shape index: {}]   ;;  %s4536_s3 = inlined_call_operand.vmem [shape: f32[1,16], index: 3, kind: input, shape index: {}]   ;;  %s4537_s4 = inlined_call_operand.vmem [shape: f32[1,16], index: 4, kind: input, shape index: {}]   ;;  %s4538_s5 = inlined_call_operand.vmem [shape: bf16[512,16], index: 5, kind: output, shape index: {}]  }
   0x1   :  { %v2412_v0 = vld [vmem:[%s4533_s1 + $0x38] sm:$0xff]   ;;  %v2413_v1 = vld [vmem:[%s4533_s1 + $0x30] sm:$0xff]   ;;  %v2414_v2 = vld [vmem:[%s4533_s1 + $0x28] sm:$0xff]  }
   0x2   :  { %2284 = vmatprep.subr.bf16.mxu0 %v2412_v0  ;;  %v2419_v3 = vld [vmem:[%s4533_s1 + $0x78] sm:$0xff]   ;;  %v2415_v4 = vld [vmem:[%s4533_s1 + $0x20] sm:$0xff]   ;;  %v2421_v5 = vld [vmem:[%s4533_s1 + $0x70] sm:$0xff]  }
   0x3   :  { %2285 = vmatpush3.bf16.msra.mxu0 %v2412_v0  ;;  %2316 = vmatprep.subr.bf16.mxu1 %v2419_v3  ;;  %v2422_v6 = vld [vmem:[%s4534_s0] sm:$0xff]   ;;  %v2416_v7 = vld [vmem:[%s4533_s1 + $0x18] sm:$0xff]   ;;  %v2424_v8 = vld [vmem:[%s4533_s1 + $0x68] sm:$0xff]  }
   0x4   :  { %2286 = vmatprep.subr.bf16.mxu0 %v2413_v1  ;;  %2317 = vmatpush3.bf16.msra.mxu1 %v2419_v3  ;;  %v2425_v9 = vld [vmem:[%s4533_s1 + $0x60] sm:$0xff]   ;;  %v2417_v10 = vld [vmem:[%s4533_s1 + $0x10] sm:$0xff]   ;;  %v2428_v11 = vld [vmem:[%s4533_s1 + $0x58] sm:$0xff]  }
   0x5   :  { %2318 = vmatprep.subr.bf16.mxu1 %v2421_v5  ;;  %2300 = vmatprep.mubr.bf16.mxu0 %v2422_v6  ;;  %v2418_v12 = vld [vmem:[%s4533_s1 + $0x8] sm:$0xff]   ;;  %v2420_v13 = vld [vmem:[%s4533_s1] sm:$0xff]   ;;  %v2429_v14 = vld [vmem:[%s4533_s1 + $0x50] sm:$0xff]  }
   0x6   :  { %v2436_v15 = vld [vmem:[%s4534_s0 + $0x40] sm:$0xff]   ;;  %v2432_v16 = vld [vmem:[%s4533_s1 + $0x48] sm:$0xff]   ;;  %v2438_v17 = vld [vmem:[%s4533_s1 + $0xb8] sm:$0xff]  }
   0x7   :  { %2287 = vmatpush3.bf16.msra.mxu0 %v2413_v1  ;;  %2332 = vmatprep.mubr.bf16.mxu1 %v2436_v15  ;;  %v2423_v18 = vld [vmem:[%s4534_s0 + $0x8] sm:$0xff]   ;;  %v2426_v19 = vld [vmem:[%s4534_s0 + $0x10] sm:$0xff]   ;;  %v2433_v20 = vld [vmem:[%s4533_s1 + $0x40] sm:$0xff]  }
   0x8   :  { %2288 = vmatprep.subr.bf16.mxu0 %v2414_v2  ;;  %2319 = vmatpush3.bf16.msra.mxu1 %v2421_v5  ;;  %v2439_v21 = vld [vmem:[%s4533_s1 + $0xb0] sm:$0xff]   ;;  %v2427_v22 = vld [vmem:[%s4534_s0 + $0x18] sm:$0xff]   ;;  %v2437_v23 = vld [vmem:[%s4534_s0 + $0x48] sm:$0xff]  }
   0x9   :  { %2320 = vmatprep.subr.bf16.mxu1 %v2424_v8  ;;  %v2442_v24 = vld [vmem:[%s4533_s1 + $0xa8] sm:$0xff]   ;;  %v2440_v25 = vld [vmem:[%s4534_s0 + $0x50] sm:$0xff]   ;;  %v2430_v26 = vld [vmem:[%s4534_s0 + $0x20] sm:$0xff]  }
   0xa   :  { %v2443_v27 = vld [vmem:[%s4533_s1 + $0xa0] sm:$0xff]   ;;  %v2454_v28 = vld [vmem:[%s4533_s1 + $0xf8] sm:$0xff]   ;;  %v2455_v29 = vld [vmem:[%s4533_s1 + $0xf0] sm:$0xff]  }
   0xb   :  { %2289 = vmatpush3.bf16.msra.mxu0 %v2414_v2  ;;  %v2431_v30 = vld [vmem:[%s4534_s0 + $0x28] sm:$0xff]   ;;  %v2441_v31 = vld [vmem:[%s4534_s0 + $0x58] sm:$0xff]   ;;  %v2444_v33 = vld [vmem:[%s4534_s0 + $0x60] sm:$0xff]  }
   0xc   :  { %2290 = vmatprep.subr.bf16.mxu0 %v2415_v4  ;;  %2321 = vmatpush3.bf16.msra.mxu1 %v2424_v8  ;;  %v2446_v32 = vld [vmem:[%s4533_s1 + $0x98] sm:$0xff]   ;;  %v2434_v34 = vld [vmem:[%s4534_s0 + $0x30] sm:$0xff]   ;;  %v2458_v35 = vld [vmem:[%s4533_s1 + $0xe8] sm:$0xff]  }
   0xd   :  { %2322 = vmatprep.subr.bf16.mxu1 %v2425_v9  ;;  %v2447_v36 = vld [vmem:[%s4533_s1 + $0x90] sm:$0xff]   ;;  %v2445_v37 = vld [vmem:[%s4534_s0 + $0x68] sm:$0xff]   ;;  %v2435_v38 = vld [vmem:[%s4534_s0 + $0x38] sm:$0xff]  }
   0xe   :  { %v2459_v39 = vld [vmem:[%s4533_s1 + $0xe0] sm:$0xff]   ;;  %v2450_v40 = vld [vmem:[%s4533_s1 + $0x88] sm:$0xff]   ;;  %v2448_v41 = vld [vmem:[%s4534_s0 + $0x70] sm:$0xff]  }
   0xf   :  { %2291 = vmatpush3.bf16.msra.mxu0 %v2415_v4  ;;  %v2452_v42 = vld [vmem:[%s4534_s0 + $0x80] sm:$0xff]   ;;  %v2462_v43 = vld [vmem:[%s4533_s1 + $0xd8] sm:$0xff]   ;;  %v2463_v45 = vld [vmem:[%s4533_s1 + $0xd0] sm:$0xff]  }
  0x10   :  { %2292 = vmatprep.subr.bf16.mxu0 %v2416_v7  ;;  %2323 = vmatpush3.bf16.msra.mxu1 %v2425_v9  ;;  %v2451_v44 = vld [vmem:[%s4533_s1 + $0x80] sm:$0xff]   ;;  %v2449_v46 = vld [vmem:[%s4534_s0 + $0x78] sm:$0xff]   ;;  %v2453_v48 = vld [vmem:[%s4534_s0 + $0x88] sm:$0xff]  }
  0x11   :  { %2324 = vmatprep.subr.bf16.mxu1 %v2428_v11  ;;  %v2468_v47 = vld [vmem:[%s4534_s0 + $0xc0] sm:$0xff]   ;;  %v2456_v49 = vld [vmem:[%s4534_s0 + $0x90] sm:$0xff]   ;;  %v2466_v50 = vld [vmem:[%s4533_s1 + $0xc8] sm:$0xff]  }
  0x12   :  { %v2467_v51 = vld [vmem:[%s4533_s1 + $0xc0] sm:$0xff]   ;;  %v2457_v52 = vld [vmem:[%s4534_s0 + $0x98] sm:$0xff]   ;;  %v2469_v54 = vld [vmem:[%s4534_s0 + $0xc8] sm:$0xff]  }
  0x13   :  { %2293 = vmatpush3.bf16.msra.mxu0 %v2416_v7  ;;  %v2460_v53 = vld [vmem:[%s4534_s0 + $0xa0] sm:$0xff]   ;;  %v2470_v55 = vld [vmem:[%s4534_s0 + $0xd0] sm:$0xff]   ;;  %v2461_v56 = vld [vmem:[%s4534_s0 + $0xa8] sm:$0xff]  }
  0x14   :  { %2294 = vmatprep.subr.bf16.mxu0 %v2417_v10  ;;  %2325 = vmatpush3.bf16.msra.mxu1 %v2428_v11  ;;  %v2464_v57 = vld [vmem:[%s4534_s0 + $0xb0] sm:$0xff]   ;;  %v2471_v58 = vld [vmem:[%s4534_s0 + $0xd8] sm:$0xff]   ;;  %v2472_v59 = vld [vmem:[%s4534_s0 + $0xe0] sm:$0xff]  }
  0x15   :  { %2326 = vmatprep.subr.bf16.mxu1 %v2429_v14  ;;  %v2465_v60 = vld [vmem:[%s4534_s0 + $0xb8] sm:$0xff]   ;;  %v2473_v61 = vld [vmem:[%s4534_s0 + $0xe8] sm:$0xff]   ;;  %v2474_v62 = vld [vmem:[%s4534_s0 + $0xf0] sm:$0xff]  }
  0x16   :  { %v2475_v63 = vld [vmem:[%s4534_s0 + $0xf8] sm:$0xff]   ;;  %v2703_v2 = vld [vmem:[%s4535_s2] ss:$0 sm:$0xff] }
  0x17   :  { %2295 = vmatpush3.bf16.msra.mxu0 %v2417_v10 }
  0x18   :  { %2296 = vmatprep.subr.bf16.mxu0 %v2418_v12  ;;  %2327 = vmatpush3.bf16.msra.mxu1 %v2429_v14 }
  0x19   :  { %2328 = vmatprep.subr.bf16.mxu1 %v2432_v16 }
  0x1b   :  { %2297 = vmatpush3.bf16.msra.mxu0 %v2418_v12 }
  0x1c   :  { %2298 = vmatprep.subr.bf16.mxu0 %v2420_v13  ;;  %2329 = vmatpush3.bf16.msra.mxu1 %v2432_v16 }
  0x1d   :  { %2330 = vmatprep.subr.bf16.mxu1 %v2433_v20 }
  0x1f   :  { %2299 = vmatpush3.bf16.msra.mxu0 %v2420_v13 }
  0x20   :  { %2348 = vmatprep.subr.bf16.mxu0 %v2438_v17  ;;  %2331 = vmatpush3.bf16.msra.mxu1 %v2433_v20 }
  0x21   :  { %2380 = vmatprep.subr.bf16.mxu1 %v2454_v28 }
  0x22   :  { %2301 = vmatmul.mubr.bf16.vlgmr.msra.gmra.mxu0 %v2423_v18 }
  0x23   :  { %2304 = vmatprep.mubr.bf16.mxu0 %v2426_v19  ;;  %2349 = vmatpush3.bf16.msra.mxu0 %v2438_v17 }
  0x24   :  { %2350 = vmatprep.subr.bf16.mxu0 %v2439_v21  ;;  %2333 = vmatmul.mubr.bf16.vlgmr.msra.gmra.mxu1 %v2437_v23 }
  0x25   :  { %2336 = vmatprep.mubr.bf16.mxu1 %v2440_v25  ;;  %2381 = vmatpush3.bf16.msra.mxu1 %v2454_v28 }
  0x26   :  { %2382 = vmatprep.subr.bf16.mxu1 %v2455_v29 }
  0x27   :  { %2351 = vmatpush3.bf16.msra.mxu0 %v2439_v21 }
  0x28   :  { %2352 = vmatprep.subr.bf16.mxu0 %v2442_v24 }
  0x29   :  { %2383 = vmatpush3.bf16.msra.mxu1 %v2455_v29 }
  0x2a   :  { %2305 = vmatmul.mubr.bf16.gmra.mxu0 %v2427_v22  ;;  %2384 = vmatprep.subr.bf16.mxu1 %v2458_v35 }
  0x2b   :  { %2308 = vmatprep.mubr.bf16.mxu0 %v2430_v26  ;;  %2353 = vmatpush3.bf16.msra.mxu0 %v2442_v24 }
  0x2c   :  { %2354 = vmatprep.subr.bf16.mxu0 %v2443_v27  ;;  %2337 = vmatmul.mubr.bf16.gmra.mxu1 %v2441_v31 }
  0x2d   :  { %2340 = vmatprep.mubr.bf16.mxu1 %v2444_v33  ;;  %2385 = vmatpush3.bf16.msra.mxu1 %v2458_v35 }
  0x2e   :  { %2386 = vmatprep.subr.bf16.mxu1 %v2459_v39 }
  0x2f   :  { %2355 = vmatpush3.bf16.msra.mxu0 %v2443_v27 }
  0x30   :  { %2356 = vmatprep.subr.bf16.mxu0 %v2446_v32 }
  0x31   :  { %2387 = vmatpush3.bf16.msra.mxu1 %v2459_v39 }
  0x32   :  { %2309 = vmatmul.mubr.bf16.gmra.mxu0 %v2431_v30  ;;  %2388 = vmatprep.subr.bf16.mxu1 %v2462_v43 }
  0x33   :  { %2312 = vmatprep.mubr.bf16.mxu0 %v2434_v34  ;;  %2357 = vmatpush3.bf16.msra.mxu0 %v2446_v32 }
  0x34   :  { %2358 = vmatprep.subr.bf16.mxu0 %v2447_v36  ;;  %2341 = vmatmul.mubr.bf16.gmra.mxu1 %v2445_v37 }
  0x35   :  { %2344 = vmatprep.mubr.bf16.mxu1 %v2448_v41  ;;  %2389 = vmatpush3.bf16.msra.mxu1 %v2462_v43 }
  0x36   :  { %2390 = vmatprep.subr.bf16.mxu1 %v2463_v45 }
  0x37   :  { %2359 = vmatpush3.bf16.msra.mxu0 %v2447_v36 }
  0x38   :  { %2360 = vmatprep.subr.bf16.mxu0 %v2450_v40 }
  0x39   :  { %2391 = vmatpush3.bf16.msra.mxu1 %v2463_v45 }
  0x3a   :  { %2313 = vmatmul.mubr.bf16.gmra.mxu0 %v2435_v38  ;;  %2392 = vmatprep.subr.bf16.mxu1 %v2466_v50 }
  0x3b   :  { %2364 = vmatprep.mubr.bf16.mxu0 %v2452_v42  ;;  %2361 = vmatpush3.bf16.msra.mxu0 %v2450_v40 }
  0x3c   :  { %2362 = vmatprep.subr.bf16.mxu0 %v2451_v44  ;;  %2345 = vmatmul.mubr.bf16.gmra.mxu1 %v2449_v46 }
  0x3d   :  { %2396 = vmatprep.mubr.bf16.mxu1 %v2468_v47  ;;  %2393 = vmatpush3.bf16.msra.mxu1 %v2466_v50 }
  0x3e   :  { %2394 = vmatprep.subr.bf16.mxu1 %v2467_v51 }
  0x3f   :  { %2363 = vmatpush3.bf16.msra.mxu0 %v2451_v44 }
  0x41   :  { %2395 = vmatpush3.bf16.msra.mxu1 %v2467_v51 }
  0x42   :  { %2365 = vmatmul.mubr.bf16.vlgmr.msra.gmra.mxu0 %v2453_v48 }
  0x43   :  { %2368 = vmatprep.mubr.bf16.mxu0 %v2456_v49 }
  0x44   :  { %2397 = vmatmul.mubr.bf16.vlgmr.msra.gmra.mxu1 %v2469_v54 }
  0x45   :  { %2400 = vmatprep.mubr.bf16.mxu1 %v2470_v55 }
  0x4a   :  { %2369 = vmatmul.mubr.bf16.gmra.mxu0 %v2457_v52 }
  0x4b   :  { %2372 = vmatprep.mubr.bf16.mxu0 %v2460_v53 }
  0x4c   :  { %2401 = vmatmul.mubr.bf16.gmra.mxu1 %v2471_v58 }
  0x4d   :  { %2404 = vmatprep.mubr.bf16.mxu1 %v2472_v59 }
  0x52   :  { %2373 = vmatmul.mubr.bf16.gmra.mxu0 %v2461_v56 }
  0x53   :  { %2376 = vmatprep.mubr.bf16.mxu0 %v2464_v57 }
  0x54   :  { %2405 = vmatmul.mubr.bf16.gmra.mxu1 %v2473_v61 }
  0x55   :  { %2408 = vmatprep.mubr.bf16.mxu1 %v2474_v62 }
  0x5a   :  { %2377 = vmatmul.mubr.bf16.gmra.mxu0 %v2465_v60 }
  0x5c   :  { %2409 = vmatmul.mubr.bf16.gmra.mxu1 %v2475_v63 }
  0xe2   :  { %v2302_v0 = vpop.f32.mrf.mxu0 }
  0xe3   :  { %v2709_v6 = vadd.f32 %v2302_v0, %v2703_v2 }
  0xe4   :  { %v183_v1 = vpop.f32.mrf.mxu0  ;;  %v2714_v8 = vpop.f32.mrf.mxu1 }
  0xe5   :  { %v2706_v4 = vadd.f32 %v2703_v2, %v183_v1  ;;  %v1002_v16 = vsel %vm998_vm0, %v2709_v6, 0.0 }
  0xe6   :  { %v2303_v3 = vpop.f32.mrf.mxu0  ;;  %v410_v13 = vpop.f32.mrf.mxu1 }
  0xe7   :  { %v999_v10 = vsel %vm998_vm0, %v2706_v4, 0.0  ;;  %v2719_v11 = vadd.f32 %v2303_v3, %v2703_v2 }
  0xe8   :  { %v186_v5 = vpop.f32.mrf.mxu0  ;;  %v2728_v18 = vpop.f32.mrf.mxu1 }
  0xe9   :  { %v2712_v7 = vadd.f32 %v2703_v2, %v186_v5  ;;  %v1004_v21 = vsel %vm998_vm0, %v2719_v11, 0.0 }
  0xea   :  { %v2306_v9 = vpop.f32.mrf.mxu0  ;;  %v413_v22 = vpop.f32.mrf.mxu1 }
  0xeb   :  { %v1000_v12 = vsel %vm998_vm0, %v2712_v7, 0.0  ;;  %v2733_v25 = vadd.f32 %v2306_v9, %v2703_v2 }
  0xec   :  { %v1001_v14 = vadd.f32 %v1000_v12, %v999_v10  ;;  %v199_v15 = vpop.f32.mrf.mxu0  ;;  %v2740_v28 = vpop.f32.mrf.mxu1 }
  0xed   :  { %v2726_v17 = vadd.f32 %v2703_v2, %v199_v15  ;;  %v1010_v36 = vsel %vm998_vm0, %v2733_v25, 0.0  ;;  %v2792_v15 = vadd.f32 %v2703_v2, %v410_v13 }
  0xee   :  { %v1003_v19 = vadd.f32 %v1002_v16, %v1001_v14  ;;  %v2307_v20 = vpop.f32.mrf.mxu0  ;;  %v426_v35 = vpop.f32.mrf.mxu1 }
  0xef   :  { %v1006_v26 = vsel %vm998_vm0, %v2726_v17, 0.0  ;;  %v2743_v31 = vadd.f32 %v2307_v20, %v2703_v2  ;;  %v1030_v13 = vsel %vm998_vm0, %v2792_v15, 0.0 }
  0xf0   :  { %v1005_v23 = vadd.f32 %v1004_v21, %v1003_v19  ;;  %v202_v24 = vpop.f32.mrf.mxu0  ;;  %v2339_v43 = vpop.f32.mrf.mxu1  ;;  %v2799_v21 = vadd.f32 %v2703_v2, %v413_v22 }
  0xf1   :  { %v2738_v27 = vadd.f32 %v2703_v2, %v202_v24  ;;  %v1012_v40 = vsel %vm998_vm0, %v2743_v31, 0.0 }
  0xf2   :  { %v1007_v29 = vadd.f32 %v1006_v26, %v1005_v23  ;;  %v2310_v30 = vpop.f32.mrf.mxu0  ;;  %v429_v53 = vpop.f32.mrf.mxu1  ;;  %v1032_v22 = vsel %vm998_vm0, %v2799_v21, 0.0 }
  0xf3   :  { %v1008_v32 = vsel %vm998_vm0, %v2738_v27, 0.0  ;;  %v2755_v44 = vadd.f32 %v2310_v30, %v2703_v2 }
  0xf4   :  { %v1009_v33 = vadd.f32 %v1008_v32, %v1007_v29  ;;  %v215_v34 = vpop.f32.mrf.mxu0  ;;  %v2342_v61 = vpop.f32.mrf.mxu1  ;;  %v2805_v29 = vadd.f32 %v2714_v8, %v2703_v2  ;;  %v2811_v32 = vadd.f32 %v2728_v18, %v2703_v2  ;;  %v2818_v8 = vadd.f32 %v2703_v2, %v426_v35 }
  0xf5   :  { %v2750_v37 = vadd.f32 %v2703_v2, %v215_v34  ;;  %v1018_v54 = vsel %vm998_vm0, %v2755_v44, 0.0 }
  0xf6   :  { %v1011_v38 = vadd.f32 %v1010_v36, %v1009_v33  ;;  %v2311_v39 = vpop.f32.mrf.mxu0  ;;  %v442_v12 = vpop.f32.mrf.mxu1 }
  0xf7   :  { %v1014_v45 = vsel %vm998_vm0, %v2750_v37, 0.0  ;;  %v2763_v49 = vadd.f32 %v2311_v39, %v2703_v2 }
  0xf8   :  { %v1013_v41 = vadd.f32 %v1012_v40, %v1011_v38  ;;  %v218_v42 = vpop.f32.mrf.mxu0  ;;  %v2343_v24 = vpop.f32.mrf.mxu1  ;;  %v1034_v38 = vsel %vm998_vm0, %v2805_v29, 0.0  ;;  %v1036_v40 = vsel %vm998_vm0, %v2811_v32, 0.0 }
  0xf9   :  { %v2760_v46 = vadd.f32 %v2703_v2, %v218_v42  ;;  %v1020_v58 = vsel %vm998_vm0, %v2763_v49, 0.0 }
  0xfa   :  { %v1015_v47 = vadd.f32 %v1014_v45, %v1013_v41  ;;  %v2314_v48 = vpop.f32.mrf.mxu0  ;;  %v445_v34 = vpop.f32.mrf.mxu1  ;;  %v2823_v41 = vadd.f32 %v2703_v2, %v429_v53 }
  0xfb   :  { %v1016_v50 = vsel %vm998_vm0, %v2760_v46, 0.0  ;;  %v2775_v62 = vadd.f32 %v2314_v48, %v2703_v2  ;;  %v1038_v48 = vsel %vm998_vm0, %v2818_v8, 0.0 }
  0xfc   :  { %v1017_v51 = vadd.f32 %v1016_v50, %v1015_v47  ;;  %v231_v52 = vpop.f32.mrf.mxu0  ;;  %v2346_v42 = vpop.f32.mrf.mxu1  ;;  %v2829_v47 = vadd.f32 %v2740_v28, %v2703_v2  ;;  %v2834_v50 = vadd.f32 %v2339_v43, %v2703_v2 }
  0xfd   :  { %v2770_v55 = vadd.f32 %v2703_v2, %v231_v52  ;;  %v1026_v14 = vsel %vm998_vm0, %v2775_v62, 0.0 }
  0xfe   :  { %v1019_v56 = vadd.f32 %v1018_v54, %v1017_v51  ;;  %v2315_v57 = vpop.f32.mrf.mxu0  ;;  %v1040_v51 = vsel %vm998_vm0, %v2823_v41, 0.0  ;;  %v458_v53 = vpop.f32.mrf.mxu1 }
  0xff   :  { %v1022_v63 = vsel %vm998_vm0, %v2770_v55, 0.0  ;;  %v2783_v3 = vadd.f32 %v2315_v57, %v2703_v2  ;;  %v2841_v57 = vadd.f32 %v2703_v2, %v442_v12  ;;  %v2854_v12 = vadd.f32 %v2343_v24, %v2703_v2 }
 0x100   :  { %v1021_v59 = vadd.f32 %v1020_v58, %v1019_v56  ;;  %v234_v60 = vpop.f32.mrf.mxu0  ;;  %v1042_v56 = vsel %vm998_vm0, %v2829_v47, 0.0  ;;  %v1044_v58 = vsel %vm998_vm0, %v2834_v50, 0.0 }
 0x101   :  { %v2780_v0 = vadd.f32 %v2703_v2, %v234_v60  ;;  %v1028_v20 = vsel %vm998_vm0, %v2783_v3, 0.0  ;;  %v2347_v60 = vpop.f32.mrf.mxu1 }
 0x102   :  { %v1023_v1 = vadd.f32 %v1022_v63, %v1021_v59  ;;  %v2787_v9 = vpop.f32.mrf.mxu0  ;;  %v2846_v59 = vadd.f32 %v2703_v2, %v445_v34 }
 0x103   :  { %v1024_v5 = vsel %vm998_vm0, %v2780_v0, 0.0 }
 0x104   :  { %v1025_v10 = vadd.f32 %v1024_v5, %v1023_v1  ;;  %v2794_v16 = vpop.f32.mrf.mxu0  ;;  %v2849_v1 = vadd.f32 %v2342_v61, %v2703_v2  ;;  %v1046_v5 = vsel %vm998_vm0, %v2841_v57, 0.0 }
 0x106   :  { %v1027_v19 = vadd.f32 %v1026_v14, %v1025_v10  ;;  %v2801_v26 = vpop.f32.mrf.mxu0  ;;  %v1048_v14 = vsel %vm998_vm0, %v2846_v59, 0.0 }
 0x108   :  { %v1029_v23 = vadd.f32 %v1028_v20, %v1027_v19  ;;  %v640_v36 = vpop.f32.mrf.mxu0  ;;  %v461_v20 = vpop.f32.mrf.mxu1 }
 0x10a   :  { %v1031_v30 = vadd.f32 %v1030_v13, %v1029_v23  ;;  %v2825_v45 = vpop.f32.mrf.mxu0  ;;  %v1050_v13 = vsel %vm998_vm0, %v2849_v1, 0.0 }
 0x10c   :  { %v1033_v33 = vadd.f32 %v1032_v22, %v1031_v30  ;;  %v653_v54 = vpop.f32.mrf.mxu0  ;;  %v2861_v30 = vadd.f32 %v2703_v2, %v458_v53  ;;  %v1052_v22 = vsel %vm998_vm0, %v2854_v12, 0.0 }
 0x10e   :  { %v1035_v39 = vadd.f32 %v1034_v38, %v1033_v33  ;;  %v2371_v63 = vpop.f32.mrf.mxu0  ;;  %v2866_v33 = vadd.f32 %v2703_v2, %v461_v20  ;;  %v2869_v38 = vadd.f32 %v2346_v42, %v2703_v2  ;;  %v2884_v42 = vadd.f32 %v2703_v2, %v2794_v16 }
 0x10f   :  { %v2899_v16 = vadd.f32 %v2801_v26, %v2703_v2 }
 0x110   :  { %v1037_v18 = vadd.f32 %v1036_v40, %v1035_v39  ;;  %v656_v23 = vpop.f32.mrf.mxu0  ;;  %v1054_v39 = vsel %vm998_vm0, %v2861_v30, 0.0  ;;  %v1058_v53 = vsel %vm998_vm0, %v2869_v38, 0.0 }
 0x112   :  { %v1039_v35 = vadd.f32 %v1038_v48, %v1037_v18  ;;  %v2374_v34 = vpop.f32.mrf.mxu0  ;;  %v2874_v18 = vadd.f32 %v2347_v60, %v2703_v2  ;;  %v1056_v48 = vsel %vm998_vm0, %v2866_v33, 0.0 }
 0x114   :  { %v1041_v52 = vadd.f32 %v1040_v51, %v1039_v35  ;;  %v669_v51 = vpop.f32.mrf.mxu0 }
 0x116   :  { %v1043_v28 = vadd.f32 %v1042_v56, %v1041_v52  ;;  %v2878_v52 = vpop.f32.mrf.mxu1  ;;  %v2375_v60 = vpop.f32.mrf.mxu0 }
 0x118   :  { %v1045_v43 = vadd.f32 %v1044_v58, %v1043_v28  ;;  %v1060_v28 = vsel %vm998_vm0, %v2874_v18, 0.0  ;;  %v2889_v58 = vadd.f32 %v2703_v2, %v640_v36 }
 0x11a   :  { %v1047_v10 = vadd.f32 %v1046_v5, %v1045_v43  ;;  %v864_v5 = vpop.f32.mrf.mxu1  ;;  %v1064_v20 = vsel %vm998_vm0, %v2889_v58, 0.0 }
 0x11c   :  { %v1049_v19 = vadd.f32 %v1048_v14, %v1047_v10  ;;  %v2893_v10 = vadd.f32 %v2787_v9, %v2703_v2  ;;  %v1062_v14 = vsel %vm998_vm0, %v2884_v42, 0.0  ;;  %v2906_v9 = vadd.f32 %v2703_v2, %v653_v54 }
 0x11d   :  { %v2920_v54 = vadd.f32 %v2371_v63, %v2703_v2 }
 0x11e   :  { %v1051_v61 = vadd.f32 %v1050_v13, %v1049_v19  ;;  %v672_v13 = vpop.f32.mrf.mxu0 }
 0x11f   :  { %4591 = vst [vmem:[#allocation2_spill] sm:$0xff] %v2920_v54 }
 0x120   :  { %v1053_v24 = vadd.f32 %v1052_v22, %v1051_v61  ;;  %v2399_v61 = vpop.f32.mrf.mxu1  ;;  %v1066_v22 = vsel %vm998_vm0, %v2893_v10, 0.0 }
 0x122   :  { %v1055_v40 = vadd.f32 %v1054_v39, %v1053_v24  ;;  %v1068_v39 = vsel %vm998_vm0, %v2899_v16, 0.0 }
 0x124   :  { %v1057_v35 = vadd.f32 %v1056_v48, %v1055_v40  ;;  %v2911_v40 = vadd.f32 %v2703_v2, %v656_v23  ;;  %v2378_v48 = vpop.f32.mrf.mxu0 }
 0x126   :  { %v1059_v56 = vadd.f32 %v1058_v53, %v1057_v35  ;;  %v867_v35 = vpop.f32.mrf.mxu1  ;;  %v2915_v53 = vadd.f32 %v2825_v45, %v2703_v2  ;;  %v685_v23 = vpop.f32.mrf.mxu0 }
 0x128   :  { %v1061_v43 = vadd.f32 %v1060_v28, %v1059_v56  ;;  %v1070_v56 = vsel %vm998_vm0, %v2906_v9, 0.0 }
 0x12a   :  { %v1063_v19 = vadd.f32 %v1062_v14, %v1061_v43  ;;  %v1072_v43 = vsel %vm998_vm0, %v2911_v40, 0.0 }
 0x12c   :  { %v1065_v36 = vadd.f32 %v1064_v20, %v1063_v19  ;;  %v2402_v19 = vpop.f32.mrf.mxu1  ;;  %v1074_v20 = vsel %vm998_vm0, %v2915_v53, 0.0 }
 0x12e   :  { %v1067_v24 = vadd.f32 %v1066_v22, %v1065_v36  ;;  %v2927_v36 = vadd.f32 %v2703_v2, %v669_v51  ;;  %v1076_v22 = vsel %vm998_vm0, %v2920_v54, 0.0  ;;  %v2940_v51 = vadd.f32 %v2375_v60, %v2703_v2 }
 0x130   :  { %v1069_v26 = vadd.f32 %v1068_v39, %v1067_v24  ;;  %4592 = vst [vmem:[#allocation3_spill] sm:$0xff] %v2927_v36  ;;  %v2932_v24 = vadd.f32 %v2703_v2, %v672_v13  ;;  %v2379_v39 = vpop.f32.mrf.mxu0 }
 0x132   :  { %v1071_v28 = vadd.f32 %v1070_v56, %v1069_v26  ;;  %4593 = vst [vmem:[#allocation4_spill] sm:$0xff] %v2932_v24  ;;  %v880_v26 = vpop.f32.mrf.mxu1  ;;  %v2935_v56 = vadd.f32 %v2374_v34, %v2703_v2  ;;  %v688_v54 = vpop.f32.mrf.mxu0 }
 0x134   :  { %v1073_v14 = vadd.f32 %v1072_v43, %v1071_v28  ;;  %4594 = vst [vmem:[#allocation5_spill] sm:$0xff] %v2935_v56  ;;  %v1078_v28 = vsel %vm998_vm0, %v2927_v36, 0.0  ;;  %v2403_v13 = vpop.f32.mrf.mxu1  ;;  %v1084_v36 = vsel %vm998_vm0, %v2940_v51, 0.0 }
 0x136   :  { %v1075_v45 = vadd.f32 %v1074_v20, %v1073_v14  ;;  %v1080_v14 = vsel %vm998_vm0, %v2932_v24, 0.0  ;;  %v2955_v24 = vadd.f32 %v2378_v48, %v2703_v2 }
 0x138   :  { %v1077_v63 = vadd.f32 %v1076_v22, %v1075_v45  ;;  %v1082_v45 = vsel %vm998_vm0, %v2935_v56, 0.0  ;;  %v2947_v22 = vadd.f32 %v2703_v2, %v685_v23  ;;  %v2960_v56 = vadd.f32 %v2379_v39, %v2703_v2 }
 0x13a   :  { %v1079_v43 = vadd.f32 %v1078_v28, %v1077_v63  ;;  %v2952_v63 = vadd.f32 %v2703_v2, %v688_v54  ;;  %v883_v28 = vpop.f32.mrf.mxu1  ;;  %4596 = vst [vmem:[#allocation7_spill] sm:$0xff] %v2960_v56  ;;  %v1090_v54 = vsel %vm998_vm0, %v2955_v24, 0.0 }
 0x13c   :  { %v1081_v20 = vadd.f32 %v1080_v14, %v1079_v43  ;;  %4595 = vst [vmem:[#allocation6_spill] sm:$0xff] %v2952_v63  ;;  %v1086_v43 = vsel %vm998_vm0, %v2947_v22, 0.0  ;;  %v1088_v23 = vsel %vm998_vm0, %v2952_v63, 0.0  ;;  %v2976_v63 = vadd.f32 %v2878_v52, %v2703_v2 }
 0x13e   :  { %v1083_v34 = vadd.f32 %v1082_v45, %v1081_v20  ;;  %v2406_v45 = vpop.f32.mrf.mxu1  ;;  %4598 = vst [vmem:[#allocation9_spill] sm:$0xff] %v2976_v63 }
 0x140   :  { %v1085_v60 = vadd.f32 %v1084_v36, %v1083_v34  ;;  %v2967_v36 = vadd.f32 %v2703_v2, %v864_v5  ;;  %v1092_v34 = vsel %vm998_vm0, %v2960_v56, 0.0  ;;  %v2981_v5 = vadd.f32 %v2399_v61, %v2703_v2 }
 0x142   :  { %v1087_v14 = vadd.f32 %v1086_v43, %v1085_v60  ;;  %4597 = vst [vmem:[#allocation8_spill] sm:$0xff] %v2967_v36  ;;  %v2972_v60 = vadd.f32 %v2703_v2, %v867_v35  ;;  %v896_v43 = vpop.f32.mrf.mxu1  ;;  %v1098_v35 = vsel %vm998_vm0, %v2976_v63, 0.0  ;;  %v3001_v63 = vadd.f32 %v2403_v13, %v2703_v2 }
 0x144   :  { %v1089_v20 = vadd.f32 %v1088_v23, %v1087_v14  ;;  %v1094_v14 = vsel %vm998_vm0, %v2967_v36, 0.0  ;;  %v2407_v56 = vpop.f32.mrf.mxu1  ;;  %v2996_v36 = vadd.f32 %v2402_v19, %v2703_v2  ;;  %4601 = vst [vmem:[#allocation12_spill] sm:$0xff] %v3001_v63 }
 0x146   :  { %v1091_v48 = vadd.f32 %v1090_v54, %v1089_v20  ;;  %v1096_v20 = vsel %vm998_vm0, %v2972_v60, 0.0  ;;  %4600 = vst [vmem:[#allocation11_spill] sm:$0xff] %v2996_v36 }
 0x148   :  { %v1093_v39 = vadd.f32 %v1092_v34, %v1091_v48  ;;  %v2988_v48 = vadd.f32 %v2703_v2, %v880_v26  ;;  %v1100_v34 = vsel %vm998_vm0, %v2981_v5, 0.0 }
 0x14a   :  { %v1095_v23 = vadd.f32 %v1094_v14, %v1093_v39  ;;  %4599 = vst [vmem:[#allocation10_spill] sm:$0xff] %v2988_v48  ;;  %v2993_v39 = vadd.f32 %v2703_v2, %v883_v28  ;;  %v899_v14 = vpop.f32.mrf.mxu1  ;;  %v1106_v28 = vsel %vm998_vm0, %v2996_v36, 0.0  ;;  %v3021_v36 = vadd.f32 %v2407_v56, %v2703_v2 }
 0x14c   :  { %v1097_v54 = vadd.f32 %v1096_v20, %v1095_v23  ;;  %v1102_v23 = vsel %vm998_vm0, %v2988_v48, 0.0  ;;  %v1104_v26 = vsel %vm998_vm0, %v2993_v39, 0.0  ;;  %v3016_v48 = vadd.f32 %v2406_v45, %v2703_v2  ;;  %4605 = vst [vmem:[#allocation16_spill] sm:$0xff] %v3021_v36 }
 0x14d   :  { %v1116_v45 = vsel %vm998_vm0, %v3021_v36, 0.0 }
 0x14e   :  { %v1099_v52 = vadd.f32 %v1098_v35, %v1097_v54  ;;  %v2410_v35 = vpop.f32.mrf.mxu1  ;;  %4604 = vst [vmem:[#allocation15_spill] sm:$0xff] %v3016_v48 }
 0x150   :  { %v1101_v61 = vadd.f32 %v1100_v34, %v1099_v52  ;;  %v3008_v52 = vadd.f32 %v2703_v2, %v896_v43  ;;  %v1108_v34 = vsel %vm998_vm0, %v3001_v63, 0.0 }
 0x152   :  { %v1103_v20 = vadd.f32 %v1102_v23, %v1101_v61  ;;  %4602 = vst [vmem:[#allocation13_spill] sm:$0xff] %v3008_v52  ;;  %v3013_v61 = vadd.f32 %v2703_v2, %v899_v14  ;;  %v912_v23 = vpop.f32.mrf.mxu1  ;;  %v1114_v14 = vsel %vm998_vm0, %v3016_v48, 0.0 }
 0x154   :  { %v1105_v54 = vadd.f32 %v1104_v26, %v1103_v20  ;;  %4603 = vst [vmem:[#allocation14_spill] sm:$0xff] %v3013_v61  ;;  %v1110_v20 = vsel %vm998_vm0, %v3008_v52, 0.0  ;;  %v1112_v43 = vsel %vm998_vm0, %v3013_v61, 0.0 }
 0x156   :  { %v1107_v19 = vadd.f32 %v1106_v28, %v1105_v54  ;;  %v2411_v28 = vpop.f32.mrf.mxu1 }
 0x158   :  { %v1109_v13 = vadd.f32 %v1108_v34, %v1107_v19  ;;  %v3030_v34 = vadd.f32 %v2703_v2, %v912_v23 }
 0x15a   :  { %v1111_v26 = vadd.f32 %v1110_v20, %v1109_v13  ;;  %4606 = vst [vmem:[#allocation17_spill] sm:$0xff] %v3030_v34  ;;  %v915_v13 = vpop.f32.mrf.mxu1  ;;  %v1118_v56 = vsel %vm998_vm0, %v3030_v34, 0.0 }
 0x15b   :  { %v3035_v20 = vadd.f32 %v2703_v2, %v915_v13 }
 0x15c   :  { %v1113_v54 = vadd.f32 %v1112_v43, %v1111_v26  ;;  %v3038_v43 = vadd.f32 %v2410_v35, %v2703_v2 }
 0x15e   :  { %v1115_v19 = vadd.f32 %v1114_v14, %v1113_v54  ;;  %v1120_v54 = vsel %vm998_vm0, %v3035_v20, 0.0  ;;  %v1122_v23 = vsel %vm998_vm0, %v3038_v43, 0.0 }
 0x160   :  { %v1117_v52 = vadd.f32 %v1116_v45, %v1115_v19  ;;  %v3045_v19 = vadd.f32 %v2411_v28, %v2703_v2 }
 0x162   :  { %v1119_v26 = vadd.f32 %v1118_v56, %v1117_v52  ;;  %v1124_v34 = vsel %vm998_vm0, %v3045_v19, 0.0 }
 0x164   :  { %v1121_v14 = vadd.f32 %v1120_v54, %v1119_v26 }
 0x166   :  { %v1123_v45 = vadd.f32 %v1122_v23, %v1121_v14 }
 0x168   :  { %v1125_v13 = vadd.f32 %v1124_v34, %v1123_v45 }
 0x16a   :  { %v1126_v36 = vrot.slane %v1125_v13, 4 }
 0x16c   :  { %v1127_v52 = vadd.f32 %v1126_v36, %v1125_v13 }
 0x16e   :  { %v1128_v56 = vrot.slane %v1127_v52, 2 }
 0x170   :  { %v1129_v35 = vadd.f32 %v1128_v56, %v1127_v52 }
 0x172   :  { %v1130_v48 = vrot.slane %v1129_v35, 1 }
 0x174   :  { %v1131_v61 = vadd.f32 %v1130_v48, %v1129_v35 }
 0x176   :  { %v3049_v63 = vmul.f32 0.001953125, %v1131_v61 }
 0x178   :  { %v3053_v26 = vsub.f32 %v2706_v4, %v3049_v63  ;;  %v3057_v2 = vsub.f32 %v2712_v7, %v3049_v63  ;;  %v3061_v28 = vsub.f32 %v2709_v6, %v3049_v63  ;;  %v3065_v36 = vsub.f32 %v2719_v11, %v3049_v63 }
 0x179   :  { %v3073_v4 = vsub.f32 %v2726_v17, %v3049_v63  ;;  %v3079_v6 = vsub.f32 %v2738_v27, %v3049_v63  ;;  %v3087_v23 = vsub.f32 %v2733_v25, %v3049_v63  ;;  %v3094_v27 = vsub.f32 %v2743_v31, %v3049_v63 }
 0x17a   :  { %v1198_v48 = vmul.f32 %v3053_v26, %v3053_v26  ;;  %v1199_v61 = vmul.f32 %v3057_v2, %v3057_v2  ;;  %v1200_v7 = vmul.f32 %v3061_v28, %v3061_v28  ;;  %v1201_v11 = vmul.f32 %v3065_v36, %v3065_v36 }
 0x17b   :  { %v1202_v17 = vmul.f32 %v3073_v4, %v3073_v4  ;;  %v1203_v52 = vmul.f32 %v3079_v6, %v3079_v6  ;;  %v3101_v25 = vsub.f32 %v2750_v37, %v3049_v63  ;;  %v3108_v31 = vsub.f32 %v2760_v46, %v3049_v63 }
 0x17c   :  { %v1262_v34 = vsel %vm998_vm0, %v1198_v48, 0.0  ;;  %v1263_v54 = vsel %vm998_vm0, %v1199_v61, 0.0  ;;  %v1265_v45 = vsel %vm998_vm0, %v1200_v7, 0.0  ;;  %v1267_v56 = vsel %vm998_vm0, %v1201_v11, 0.0 }
 0x17d   :  { %v1264_v14 = vadd.f32 %v1263_v54, %v1262_v34  ;;  %v1204_v48 = vmul.f32 %v3087_v23, %v3087_v23  ;;  %v1269_v61 = vsel %vm998_vm0, %v1202_v17, 0.0  ;;  %v1205_v34 = vmul.f32 %v3094_v27, %v3094_v27 }
 0x17e   :  { %v1271_v11 = vsel %vm998_vm0, %v1203_v52, 0.0  ;;  %v3115_v37 = vsub.f32 %v2755_v44, %v3049_v63  ;;  %v3122_v46 = vsub.f32 %v2763_v49, %v3049_v63  ;;  %v3129_v44 = vsub.f32 %v2770_v55, %v3049_v63 }
 0x17f   :  { %v1266_v13 = vadd.f32 %v1265_v45, %v1264_v14  ;;  %v1206_v14 = vmul.f32 %v3101_v25, %v3101_v25  ;;  %v1273_v17 = vsel %vm998_vm0, %v1204_v48, 0.0  ;;  %v1275_v52 = vsel %vm998_vm0, %v1205_v34, 0.0 }
 0x180   :  { %v3136_v49 = vsub.f32 %v2780_v0, %v3049_v63  ;;  %v3143_v55 = vsub.f32 %v2775_v62, %v3049_v63  ;;  %v3150_v0 = vsub.f32 %v2783_v3, %v3049_v63  ;;  %v3157_v62 = vsub.f32 %v2792_v15, %v3049_v63 }
 0x181   :  { %v1268_v35 = vadd.f32 %v1267_v56, %v1266_v13  ;;  %v1207_v13 = vmul.f32 %v3108_v31, %v3108_v31  ;;  %v1277_v48 = vsel %vm998_vm0, %v1206_v14, 0.0  ;;  %v3164_v3 = vsub.f32 %v2799_v21, %v3049_v63 }
 0x182   :  { %v3171_v15 = vsub.f32 %v2805_v29, %v3049_v63  ;;  %v3178_v21 = vsub.f32 %v2811_v32, %v3049_v63  ;;  %v3185_v29 = vsub.f32 %v2818_v8, %v3049_v63  ;;  %v3192_v32 = vsub.f32 %v2823_v41, %v3049_v63 }
 0x183   :  { %v1270_v7 = vadd.f32 %v1269_v61, %v1268_v35  ;;  %v1208_v35 = vmul.f32 %v3115_v37, %v3115_v37  ;;  %v1279_v34 = vsel %vm998_vm0, %v1207_v13, 0.0  ;;  %v3199_v8 = vsub.f32 %v2829_v47, %v3049_v63 }
 0x184   :  { %v3206_v41 = vsub.f32 %v2834_v50, %v3049_v63  ;;  %v3213_v47 = vsub.f32 %v2841_v57, %v3049_v63  ;;  %v3220_v50 = vsub.f32 %v2846_v59, %v3049_v63  ;;  %v3227_v57 = vsub.f32 %v2849_v1, %v3049_v63 }
 0x185   :  { %v1272_v54 = vadd.f32 %v1271_v11, %v1270_v7  ;;  %v1209_v7 = vmul.f32 %v3122_v46, %v3122_v46  ;;  %v1281_v14 = vsel %vm998_vm0, %v1208_v35, 0.0  ;;  %v3234_v59 = vsub.f32 %v2854_v12, %v3049_v63 }
 0x186   :  { %v3241_v1 = vsub.f32 %v2861_v30, %v3049_v63  ;;  %v3248_v12 = vsub.f32 %v2866_v33, %v3049_v63  ;;  %v3255_v30 = vsub.f32 %v2869_v38, %v3049_v63  ;;  %v3262_v33 = vsub.f32 %v2874_v18, %v3049_v63 }
 0x187   :  { %v1274_v45 = vadd.f32 %v1273_v17, %v1272_v54  ;;  %v1210_v54 = vmul.f32 %v3129_v44, %v3129_v44  ;;  %v1283_v13 = vsel %vm998_vm0, %v1209_v7, 0.0  ;;  %v3269_v38 = vsub.f32 %v2884_v42, %v3049_v63 }
 0x188   :  { %v3276_v18 = vsub.f32 %v2889_v58, %v3049_v63  ;;  %v3283_v42 = vsub.f32 %v2893_v10, %v3049_v63  ;;  %v3290_v58 = vsub.f32 %v2899_v16, %v3049_v63  ;;  %v3297_v10 = vsub.f32 %v2906_v9, %v3049_v63 }
 0x189   :  { %v1276_v56 = vadd.f32 %v1275_v52, %v1274_v45  ;;  %v1211_v45 = vmul.f32 %v3136_v49, %v3136_v49  ;;  %v1285_v35 = vsel %vm998_vm0, %v1210_v54, 0.0  ;;  %v3304_v16 = vsub.f32 %v2911_v40, %v3049_v63 }
 0x18a   :  { %v3311_v9 = vsub.f32 %v2915_v53, %v3049_v63 }
 0x18b   :  { %v1278_v61 = vadd.f32 %v1277_v48, %v1276_v56  ;;  %v1212_v56 = vmul.f32 %v3143_v55, %v3143_v55  ;;  %v1287_v7 = vsel %vm998_vm0, %v1211_v45, 0.0 }
 0x18c   :  { %4607 = vst [vmem:[#allocation18_spill] sm:$0xff] %v3311_v9 }
 0x18d   :  { %v1280_v11 = vadd.f32 %v1279_v34, %v1278_v61  ;;  %v1213_v61 = vmul.f32 %v3150_v0, %v3150_v0  ;;  %v1289_v54 = vsel %vm998_vm0, %v1212_v56, 0.0 }
 0x18f   :  { %v1282_v17 = vadd.f32 %v1281_v14, %v1280_v11  ;;  %v1214_v11 = vmul.f32 %v3157_v62, %v3157_v62  ;;  %v1291_v45 = vsel %vm998_vm0, %v1213_v61, 0.0 }
 0x191   :  { %v1284_v52 = vadd.f32 %v1283_v13, %v1282_v17  ;;  %v1215_v17 = vmul.f32 %v3164_v3, %v3164_v3  ;;  %v1293_v56 = vsel %vm998_vm0, %v1214_v11, 0.0 }
 0x193   :  { %v1286_v48 = vadd.f32 %v1285_v35, %v1284_v52  ;;  %v1216_v52 = vmul.f32 %v3171_v15, %v3171_v15  ;;  %v1295_v61 = vsel %vm998_vm0, %v1215_v17, 0.0 }
 0x195   :  { %v1288_v34 = vadd.f32 %v1287_v7, %v1286_v48  ;;  %v1217_v48 = vmul.f32 %v3178_v21, %v3178_v21  ;;  %v1297_v11 = vsel %vm998_vm0, %v1216_v52, 0.0 }
 0x197   :  { %v1290_v14 = vadd.f32 %v1289_v54, %v1288_v34  ;;  %v1218_v34 = vmul.f32 %v3185_v29, %v3185_v29  ;;  %v1299_v17 = vsel %vm998_vm0, %v1217_v48, 0.0 }
 0x199   :  { %v1292_v13 = vadd.f32 %v1291_v45, %v1290_v14  ;;  %v1219_v14 = vmul.f32 %v3192_v32, %v3192_v32  ;;  %v1301_v52 = vsel %vm998_vm0, %v1218_v34, 0.0 }
 0x19b   :  { %v1294_v35 = vadd.f32 %v1293_v56, %v1292_v13  ;;  %v1220_v13 = vmul.f32 %v3199_v8, %v3199_v8  ;;  %v1303_v48 = vsel %vm998_vm0, %v1219_v14, 0.0 }
 0x19d   :  { %v1296_v7 = vadd.f32 %v1295_v61, %v1294_v35  ;;  %v1221_v35 = vmul.f32 %v3206_v41, %v3206_v41  ;;  %v1305_v34 = vsel %vm998_vm0, %v1220_v13, 0.0 }
 0x19f   :  { %v1298_v54 = vadd.f32 %v1297_v11, %v1296_v7  ;;  %v1222_v7 = vmul.f32 %v3213_v47, %v3213_v47  ;;  %v1307_v14 = vsel %vm998_vm0, %v1221_v35, 0.0 }
 0x1a1   :  { %v1300_v45 = vadd.f32 %v1299_v17, %v1298_v54  ;;  %v1223_v54 = vmul.f32 %v3220_v50, %v3220_v50  ;;  %v1309_v13 = vsel %vm998_vm0, %v1222_v7, 0.0 }
 0x1a3   :  { %v1302_v56 = vadd.f32 %v1301_v52, %v1300_v45  ;;  %v1224_v45 = vmul.f32 %v3227_v57, %v3227_v57  ;;  %v1311_v35 = vsel %vm998_vm0, %v1223_v54, 0.0 }
 0x1a5   :  { %v1304_v61 = vadd.f32 %v1303_v48, %v1302_v56  ;;  %v1225_v56 = vmul.f32 %v3234_v59, %v3234_v59  ;;  %v1313_v7 = vsel %vm998_vm0, %v1224_v45, 0.0 }
 0x1a7   :  { %v1306_v11 = vadd.f32 %v1305_v34, %v1304_v61  ;;  %v1226_v61 = vmul.f32 %v3241_v1, %v3241_v1  ;;  %v1315_v54 = vsel %vm998_vm0, %v1225_v56, 0.0 }
 0x1a9   :  { %v1308_v17 = vadd.f32 %v1307_v14, %v1306_v11  ;;  %v1227_v11 = vmul.f32 %v3248_v12, %v3248_v12  ;;  %v1317_v45 = vsel %vm998_vm0, %v1226_v61, 0.0 }
 0x1ab   :  { %v1310_v52 = vadd.f32 %v1309_v13, %v1308_v17  ;;  %v1228_v17 = vmul.f32 %v3255_v30, %v3255_v30  ;;  %v1319_v56 = vsel %vm998_vm0, %v1227_v11, 0.0 }
 0x1ad   :  { %v1312_v48 = vadd.f32 %v1311_v35, %v1310_v52  ;;  %v1229_v52 = vmul.f32 %v3262_v33, %v3262_v33  ;;  %v1321_v61 = vsel %vm998_vm0, %v1228_v17, 0.0 }
 0x1af   :  { %v1314_v34 = vadd.f32 %v1313_v7, %v1312_v48  ;;  %v1230_v48 = vmul.f32 %v3269_v38, %v3269_v38  ;;  %v1323_v11 = vsel %vm998_vm0, %v1229_v52, 0.0 }
 0x1b1   :  { %v1316_v14 = vadd.f32 %v1315_v54, %v1314_v34  ;;  %v1231_v34 = vmul.f32 %v3276_v18, %v3276_v18  ;;  %v1325_v17 = vsel %vm998_vm0, %v1230_v48, 0.0 }
 0x1b3   :  { %v1318_v13 = vadd.f32 %v1317_v45, %v1316_v14  ;;  %v1232_v14 = vmul.f32 %v3283_v42, %v3283_v42  ;;  %v1327_v52 = vsel %vm998_vm0, %v1231_v34, 0.0 }
 0x1b5   :  { %v1320_v35 = vadd.f32 %v1319_v56, %v1318_v13  ;;  %v1233_v13 = vmul.f32 %v3290_v58, %v3290_v58  ;;  %v1329_v48 = vsel %vm998_vm0, %v1232_v14, 0.0 }
 0x1b7   :  { %v1322_v7 = vadd.f32 %v1321_v61, %v1320_v35  ;;  %v1234_v35 = vmul.f32 %v3297_v10, %v3297_v10  ;;  %v1331_v34 = vsel %vm998_vm0, %v1233_v13, 0.0 }
 0x1b9   :  { %v1324_v54 = vadd.f32 %v1323_v11, %v1322_v7  ;;  %v4608_v7 = vld [vmem:[#allocation2_spill] sm:$0xff]  ;;  %v1235_v11 = vmul.f32 %v3304_v16, %v3304_v16  ;;  %v1333_v14 = vsel %vm998_vm0, %v1234_v35, 0.0 }
 0x1ba   :  { %v3318_v40 = vsub.f32 %v4608_v7, %v3049_v63 }
 0x1bb   :  { %v1326_v45 = vadd.f32 %v1325_v17, %v1324_v54  ;;  %v4609_v17 = vld [vmem:[#allocation3_spill] sm:$0xff]  ;;  %v1335_v13 = vsel %vm998_vm0, %v1235_v11, 0.0 }
 0x1bc   :  { %v3325_v53 = vsub.f32 %v4609_v17, %v3049_v63  ;;  %v1237_v7 = vmul.f32 %v3318_v40, %v3318_v40 }
 0x1bd   :  { %v1328_v56 = vadd.f32 %v1327_v52, %v1326_v45  ;;  %v1236_v45 = vmul.f32 %v3311_v9, %v3311_v9 }
 0x1be   :  { %v1238_v9 = vmul.f32 %v3325_v53, %v3325_v53  ;;  %v1339_v11 = vsel %vm998_vm0, %v1237_v7, 0.0 }
 0x1bf   :  { %v1330_v61 = vadd.f32 %v1329_v48, %v1328_v56  ;;  %v4610_v56 = vld [vmem:[#allocation4_spill] sm:$0xff]  ;;  %v1337_v35 = vsel %vm998_vm0, %v1236_v45, 0.0 }
 0x1c0   :  { %v3332_v48 = vsub.f32 %v4610_v56, %v3049_v63  ;;  %v1341_v45 = vsel %vm998_vm0, %v1238_v9, 0.0 }
 0x1c1   :  { %v1332_v54 = vadd.f32 %v1331_v34, %v1330_v61  ;;  %v4612_v34 = vld [vmem:[#allocation5_spill] sm:$0xff] }
 0x1c2   :  { %4611 = vst [vmem:[#allocation2_spill] sm:$0xff] %v3332_v48  ;;  %v3339_v17 = vsub.f32 %v4612_v34, %v3049_v63  ;;  %v1239_v56 = vmul.f32 %v3332_v48, %v3332_v48 }
 0x1c3   :  { %v1334_v52 = vadd.f32 %v1333_v14, %v1332_v54  ;;  %v3346_v14 = vsub.f32 %v2940_v51, %v3049_v63 }
 0x1c4   :  { %v1240_v34 = vmul.f32 %v3339_v17, %v3339_v17  ;;  %v1343_v7 = vsel %vm998_vm0, %v1239_v56, 0.0 }
 0x1c5   :  { %v1336_v61 = vadd.f32 %v1335_v13, %v1334_v52  ;;  %4613 = vst [vmem:[#allocation3_spill] sm:$0xff] %v3346_v14  ;;  %v3353_v13 = vsub.f32 %v2947_v22, %v3049_v63  ;;  %v1241_v48 = vmul.f32 %v3346_v14, %v3346_v14  ;;  %v3367_v22 = vsub.f32 %v2955_v24, %v3049_v63 }
 0x1c6   :  { %v1345_v9 = vsel %vm998_vm0, %v1240_v34, 0.0 }
 0x1c7   :  { %v1338_v54 = vadd.f32 %v1337_v35, %v1336_v61  ;;  %4614 = vst [vmem:[#allocation4_spill] sm:$0xff] %v3353_v13  ;;  %v4615_v35 = vld [vmem:[#allocation6_spill] sm:$0xff]  ;;  %4616 = vst [vmem:[#allocation5_spill] sm:$0xff] %v3367_v22  ;;  %v1347_v56 = vsel %vm998_vm0, %v1241_v48, 0.0 }
 0x1c8   :  { %v3360_v51 = vsub.f32 %v4615_v35, %v3049_v63 }
 0x1c9   :  { %v1340_v52 = vadd.f32 %v1339_v11, %v1338_v54  ;;  %v1242_v11 = vmul.f32 %v3353_v13, %v3353_v13  ;;  %v1244_v13 = vmul.f32 %v3367_v22, %v3367_v22 }
 0x1ca   :  { %v1243_v14 = vmul.f32 %v3360_v51, %v3360_v51 }
 0x1cb   :  { %v1342_v61 = vadd.f32 %v1341_v45, %v1340_v52  ;;  %v4617_v45 = vld [vmem:[#allocation7_spill] sm:$0xff]  ;;  %v1349_v34 = vsel %vm998_vm0, %v1242_v11, 0.0  ;;  %v1353_v11 = vsel %vm998_vm0, %v1244_v13, 0.0 }
 0x1cc   :  { %v3374_v35 = vsub.f32 %v4617_v45, %v3049_v63  ;;  %v1351_v48 = vsel %vm998_vm0, %v1243_v14, 0.0 }
 0x1cd   :  { %v1344_v54 = vadd.f32 %v1343_v7, %v1342_v61  ;;  %v4618_v7 = vld [vmem:[#allocation8_spill] sm:$0xff] }
 0x1ce   :  { %v3381_v24 = vsub.f32 %v4618_v7, %v3049_v63  ;;  %v1245_v45 = vmul.f32 %v3374_v35, %v3374_v35 }
 0x1cf   :  { %v1346_v52 = vadd.f32 %v1345_v9, %v1344_v54  ;;  %v3388_v9 = vsub.f32 %v2972_v60, %v3049_v63  ;;  %v3402_v60 = vsub.f32 %v2981_v5, %v3049_v63  ;;  %v3416_v5 = vsub.f32 %v2993_v39, %v3049_v63 }
 0x1d0   :  { %4619 = vst [vmem:[#allocation6_spill] sm:$0xff] %v3381_v24  ;;  %v1246_v22 = vmul.f32 %v3381_v24, %v3381_v24  ;;  %v1355_v14 = vsel %vm998_vm0, %v1245_v45, 0.0 }
 0x1d1   :  { %v1348_v61 = vadd.f32 %v1347_v56, %v1346_v52  ;;  %v4620_v56 = vld [vmem:[#allocation9_spill] sm:$0xff]  ;;  %4622 = vst [vmem:[#allocation8_spill] sm:$0xff] %v3402_v60 }
 0x1d2   :  { %v3395_v7 = vsub.f32 %v4620_v56, %v3049_v63  ;;  %v1357_v13 = vsel %vm998_vm0, %v1246_v22, 0.0 }
 0x1d3   :  { %v1350_v54 = vadd.f32 %v1349_v34, %v1348_v61  ;;  %v1247_v34 = vmul.f32 %v3388_v9, %v3388_v9 }
 0x1d4   :  { %4621 = vst [vmem:[#allocation7_spill] sm:$0xff] %v3395_v7  ;;  %v1248_v24 = vmul.f32 %v3395_v7, %v3395_v7 }
 0x1d5   :  { %v1352_v52 = vadd.f32 %v1351_v48, %v1350_v54  ;;  %v4623_v48 = vld [vmem:[#allocation10_spill] sm:$0xff]  ;;  %v1359_v45 = vsel %vm998_vm0, %v1247_v34, 0.0 }
 0x1d6   :  { %v3409_v56 = vsub.f32 %v4623_v48, %v3049_v63  ;;  %4625 = vst [vmem:[#allocation10_spill] sm:$0xff] %v3416_v5  ;;  %v1361_v22 = vsel %vm998_vm0, %v1248_v24, 0.0 }
 0x1d7   :  { %v1354_v61 = vadd.f32 %v1353_v11, %v1352_v52  ;;  %v1249_v11 = vmul.f32 %v3402_v60, %v3402_v60  ;;  %v1251_v60 = vmul.f32 %v3416_v5, %v3416_v5 }
 0x1d8   :  { %4624 = vst [vmem:[#allocation9_spill] sm:$0xff] %v3409_v56  ;;  %v1250_v7 = vmul.f32 %v3409_v56, %v3409_v56 }
 0x1d9   :  { %v1356_v54 = vadd.f32 %v1355_v14, %v1354_v61  ;;  %v4626_v14 = vld [vmem:[#allocation11_spill] sm:$0xff]  ;;  %v1363_v34 = vsel %vm998_vm0, %v1249_v11, 0.0  ;;  %v1367_v11 = vsel %vm998_vm0, %v1251_v60, 0.0 }
 0x1da   :  { %v3423_v48 = vsub.f32 %v4626_v14, %v3049_v63  ;;  %v1365_v24 = vsel %vm998_vm0, %v1250_v7, 0.0 }
 0x1db   :  { %v1358_v52 = vadd.f32 %v1357_v13, %v1356_v54  ;;  %v4628_v13 = vld [vmem:[#allocation12_spill] sm:$0xff] }
 0x1dc   :  { %4627 = vst [vmem:[#allocation11_spill] sm:$0xff] %v3423_v48  ;;  %v3430_v39 = vsub.f32 %v4628_v13, %v3049_v63  ;;  %v1252_v56 = vmul.f32 %v3423_v48, %v3423_v48 }
 0x1dd   :  { %v1360_v61 = vadd.f32 %v1359_v45, %v1358_v52  ;;  %v4630_v45 = vld [vmem:[#allocation13_spill] sm:$0xff] }
 0x1de   :  { %4629 = vst [vmem:[#allocation12_spill] sm:$0xff] %v3430_v39  ;;  %v3437_v14 = vsub.f32 %v4630_v45, %v3049_v63  ;;  %v1253_v5 = vmul.f32 %v3430_v39, %v3430_v39  ;;  %v1369_v7 = vsel %vm998_vm0, %v1252_v56, 0.0 }
 0x1df   :  { %v1362_v54 = vadd.f32 %v1361_v22, %v1360_v61  ;;  %v4632_v22 = vld [vmem:[#allocation14_spill] sm:$0xff] }
 0x1e0   :  { %4631 = vst [vmem:[#allocation13_spill] sm:$0xff] %v3437_v14  ;;  %v3444_v13 = vsub.f32 %v4632_v22, %v3049_v63  ;;  %v1254_v48 = vmul.f32 %v3437_v14, %v3437_v14  ;;  %v1371_v60 = vsel %vm998_vm0, %v1253_v5, 0.0 }
 0x1e1   :  { %v1364_v52 = vadd.f32 %v1363_v34, %v1362_v54  ;;  %v4634_v34 = vld [vmem:[#allocation15_spill] sm:$0xff] }
 0x1e2   :  { %4633 = vst [vmem:[#allocation14_spill] sm:$0xff] %v3444_v13  ;;  %v3451_v45 = vsub.f32 %v4634_v34, %v3049_v63  ;;  %v1255_v39 = vmul.f32 %v3444_v13, %v3444_v13  ;;  %v1373_v56 = vsel %vm998_vm0, %v1254_v48, 0.0 }
 0x1e3   :  { %v1366_v61 = vadd.f32 %v1365_v24, %v1364_v52  ;;  %v4636_v24 = vld [vmem:[#allocation16_spill] sm:$0xff] }
 0x1e4   :  { %4635 = vst [vmem:[#allocation15_spill] sm:$0xff] %v3451_v45  ;;  %v3458_v22 = vsub.f32 %v4636_v24, %v3049_v63  ;;  %v1256_v14 = vmul.f32 %v3451_v45, %v3451_v45  ;;  %v1375_v5 = vsel %vm998_vm0, %v1255_v39, 0.0 }
 0x1e5   :  { %v1368_v54 = vadd.f32 %v1367_v11, %v1366_v61  ;;  %v4638_v11 = vld [vmem:[#allocation17_spill] sm:$0xff] }
 0x1e6   :  { %4637 = vst [vmem:[#allocation16_spill] sm:$0xff] %v3458_v22  ;;  %v3465_v34 = vsub.f32 %v4638_v11, %v3049_v63  ;;  %v1257_v24 = vmul.f32 %v3458_v22, %v3458_v22  ;;  %v1377_v48 = vsel %vm998_vm0, %v1256_v14, 0.0 }
 0x1e7   :  { %v1370_v52 = vadd.f32 %v1369_v7, %v1368_v54  ;;  %v3472_v7 = vsub.f32 %v3035_v20, %v3049_v63  ;;  %v3486_v20 = vsub.f32 %v3045_v19, %v3049_v63 }
 0x1e8   :  { %4639 = vst [vmem:[#allocation17_spill] sm:$0xff] %v3465_v34  ;;  %v1258_v11 = vmul.f32 %v3465_v34, %v3465_v34  ;;  %v1379_v39 = vsel %vm998_vm0, %v1257_v24, 0.0 }
 0x1e9   :  { %v1372_v61 = vadd.f32 %v1371_v60, %v1370_v52  ;;  %4640 = vst [vmem:[#allocation19_spill] sm:$0xff] %v3472_v7  ;;  %v3479_v60 = vsub.f32 %v3038_v43, %v3049_v63  ;;  %4642 = vst [vmem:[#allocation21_spill] sm:$0xff] %v3486_v20  ;;  %v1261_v14 = vmul.f32 %v3486_v20, %v3486_v20 }
 0x1eb   :  { %v1374_v54 = vadd.f32 %v1373_v56, %v1372_v61  ;;  %4641 = vst [vmem:[#allocation20_spill] sm:$0xff] %v3479_v60  ;;  %v1259_v56 = vmul.f32 %v3472_v7, %v3472_v7  ;;  %v1260_v43 = vmul.f32 %v3479_v60, %v3479_v60  ;;  %v1387_v7 = vsel %vm998_vm0, %v1261_v14, 0.0 }
 0x1ed   :  { %v1376_v52 = vadd.f32 %v1375_v5, %v1374_v54  ;;  %v1381_v5 = vsel %vm998_vm0, %v1258_v11, 0.0  ;;  %v1385_v63 = vsel %vm998_vm0, %v1260_v43, 0.0 }
 0x1ef   :  { %v1378_v61 = vadd.f32 %v1377_v48, %v1376_v52  ;;  %v1383_v52 = vsel %vm998_vm0, %v1259_v56, 0.0 }
 0x1f1   :  { %v1380_v54 = vadd.f32 %v1379_v39, %v1378_v61 }
 0x1f3   :  { %v1382_v22 = vadd.f32 %v1381_v5, %v1380_v54  ;;  %v1401_v5 = vlaneseq }
 0x1f5   :  { %v1384_v48 = vadd.f32 %v1383_v52, %v1382_v22  ;;  %v1402_v20 = vshrl.u32 %v1401_v5, 7  ;;  %v1396_v22 = vld [vmem:[%s4536_s3] sm:$0x1] }
 0x1f7   :  { %v1386_v19 = vadd.f32 %v1385_v63, %v1384_v48  ;;  %v1403_v56 = vsub.s32 0, %v1402_v20  ;;  %v4643_v20 = vld [vmem:[#allocation18_spill] sm:$0xff]  ;;  %v4645_v63 = vld [vmem:[#allocation3_spill] sm:$0xff] }
 0x1f8   :  { %v4644_v48 = vld [vmem:[#allocation2_spill] sm:$0xff] }
 0x1f9   :  { %v1388_v34 = vadd.f32 %v1387_v7, %v1386_v19 }
 0x1fb   :  { %v1389_v24 = vrot.slane %v1388_v34, 4 }
 0x1fd   :  { %v1390_v61 = vadd.f32 %v1389_v24, %v1388_v34  ;;  %v4646_v24 = vld [vmem:[#allocation4_spill] sm:$0xff] }
 0x1ff   :  { %v1391_v39 = vrot.slane %v1390_v61, 2 }
 0x201   :  { %v1392_v45 = vadd.f32 %v1391_v39, %v1390_v61  ;;  %v4647_v61 = vld [vmem:[#allocation5_spill] sm:$0xff] }
 0x203   :  { %v1393_v60 = vrot.slane %v1392_v45, 1 }
 0x205   :  { %v1394_v13 = vadd.f32 %v1393_v60, %v1392_v45 }
 0x207   :  { %v1395_v11 = vmul.f32 0.001953125, %v1394_v13 }
 0x209   :  { %v1397_v54 = vadd.f32 1e-05, %v1395_v11  ;;  %v4648_v11 = vld [vmem:[#allocation6_spill] sm:$0xff] }
 0x20b   :  { %2476 = vrsqrt.f32 %v1397_v54 }
 0x218   :  { %v2477_v43 = vpop.eup %2476 }
 0x219   :  { %v1399_v52 = vmul.f32 %v2477_v43, %v1396_v22  ;;  %v4649_v22 = vld [vmem:[#allocation7_spill] sm:$0xff] }
 0x21b   :  { %v3502_v14 = vrot.slane %v1399_v52, %v1403_v56  ;;  %v4650_v56 = vld [vmem:[#allocation8_spill] sm:$0xff]  ;;  %v4652_v52 = vld [vmem:[#allocation9_spill] sm:$0xff] }
 0x21d   :  { %v3506_v34 = vmul.f32 %v3502_v14, %v3053_v26  ;;  %v3510_v13 = vmul.f32 %v3502_v14, %v3057_v2  ;;  %v3514_v45 = vmul.f32 %v3502_v14, %v3061_v28  ;;  %v3518_v7 = vmul.f32 %v3502_v14, %v3065_v36 }
 0x21e   :  { %v3522_v60 = vmul.f32 %v3502_v14, %v3073_v4  ;;  %v3526_v26 = vmul.f32 %v3502_v14, %v3079_v6  ;;  %v3530_v2 = vmul.f32 %v3502_v14, %v3087_v23  ;;  %v3534_v28 = vmul.f32 %v3502_v14, %v3094_v27 }
 0x21f   :  { %v3538_v36 = vmul.f32 %v3502_v14, %v3101_v25  ;;  %v3542_v4 = vmul.f32 %v3502_v14, %v3108_v31  ;;  %v3546_v6 = vmul.f32 %v3502_v14, %v3115_v37  ;;  %v3550_v23 = vmul.f32 %v3502_v14, %v3122_v46 }
 0x220   :  { %v3554_v27 = vmul.f32 %v3502_v14, %v3129_v44  ;;  %v3558_v25 = vmul.f32 %v3502_v14, %v3136_v49  ;;  %v3562_v31 = vmul.f32 %v3502_v14, %v3143_v55  ;;  %v3566_v37 = vmul.f32 %v3502_v14, %v3150_v0 }
 0x221   :  { %v3570_v46 = vmul.f32 %v3502_v14, %v3157_v62  ;;  %v3574_v44 = vmul.f32 %v3502_v14, %v3164_v3  ;;  %v3578_v49 = vmul.f32 %v3502_v14, %v3171_v15  ;;  %v3582_v55 = vmul.f32 %v3502_v14, %v3178_v21 }
 0x222   :  { %v3586_v0 = vmul.f32 %v3502_v14, %v3185_v29  ;;  %v3590_v62 = vmul.f32 %v3502_v14, %v3192_v32  ;;  %v3594_v3 = vmul.f32 %v3502_v14, %v3199_v8  ;;  %v3598_v15 = vmul.f32 %v3502_v14, %v3206_v41 }
 0x223   :  { %v3602_v21 = vmul.f32 %v3502_v14, %v3213_v47  ;;  %v3606_v29 = vmul.f32 %v3502_v14, %v3220_v50  ;;  %v3610_v32 = vmul.f32 %v3502_v14, %v3227_v57  ;;  %v3614_v8 = vmul.f32 %v3502_v14, %v3234_v59 }
 0x224   :  { %v3618_v41 = vmul.f32 %v3502_v14, %v3241_v1  ;;  %v3622_v47 = vmul.f32 %v3502_v14, %v3248_v12  ;;  %v3626_v50 = vmul.f32 %v3502_v14, %v3255_v30  ;;  %v3630_v57 = vmul.f32 %v3502_v14, %v3262_v33 }
 0x225   :  { %v3634_v59 = vmul.f32 %v3502_v14, %v3269_v38  ;;  %v3638_v1 = vmul.f32 %v3502_v14, %v3276_v18  ;;  %v3642_v12 = vmul.f32 %v3502_v14, %v3283_v42  ;;  %v3646_v30 = vmul.f32 %v3502_v14, %v3290_v58 }
 0x226   :  { %v3650_v33 = vmul.f32 %v3502_v14, %v3297_v10  ;;  %v3654_v38 = vmul.f32 %v3502_v14, %v3304_v16  ;;  %v3658_v18 = vmul.f32 %v3502_v14, %v4643_v20  ;;  %v3662_v42 = vmul.f32 %v3502_v14, %v3318_v40  ;;  %v4654_v20 = vld [vmem:[#allocation10_spill] sm:$0xff] }
 0x227   :  { %v3666_v58 = vmul.f32 %v3502_v14, %v3325_v53  ;;  %v3670_v10 = vmul.f32 %v3502_v14, %v4644_v48  ;;  %v3674_v16 = vmul.f32 %v3502_v14, %v3339_v17  ;;  %v3678_v19 = vmul.f32 %v3502_v14, %v4645_v63  ;;  %v4656_v63 = vld [vmem:[#allocation11_spill] sm:$0xff] }
 0x228   :  { %v3682_v40 = vmul.f32 %v3502_v14, %v4646_v24  ;;  %v3686_v53 = vmul.f32 %v3502_v14, %v3360_v51  ;;  %v3690_v39 = vmul.f32 %v3502_v14, %v4647_v61  ;;  %v3694_v17 = vmul.f32 %v3502_v14, %v3374_v35  ;;  %v4658_v24 = vld [vmem:[#allocation12_spill] sm:$0xff] }
 0x229   :  { %v3698_v54 = vmul.f32 %v3502_v14, %v4648_v11  ;;  %v3702_v5 = vmul.f32 %v3502_v14, %v3388_v9  ;;  %v3706_v51 = vmul.f32 %v3502_v14, %v4649_v22  ;;  %v3710_v43 = vmul.f32 %v3502_v14, %v4650_v56  ;;  %v3731_v11 = vld [vmem:[%s4537_s4] ss:$0 sm:$0xff]  ;;  %v4660_v22 = vld [vmem:[#allocation13_spill] sm:$0xff] }
 0x22a   :  { %v3714_v35 = vmul.f32 %v3502_v14, %v4652_v52  ;;  %v3718_v48 = vmul.f32 %v3502_v14, %v4654_v20  ;;  %v3722_v9 = vmul.f32 %v3502_v14, %v4656_v63  ;;  %v3726_v61 = vmul.f32 %v3502_v14, %v4658_v24  ;;  %v4662_v52 = vld [vmem:[#allocation14_spill] sm:$0xff] }
 0x22b   :  { %4651 = vst [vmem:[#allocation18_spill] sm:$0xff] %v3710_v43  ;;  %v3735_v56 = vmul.f32 %v3502_v14, %v4660_v22  ;;  %v3739_v20 = vmul.f32 %v3502_v14, %v4662_v52  ;;  %v4667_v43 = vld [vmem:[#allocation19_spill] sm:$0xff] }
 0x22c   :  { %4653 = vst [vmem:[#allocation2_spill] sm:$0xff] %v3714_v35  ;;  %4655 = vst [vmem:[#allocation3_spill] sm:$0xff] %v3718_v48  ;;  %v4664_v48 = vld [vmem:[#allocation15_spill] sm:$0xff]  ;;  %v3755_v22 = vmul.f32 %v3502_v14, %v4667_v43  ;;  %v3775_v43 = vadd.f32 %v3731_v11, %v3514_v45  ;;  %v3795_v45 = vadd.f32 %v3731_v11, %v3534_v28 }
 0x22d   :  { %4657 = vst [vmem:[#allocation4_spill] sm:$0xff] %v3722_v9  ;;  %4659 = vst [vmem:[#allocation5_spill] sm:$0xff] %v3726_v61  ;;  %v3743_v63 = vmul.f32 %v3502_v14, %v4664_v48  ;;  %v4665_v9 = vld [vmem:[#allocation16_spill] sm:$0xff]  ;;  %v4666_v61 = vld [vmem:[#allocation17_spill] sm:$0xff]  ;;  %v3815_v28 = vadd.f32 %v3731_v11, %v3554_v27  ;;  %v3835_v27 = vadd.f32 %v3731_v11, %v3574_v44 }
 0x22e   :  { %4661 = vst [vmem:[#allocation6_spill] sm:$0xff] %v3735_v56  ;;  %4663 = vst [vmem:[#allocation7_spill] sm:$0xff] %v3739_v20  ;;  %v3747_v24 = vmul.f32 %v3502_v14, %v4665_v9  ;;  %v3751_v35 = vmul.f32 %v3502_v14, %v4666_v61  ;;  %v4668_v56 = vld [vmem:[#allocation20_spill] sm:$0xff]  ;;  %v4669_v20 = vld [vmem:[#allocation21_spill] sm:$0xff]  ;;  %v3767_v9 = vadd.f32 %v3731_v11, %v3506_v34 }
 0x22f   :  { %v3759_v52 = vmul.f32 %v3502_v14, %v4668_v56  ;;  %v3763_v48 = vmul.f32 %v3502_v14, %v4669_v20  ;;  %v3771_v61 = vadd.f32 %v3731_v11, %v3510_v13  ;;  %v3779_v56 = vadd.f32 %v3731_v11, %v3518_v7 }
 0x230   :  { %v3783_v14 = vadd.f32 %v3731_v11, %v3522_v60  ;;  %v3787_v34 = vadd.f32 %v3731_v11, %v3526_v26  ;;  %v3791_v13 = vadd.f32 %v3731_v11, %v3530_v2  ;;  %v3799_v7 = vadd.f32 %v3731_v11, %v3538_v36 }
 0x231   :  { %v3803_v60 = vadd.f32 %v3731_v11, %v3542_v4  ;;  %v3807_v26 = vadd.f32 %v3731_v11, %v3546_v6  ;;  %v3811_v2 = vadd.f32 %v3731_v11, %v3550_v23  ;;  %v3819_v36 = vadd.f32 %v3731_v11, %v3558_v25 }
 0x232   :  { %v3823_v4 = vadd.f32 %v3731_v11, %v3562_v31  ;;  %v3827_v6 = vadd.f32 %v3731_v11, %v3566_v37  ;;  %v3831_v23 = vadd.f32 %v3731_v11, %v3570_v46  ;;  %v3839_v25 = vadd.f32 %v3731_v11, %v3578_v49  ;;  %v4680_v20 = vld [vmem:[#allocation18_spill] sm:$0xff] }
 0x233   :  { %v3843_v31 = vadd.f32 %v3731_v11, %v3582_v55  ;;  %v3847_v37 = vadd.f32 %v3731_v11, %v3586_v0  ;;  %v3851_v46 = vadd.f32 %v3731_v11, %v3590_v62  ;;  %v3855_v44 = vadd.f32 %v3731_v11, %v3594_v3 }
 0x234   :  { %v3859_v49 = vadd.f32 %v3731_v11, %v3598_v15  ;;  %v3863_v55 = vadd.f32 %v3731_v11, %v3602_v21  ;;  %v3867_v0 = vadd.f32 %v3731_v11, %v3606_v29  ;;  %v3871_v62 = vadd.f32 %v3731_v11, %v3610_v32 }
 0x235   :  { %v3875_v3 = vadd.f32 %v3731_v11, %v3614_v8  ;;  %v3879_v15 = vadd.f32 %v3731_v11, %v3618_v41  ;;  %v3883_v21 = vadd.f32 %v3731_v11, %v3622_v47  ;;  %v3887_v29 = vadd.f32 %v3731_v11, %v3626_v50 }
 0x236   :  { %v3891_v32 = vadd.f32 %v3731_v11, %v3630_v57  ;;  %v3895_v8 = vadd.f32 %v3731_v11, %v3634_v59  ;;  %v3899_v41 = vadd.f32 %v3731_v11, %v3638_v1  ;;  %v3903_v47 = vadd.f32 %v3731_v11, %v3642_v12 }
 0x237   :  { %v3907_v50 = vadd.f32 %v3731_v11, %v3646_v30  ;;  %v3911_v57 = vadd.f32 %v3731_v11, %v3650_v33  ;;  %v3915_v59 = vadd.f32 %v3731_v11, %v3654_v38  ;;  %v3919_v1 = vadd.f32 %v3731_v11, %v3658_v18 }
 0x238   :  { %v3923_v12 = vadd.f32 %v3731_v11, %v3662_v42  ;;  %v3927_v30 = vadd.f32 %v3731_v11, %v3666_v58  ;;  %v3931_v33 = vadd.f32 %v3731_v11, %v3670_v10  ;;  %v3935_v38 = vadd.f32 %v3731_v11, %v3674_v16 }
 0x239   :  { %4670 = vst [vmem:[#allocation8_spill] sm:$0xff] %v3911_v57  ;;  %4671 = vst [vmem:[#allocation9_spill] sm:$0xff] %v3915_v59  ;;  %v3939_v18 = vadd.f32 %v3731_v11, %v3678_v19  ;;  %v3943_v42 = vadd.f32 %v3731_v11, %v3682_v40  ;;  %v3947_v58 = vadd.f32 %v3731_v11, %v3686_v53 }
 0x23a   :  { %4672 = vst [vmem:[#allocation10_spill] sm:$0xff] %v3919_v1  ;;  %4673 = vst [vmem:[#allocation11_spill] sm:$0xff] %v3923_v12  ;;  %v3951_v10 = vadd.f32 %v3731_v11, %v3690_v39  ;;  %v3955_v16 = vadd.f32 %v3731_v11, %v3694_v17  ;;  %v3959_v19 = vadd.f32 %v3731_v11, %v3698_v54 }
 0x23b   :  { %4674 = vst [vmem:[#allocation12_spill] sm:$0xff] %v3927_v30  ;;  %v3963_v40 = vadd.f32 %v3731_v11, %v3702_v5  ;;  %v3967_v53 = vadd.f32 %v3731_v11, %v3706_v51  ;;  %v3971_v39 = vadd.f32 %v3731_v11, %v4680_v20 }
 0x23c   :  { %4675 = vst [vmem:[#allocation13_spill] sm:$0xff] %v3951_v10  ;;  %4676 = vst [vmem:[#allocation14_spill] sm:$0xff] %v3955_v16  ;;  %v4682_v10 = vld [vmem:[#allocation2_spill] sm:$0xff]  ;;  %v4683_v16 = vld [vmem:[#allocation3_spill] sm:$0xff] }
 0x23d   :  { %4677 = vst [vmem:[#allocation15_spill] sm:$0xff] %v3959_v19  ;;  %4678 = vst [vmem:[#allocation16_spill] sm:$0xff] %v3963_v40  ;;  %v3975_v17 = vadd.f32 %v3731_v11, %v4682_v10  ;;  %v3979_v54 = vadd.f32 %v3731_v11, %v4683_v16  ;;  %v4684_v19 = vld [vmem:[#allocation4_spill] sm:$0xff]  ;;  %v4685_v40 = vld [vmem:[#allocation5_spill] sm:$0xff]  ;;  %v3999_v16 = vadd.f32 %v3731_v11, %v3743_v63 }
 0x23e   :  { %4679 = vst [vmem:[#allocation17_spill] sm:$0xff] %v3967_v53  ;;  %4681 = vst [vmem:[#allocation19_spill] sm:$0xff] %v3971_v39  ;;  %v3983_v5 = vadd.f32 %v3731_v11, %v4684_v19  ;;  %v3987_v51 = vadd.f32 %v3731_v11, %v4685_v40  ;;  %v4686_v53 = vld [vmem:[#allocation6_spill] sm:$0xff]  ;;  %v4687_v39 = vld [vmem:[#allocation7_spill] sm:$0xff]  ;;  %v4003_v19 = vadd.f32 %v3731_v11, %v3747_v24 }
 0x23f   :  { %v3991_v20 = vadd.f32 %v3731_v11, %v4686_v53  ;;  %v3995_v10 = vadd.f32 %v3731_v11, %v4687_v39  ;;  %4688 = vst [vmem:[#allocation20_spill] sm:$0xff] %v3999_v16  ;;  %v4007_v40 = vadd.f32 %v3731_v11, %v3751_v35  ;;  %v4011_v53 = vadd.f32 %v3731_v11, %v3755_v22 }
 0x240   :  { %4689 = vst [vmem:[#allocation21_spill] sm:$0xff] %v4003_v19  ;;  %v4015_v39 = vadd.f32 %v3731_v11, %v3759_v52  ;;  %v4019_v63 = vadd.f32 %v3731_v11, %v3763_v48  ;;  %v4700_v59 = vmov %v4003_v19  ;;  %v4707_v48 = vmax.f32 %v3779_v56, 0.0 }
 0x241   :  { %4690 = vst [vmem:[#allocation18_spill] sm:$0xff] %v4007_v40  ;;  %4691 = vst [vmem:[#allocation2_spill] sm:$0xff] %v4011_v53  ;;  %v4701_v1 = vmov %v4007_v40  ;;  %v4702_v12 = vmov %v4011_v53  ;;  %v4704_v40 = vmax.f32 %v3767_v9, 0.0  ;;  %v4705_v53 = vmax.f32 %v3771_v61, 0.0 }
 0x242   :  { %4692 = vst [vmem:[#allocation3_spill] sm:$0xff] %v4015_v39  ;;  %v4703_v30 = vmov %v4015_v39  ;;  %v4706_v39 = vmax.f32 %v3775_v43, 0.0  ;;  %v2159_v24 = vpack.c.bf16 %v4707_v48, %v4707_v48  ;;  %v4708_v19 = vmax.f32 %v3783_v14, 0.0 }
 0x243   :  { %v4693_v16 = vld [vmem:[#allocation13_spill] sm:$0xff]  ;;  %v2156_v22 = vpack.c.bf16 %v4704_v40, %v4704_v40  ;;  %v2157_v52 = vpack.c.bf16 %v4705_v53, %v4705_v53  ;;  %v4709_v9 = vmax.f32 %v3787_v34, 0.0  ;;  %v4710_v61 = vmax.f32 %v3791_v13, 0.0 }
 0x244   :  { %v2158_v11 = vpack.c.bf16 %v4706_v39, %v4706_v39  ;;  %v2160_v35 = vpack.c.bf16 %v4708_v19, %v4708_v19  ;;  %v4711_v43 = vmax.f32 %v3795_v45, 0.0  ;;  %v4712_v56 = vmax.f32 %v3799_v7, 0.0  ;;  %1865 = vst.msk [vmem:[%s4538_s5 + $0xc] sm:$0xf] %vm1861_vm1, %v2159_v24 }
 0x245   :  { %v2161_v40 = vpack.c.bf16 %v4709_v9, %v4709_v9  ;;  %v2162_v53 = vpack.c.bf16 %v4710_v61, %v4710_v61  ;;  %v4713_v14 = vmax.f32 %v3803_v60, 0.0  ;;  %v4714_v34 = vmax.f32 %v3807_v26, 0.0  ;;  %1862 = vst.msk [vmem:[%s4538_s5] sm:$0xf] %vm1861_vm1, %v2156_v22  ;;  %1863 = vst.msk [vmem:[%s4538_s5 + $0x4] sm:$0xf] %vm1861_vm1, %v2157_v52 }
 0x246   :  { %v4699_v57 = vld [vmem:[#allocation20_spill] sm:$0xff]  ;;  %v2163_v39 = vpack.c.bf16 %v4711_v43, %v4711_v43  ;;  %v2164_v48 = vpack.c.bf16 %v4712_v56, %v4712_v56  ;;  %v4715_v13 = vmax.f32 %v3811_v2, 0.0  ;;  %1864 = vst.msk [vmem:[%s4538_s5 + $0x8] sm:$0xf] %vm1861_vm1, %v2158_v11  ;;  %v4716_v45 = vmax.f32 %v3815_v28, 0.0 }
 0x247   :  { %v2165_v19 = vpack.c.bf16 %v4713_v14, %v4713_v14  ;;  %v2166_v9 = vpack.c.bf16 %v4714_v34, %v4714_v34  ;;  %v4717_v60 = vmax.f32 %v3819_v36, 0.0  ;;  %v4718_v2 = vmax.f32 %v3823_v4, 0.0  ;;  %1866 = vst.msk [vmem:[%s4538_s5 + $0x10] sm:$0xf] %vm1861_vm1, %v2160_v35  ;;  %1867 = vst.msk [vmem:[%s4538_s5 + $0x14] sm:$0xf] %vm1861_vm1, %v2161_v40 }
 0x248   :  { %v2167_v61 = vpack.c.bf16 %v4715_v13, %v4715_v13  ;;  %v2168_v7 = vpack.c.bf16 %v4716_v45, %v4716_v45  ;;  %v4719_v52 = vmax.f32 %v3827_v6, 0.0  ;;  %1868 = vst.msk [vmem:[%s4538_s5 + $0x18] sm:$0xf] %vm1861_vm1, %v2162_v53  ;;  %1869 = vst.msk [vmem:[%s4538_s5 + $0x1c] sm:$0xf] %vm1861_vm1, %v2163_v39  ;;  %v4720_v28 = vmax.f32 %v3831_v23, 0.0 }
 0x249   :  { %v2169_v26 = vpack.c.bf16 %v4717_v60, %v4717_v60  ;;  %v2170_v22 = vpack.c.bf16 %v4718_v2, %v4718_v2  ;;  %v4721_v4 = vmax.f32 %v3835_v27, 0.0  ;;  %v4722_v24 = vmax.f32 %v3839_v25, 0.0  ;;  %1870 = vst.msk [vmem:[%s4538_s5 + $0x20] sm:$0xf] %vm1861_vm1, %v2164_v48  ;;  %1871 = vst.msk [vmem:[%s4538_s5 + $0x24] sm:$0xf] %vm1861_vm1, %v2165_v19 }
 0x24a   :  { %v2171_v11 = vpack.c.bf16 %v4719_v52, %v4719_v52  ;;  %v2172_v36 = vpack.c.bf16 %v4720_v28, %v4720_v28  ;;  %v4723_v40 = vmax.f32 %v3843_v31, 0.0  ;;  %1872 = vst.msk [vmem:[%s4538_s5 + $0x28] sm:$0xf] %vm1861_vm1, %v2166_v9  ;;  %1873 = vst.msk [vmem:[%s4538_s5 + $0x2c] sm:$0xf] %vm1861_vm1, %v2167_v61  ;;  %v4724_v23 = vmax.f32 %v3847_v37, 0.0 }
 0x24b   :  { %v2173_v6 = vpack.c.bf16 %v4721_v4, %v4721_v4  ;;  %v2174_v35 = vpack.c.bf16 %v4722_v24, %v4722_v24  ;;  %v4725_v25 = vmax.f32 %v3851_v46, 0.0  ;;  %v4726_v43 = vmax.f32 %v3855_v44, 0.0  ;;  %1874 = vst.msk [vmem:[%s4538_s5 + $0x30] sm:$0xf] %vm1861_vm1, %v2168_v7  ;;  %1875 = vst.msk [vmem:[%s4538_s5 + $0x34] sm:$0xf] %vm1861_vm1, %v2169_v26 }
 0x24c   :  { %v2175_v53 = vpack.c.bf16 %v4723_v40, %v4723_v40  ;;  %v2176_v27 = vpack.c.bf16 %v4724_v23, %v4724_v23  ;;  %v4727_v56 = vmax.f32 %v3859_v49, 0.0  ;;  %1876 = vst.msk [vmem:[%s4538_s5 + $0x38] sm:$0xf] %vm1861_vm1, %v2170_v22  ;;  %1877 = vst.msk [vmem:[%s4538_s5 + $0x3c] sm:$0xf] %vm1861_vm1, %v2171_v11  ;;  %v4728_v37 = vmax.f32 %v3863_v55, 0.0 }
 0x24d   :  { %v2177_v31 = vpack.c.bf16 %v4725_v25, %v4725_v25  ;;  %v2178_v39 = vpack.c.bf16 %v4726_v43, %v4726_v43  ;;  %v4729_v44 = vmax.f32 %v3867_v0, 0.0  ;;  %v4730_v14 = vmax.f32 %v3871_v62, 0.0  ;;  %1878 = vst.msk [vmem:[%s4538_s5 + $0x40] sm:$0xf] %vm1861_vm1, %v2172_v36  ;;  %1879 = vst.msk [vmem:[%s4538_s5 + $0x44] sm:$0xf] %vm1861_vm1, %v2173_v6 }
 0x24e   :  { %v2179_v48 = vpack.c.bf16 %v4727_v56, %v4727_v56  ;;  %v2180_v46 = vpack.c.bf16 %v4728_v37, %v4728_v37  ;;  %v4731_v34 = vmax.f32 %v3875_v3, 0.0  ;;  %1880 = vst.msk [vmem:[%s4538_s5 + $0x48] sm:$0xf] %vm1861_vm1, %v2174_v35  ;;  %1881 = vst.msk [vmem:[%s4538_s5 + $0x4c] sm:$0xf] %vm1861_vm1, %v2175_v53  ;;  %v4732_v55 = vmax.f32 %v3879_v15, 0.0 }
 0x24f   :  { %v2181_v49 = vpack.c.bf16 %v4729_v44, %v4729_v44  ;;  %v2182_v19 = vpack.c.bf16 %v4730_v14, %v4730_v14  ;;  %v4733_v62 = vmax.f32 %v3883_v21, 0.0  ;;  %v4734_v13 = vmax.f32 %v3887_v29, 0.0  ;;  %1882 = vst.msk [vmem:[%s4538_s5 + $0x50] sm:$0xf] %vm1861_vm1, %v2176_v27  ;;  %1883 = vst.msk [vmem:[%s4538_s5 + $0x54] sm:$0xf] %vm1861_vm1, %v2177_v31 }
 0x250   :  { %v2183_v9 = vpack.c.bf16 %v4731_v34, %v4731_v34  ;;  %v2184_v0 = vpack.c.bf16 %v4732_v55, %v4732_v55  ;;  %v4735_v45 = vmax.f32 %v3891_v32, 0.0  ;;  %1884 = vst.msk [vmem:[%s4538_s5 + $0x58] sm:$0xf] %vm1861_vm1, %v2178_v39  ;;  %1885 = vst.msk [vmem:[%s4538_s5 + $0x5c] sm:$0xf] %vm1861_vm1, %v2179_v48  ;;  %v4736_v15 = vmax.f32 %v3895_v8, 0.0 }
 0x251   :  { %v2185_v3 = vpack.c.bf16 %v4733_v62, %v4733_v62  ;;  %v2186_v61 = vpack.c.bf16 %v4734_v13, %v4734_v13  ;;  %v4737_v29 = vmax.f32 %v3899_v41, 0.0  ;;  %v4738_v60 = vmax.f32 %v3903_v47, 0.0  ;;  %1886 = vst.msk [vmem:[%s4538_s5 + $0x60] sm:$0xf] %vm1861_vm1, %v2180_v46  ;;  %1887 = vst.msk [vmem:[%s4538_s5 + $0x64] sm:$0xf] %vm1861_vm1, %v2181_v49 }
 0x252   :  { %v2187_v7 = vpack.c.bf16 %v4735_v45, %v4735_v45  ;;  %v2188_v21 = vpack.c.bf16 %v4736_v15, %v4736_v15  ;;  %v4739_v2 = vmax.f32 %v3907_v50, 0.0  ;;  %1888 = vst.msk [vmem:[%s4538_s5 + $0x68] sm:$0xf] %vm1861_vm1, %v2182_v19  ;;  %1889 = vst.msk [vmem:[%s4538_s5 + $0x6c] sm:$0xf] %vm1861_vm1, %v2183_v9  ;;  %v4740_v8 = vld [vmem:[#allocation8_spill] sm:$0xff] }
 0x253   :  { %v2189_v32 = vpack.c.bf16 %v4737_v29, %v4737_v29  ;;  %v2190_v26 = vpack.c.bf16 %v4738_v60, %v4738_v60  ;;  %v4741_v41 = vmax.f32 %v4740_v8, 0.0  ;;  %v4742_v50 = vld [vmem:[#allocation9_spill] sm:$0xff]  ;;  %v4744_v28 = vld [vmem:[#allocation10_spill] sm:$0xff]  ;;  %v4746_v6 = vld [vmem:[#allocation11_spill] sm:$0xff]  ;;  %1890 = vst.msk [vmem:[%s4538_s5 + $0x70] sm:$0xf] %vm1861_vm1, %v2184_v0 }
 0x254   :  { %v2191_v22 = vpack.c.bf16 %v4739_v2, %v4739_v2  ;;  %v4743_v52 = vmax.f32 %v4742_v50, 0.0  ;;  %v4745_v36 = vmax.f32 %v4744_v28, 0.0  ;;  %v4747_v24 = vmax.f32 %v4746_v6, 0.0  ;;  %1891 = vst.msk [vmem:[%s4538_s5 + $0x74] sm:$0xf] %vm1861_vm1, %v2185_v3  ;;  %v4748_v40 = vld [vmem:[#allocation12_spill] sm:$0xff] }
 0x255   :  { %v2192_v47 = vpack.c.bf16 %v4741_v41, %v4741_v41  ;;  %1892 = vst.msk [vmem:[%s4538_s5 + $0x78] sm:$0xf] %vm1861_vm1, %v2186_v61  ;;  %1893 = vst.msk [vmem:[%s4538_s5 + $0x7c] sm:$0xf] %vm1861_vm1, %v2187_v7  ;;  %v4749_v53 = vmax.f32 %v4748_v40, 0.0  ;;  %v4750_v27 = vmax.f32 %v3931_v33, 0.0 }
 0x256   :  { %v2193_v11 = vpack.c.bf16 %v4743_v52, %v4743_v52  ;;  %v2194_v4 = vpack.c.bf16 %v4745_v36, %v4745_v36  ;;  %v2195_v35 = vpack.c.bf16 %v4747_v24, %v4747_v24  ;;  %v4751_v31 = vmax.f32 %v3935_v38, 0.0  ;;  %1894 = vst.msk [vmem:[%s4538_s5 + $0x80] sm:$0xf] %vm1861_vm1, %v2188_v21  ;;  %1895 = vst.msk [vmem:[%s4538_s5 + $0x84] sm:$0xf] %vm1861_vm1, %v2189_v32  ;;  %v4756_v44 = vld [vmem:[#allocation14_spill] sm:$0xff] }
 0x257   :  { %v2196_v23 = vpack.c.bf16 %v4749_v53, %v4749_v53  ;;  %v2197_v25 = vpack.c.bf16 %v4750_v27, %v4750_v27  ;;  %v4752_v39 = vmax.f32 %v3939_v18, 0.0  ;;  %1896 = vst.msk [vmem:[%s4538_s5 + $0x88] sm:$0xf] %vm1861_vm1, %v2190_v26  ;;  %1897 = vst.msk [vmem:[%s4538_s5 + $0x8c] sm:$0xf] %vm1861_vm1, %v2191_v22  ;;  %v4753_v33 = vmax.f32 %v3943_v42, 0.0 }
 0x258   :  { %v2198_v43 = vpack.c.bf16 %v4751_v31, %v4751_v31  ;;  %v4754_v18 = vmax.f32 %v3947_v58, 0.0  ;;  %v4755_v37 = vmax.f32 %v4693_v16, 0.0  ;;  %v4757_v49 = vmax.f32 %v4756_v44, 0.0  ;;  %1898 = vst.msk [vmem:[%s4538_s5 + $0x90] sm:$0xf] %vm1861_vm1, %v2192_v47  ;;  %v4758_v42 = vld [vmem:[#allocation15_spill] sm:$0xff] }
 0x259   :  { %v2199_v56 = vpack.c.bf16 %v4752_v39, %v4752_v39  ;;  %v2200_v38 = vpack.c.bf16 %v4753_v33, %v4753_v33  ;;  %1899 = vst.msk [vmem:[%s4538_s5 + $0x94] sm:$0xf] %vm1861_vm1, %v2193_v11  ;;  %1900 = vst.msk [vmem:[%s4538_s5 + $0x98] sm:$0xf] %vm1861_vm1, %v2194_v4  ;;  %v4759_v58 = vmax.f32 %v4758_v42, 0.0  ;;  %v4760_v19 = vld [vmem:[#allocation16_spill] sm:$0xff] }
 0x25a   :  { %v2201_v48 = vpack.c.bf16 %v4754_v18, %v4754_v18  ;;  %v2202_v46 = vpack.c.bf16 %v4755_v37, %v4755_v37  ;;  %v2203_v14 = vpack.c.bf16 %v4757_v49, %v4757_v49  ;;  %1901 = vst.msk [vmem:[%s4538_s5 + $0x9c] sm:$0xf] %vm1861_vm1, %v2195_v35  ;;  %v4761_v34 = vmax.f32 %v4760_v19, 0.0  ;;  %v4762_v55 = vld [vmem:[#allocation17_spill] sm:$0xff]  ;;  %v4764_v3 = vld [vmem:[#allocation19_spill] sm:$0xff] }
 0x25b   :  { %v2204_v16 = vpack.c.bf16 %v4759_v58, %v4759_v58  ;;  %v4763_v0 = vmax.f32 %v4762_v55, 0.0  ;;  %v4765_v13 = vmax.f32 %v4764_v3, 0.0  ;;  %1902 = vst.msk [vmem:[%s4538_s5 + $0xa0] sm:$0xf] %vm1861_vm1, %v2196_v23  ;;  %1903 = vst.msk [vmem:[%s4538_s5 + $0xa4] sm:$0xf] %vm1861_vm1, %v2197_v25 }
 0x25c   :  { %v2205_v9 = vpack.c.bf16 %v4761_v34, %v4761_v34  ;;  %1904 = vst.msk [vmem:[%s4538_s5 + $0xa8] sm:$0xf] %vm1861_vm1, %v2198_v43  ;;  %1905 = vst.msk [vmem:[%s4538_s5 + $0xac] sm:$0xf] %vm1861_vm1, %v2199_v56  ;;  %v4766_v45 = vmax.f32 %v3975_v17, 0.0  ;;  %v4767_v15 = vmax.f32 %v3979_v54, 0.0 }
 0x25d   :  { %v2206_v62 = vpack.c.bf16 %v4763_v0, %v4763_v0  ;;  %v2207_v61 = vpack.c.bf16 %v4765_v13, %v4765_v13  ;;  %v4768_v29 = vmax.f32 %v3983_v5, 0.0  ;;  %v4769_v60 = vmax.f32 %v3987_v51, 0.0  ;;  %1906 = vst.msk [vmem:[%s4538_s5 + $0xb0] sm:$0xf] %vm1861_vm1, %v2200_v38  ;;  %1907 = vst.msk [vmem:[%s4538_s5 + $0xb4] sm:$0xf] %vm1861_vm1, %v2201_v48 }
 0x25e   :  { %v2208_v7 = vpack.c.bf16 %v4766_v45, %v4766_v45  ;;  %v2209_v21 = vpack.c.bf16 %v4767_v15, %v4767_v15  ;;  %1908 = vst.msk [vmem:[%s4538_s5 + $0xb8] sm:$0xf] %vm1861_vm1, %v2202_v46  ;;  %1909 = vst.msk [vmem:[%s4538_s5 + $0xbc] sm:$0xf] %vm1861_vm1, %v2203_v14  ;;  %v4770_v17 = vmax.f32 %v3991_v20, 0.0  ;;  %v4771_v5 = vmax.f32 %v3995_v10, 0.0 }
 0x25f   :  { %v2210_v32 = vpack.c.bf16 %v4768_v29, %v4768_v29  ;;  %v2211_v26 = vpack.c.bf16 %v4769_v60, %v4769_v60  ;;  %v4772_v2 = vmax.f32 %v4699_v57, 0.0  ;;  %v4773_v8 = vmax.f32 %v4700_v59, 0.0  ;;  %1910 = vst.msk [vmem:[%s4538_s5 + $0xc0] sm:$0xf] %vm1861_vm1, %v2204_v16  ;;  %1911 = vst.msk [vmem:[%s4538_s5 + $0xc4] sm:$0xf] %vm1861_vm1, %v2205_v9 }
 0x260   :  { %v2212_v54 = vpack.c.bf16 %v4770_v17, %v4770_v17  ;;  %v2213_v51 = vpack.c.bf16 %v4771_v5, %v4771_v5  ;;  %1912 = vst.msk [vmem:[%s4538_s5 + $0xc8] sm:$0xf] %vm1861_vm1, %v2206_v62  ;;  %1913 = vst.msk [vmem:[%s4538_s5 + $0xcc] sm:$0xf] %vm1861_vm1, %v2207_v61  ;;  %v4774_v57 = vmax.f32 %v4701_v1, 0.0  ;;  %v4775_v20 = vmax.f32 %v4702_v12, 0.0 }
 0x261   :  { %v2214_v22 = vpack.c.bf16 %v4772_v2, %v4772_v2  ;;  %v2215_v41 = vpack.c.bf16 %v4773_v8, %v4773_v8  ;;  %v4776_v47 = vmax.f32 %v4703_v30, 0.0  ;;  %v4777_v52 = vmax.f32 %v4019_v63, 0.0  ;;  %1914 = vst.msk [vmem:[%s4538_s5 + $0xd0] sm:$0xf] %vm1861_vm1, %v2208_v7  ;;  %1915 = vst.msk [vmem:[%s4538_s5 + $0xd4] sm:$0xf] %vm1861_vm1, %v2209_v21 }
 0x262   :  { %v2216_v59 = vpack.c.bf16 %v4774_v57, %v4774_v57  ;;  %v2217_v10 = vpack.c.bf16 %v4775_v20, %v4775_v20  ;;  %1916 = vst.msk [vmem:[%s4538_s5 + $0xd8] sm:$0xf] %vm1861_vm1, %v2210_v32  ;;  %1917 = vst.msk [vmem:[%s4538_s5 + $0xdc] sm:$0xf] %vm1861_vm1, %v2211_v26 }
 0x263   :  { %v2218_v50 = vpack.c.bf16 %v4776_v47, %v4776_v47  ;;  %v2219_v11 = vpack.c.bf16 %v4777_v52, %v4777_v52  ;;  %1918 = vst.msk [vmem:[%s4538_s5 + $0xe0] sm:$0xf] %vm1861_vm1, %v2212_v54  ;;  %1919 = vst.msk [vmem:[%s4538_s5 + $0xe4] sm:$0xf] %vm1861_vm1, %v2213_v51 }
 0x264   :  { %1920 = vst.msk [vmem:[%s4538_s5 + $0xe8] sm:$0xf] %vm1861_vm1, %v2214_v22  ;;  %1921 = vst.msk [vmem:[%s4538_s5 + $0xec] sm:$0xf] %vm1861_vm1, %v2215_v41 }
 0x265   :  { %1922 = vst.msk [vmem:[%s4538_s5 + $0xf0] sm:$0xf] %vm1861_vm1, %v2216_v59  ;;  %1923 = vst.msk [vmem:[%s4538_s5 + $0xf4] sm:$0xf] %vm1861_vm1, %v2217_v10 }
 0x266   :  { %1924 = vst.msk [vmem:[%s4538_s5 + $0xf8] sm:$0xf] %vm1861_vm1, %v2218_v50  ;;  %1925 = vst.msk [vmem:[%s4538_s5 + $0xfc] sm:$0xf] %vm1861_vm1, %v2219_v11 }

// kernel: generator_forward.7
= control target key start
LH: loop header
LB: loop body
LE: loop exit
PB: predicated region body
PF: predicated region fallthrough
CT: control target
= control target key end

     0   :  { %vm271_vm0 = vcmask 523264   ;;  %vm3105_vm1 = vcmask 23552   ;;  %s6820_s1 = inlined_call_operand.vmem [shape: bf16[4,64,3], index: 1, kind: input, shape index: {}]   ;;  %s6821_s0 = inlined_call_operand.vmem [shape: bf16[4,512,64], index: 0, kind: input, shape index: {}]   ;;  %s6822_s2 = inlined_call_operand.vmem [shape: f32[1,3], index: 2, kind: input, shape index: {}]   ;;  %s6823_s3 = inlined_call_operand.vmem [shape: f32[2048,3], index: 3, kind: output, shape index: {}]  }
   0x1   :  { %v4287_v0 = vld [vmem:[%s6820_s1 + $0x18] sm:$0xff]   ;;  %v4289_v2 = vld [vmem:[%s6820_s1 + $0x10] sm:$0xff]   ;;  %v4291_v4 = vld [vmem:[%s6820_s1 + $0x8] sm:$0xff]  }
   0x2   :  { %v4288_v1 = vld [vmem:[%s6820_s1 + $0x38] sm:$0xff]   ;;  %3999 = vmatprep.subr.bf16.mxu0 %v4287_v0  ;;  %v4290_v3 = vld [vmem:[%s6820_s1 + $0x30] sm:$0xff]   ;;  %v4292_v5 = vld [vmem:[%s6820_s1 + $0x28] sm:$0xff]  }
   0x3   :  { %4071 = vmatprep.subr.bf16.mxu1 %v4288_v1  ;;  %4000 = vmatpush3.bf16.msra.mxu0 %v4287_v0  ;;  %v4293_v6 = vld [vmem:[%s6820_s1] sm:$0xff]   ;;  %v4299_v10 = vld [vmem:[%s6820_s1 + $0x58] sm:$0xff]   ;;  %v4297_v12 = vld [vmem:[%s6821_s0 + $0x8] sm:$0xff]  }
   0x4   :  { %4072 = vmatpush3.bf16.msra.mxu1 %v4288_v1  ;;  %4001 = vmatprep.subr.bf16.mxu0 %v4289_v2  ;;  %v4294_v7 = vld [vmem:[%s6820_s1 + $0x20] sm:$0xff]   ;;  %v4300_v11 = vld [vmem:[%s6820_s1 + $0x78] sm:$0xff]   ;;  %v4298_v13 = vld [vmem:[%s6821_s0 + $0x108] sm:$0xff]  }
   0x5   :  { %4073 = vmatprep.subr.bf16.mxu1 %v4290_v3  ;;  %v4295_v8 = vld [vmem:[%s6821_s0] sm:$0xff]   ;;  %v4301_v14 = vld [vmem:[%s6821_s0 + $0x10] sm:$0xff]   ;;  %v4303_v16 = vld [vmem:[%s6821_s0 + $0x18] sm:$0xff]  }
   0x6   :  { %v4296_v9 = vld [vmem:[%s6821_s0 + $0x100] sm:$0xff]   ;;  %4007 = vmatprep.mubr.msk.bf16.mxu0 %vm271_vm0, %v4295_v8  ;;  %v4302_v15 = vld [vmem:[%s6821_s0 + $0x110] sm:$0xff]   ;;  %v4304_v17 = vld [vmem:[%s6821_s0 + $0x118] sm:$0xff]  }
   0x7   :  { %4002 = vmatpush3.bf16.msra.mxu0 %v4289_v2  ;;  %4079 = vmatprep.mubr.msk.bf16.mxu1 %vm271_vm0, %v4296_v9  ;;  %v4305_v18 = vld [vmem:[%s6821_s0 + $0x20] sm:$0xff]   ;;  %v4307_v20 = vld [vmem:[%s6821_s0 + $0x28] sm:$0xff]   ;;  %v4309_v22 = vld [vmem:[%s6821_s0 + $0x30] sm:$0xff]  }
   0x8   :  { %4074 = vmatpush3.bf16.msra.mxu1 %v4290_v3  ;;  %4003 = vmatprep.subr.bf16.mxu0 %v4291_v4  ;;  %v4306_v19 = vld [vmem:[%s6821_s0 + $0x120] sm:$0xff]   ;;  %v4308_v21 = vld [vmem:[%s6821_s0 + $0x128] sm:$0xff]   ;;  %v4317_v23 = vld [vmem:[%s6820_s1 + $0x50] sm:$0xff]  }
   0x9   :  { %4075 = vmatprep.subr.bf16.mxu1 %v4292_v5  ;;  %v4318_v24 = vld [vmem:[%s6820_s1 + $0x70] sm:$0xff]   ;;  %v4311_v26 = vld [vmem:[%s6821_s0 + $0x38] sm:$0xff]   ;;  %v4313_v28 = vld [vmem:[%s6821_s0 + $0x40] sm:$0xff]  }
   0xa   :  { %v4310_v25 = vld [vmem:[%s6821_s0 + $0x130] sm:$0xff]   ;;  %v4312_v27 = vld [vmem:[%s6821_s0 + $0x138] sm:$0xff]   ;;  %v4314_v29 = vld [vmem:[%s6821_s0 + $0x140] sm:$0xff]  }
   0xb   :  { %4004 = vmatpush3.bf16.msra.mxu0 %v4291_v4  ;;  %v4315_v30 = vld [vmem:[%s6821_s0 + $0x48] sm:$0xff]   ;;  %v4319_v32 = vld [vmem:[%s6821_s0 + $0x50] sm:$0xff]   ;;  %v4321_v36 = vld [vmem:[%s6821_s0 + $0x58] sm:$0xff]  }
   0xc   :  { %4076 = vmatpush3.bf16.msra.mxu1 %v4292_v5  ;;  %4005 = vmatprep.subr.bf16.mxu0 %v4293_v6  ;;  %v4316_v31 = vld [vmem:[%s6821_s0 + $0x148] sm:$0xff]   ;;  %v4320_v33 = vld [vmem:[%s6821_s0 + $0x150] sm:$0xff]   ;;  %v4322_v37 = vld [vmem:[%s6821_s0 + $0x158] sm:$0xff]  }
   0xd   :  { %4077 = vmatprep.subr.bf16.mxu1 %v4294_v7  ;;  %v4335_v34 = vld [vmem:[%s6820_s1 + $0x48] sm:$0xff]   ;;  %v4323_v38 = vld [vmem:[%s6821_s0 + $0x60] sm:$0xff]   ;;  %v4327_v42 = vld [vmem:[%s6821_s0 + $0x70] sm:$0xff]  }
   0xe   :  { %v4336_v35 = vld [vmem:[%s6820_s1 + $0x68] sm:$0xff]   ;;  %v4324_v39 = vld [vmem:[%s6821_s0 + $0x160] sm:$0xff]   ;;  %v4328_v43 = vld [vmem:[%s6821_s0 + $0x170] sm:$0xff]  }
   0xf   :  { %4006 = vmatpush3.bf16.msra.mxu0 %v4293_v6  ;;  %v4325_v40 = vld [vmem:[%s6821_s0 + $0x68] sm:$0xff]   ;;  %v4353_v44 = vld [vmem:[%s6820_s1 + $0x40] sm:$0xff]   ;;  %v4329_v46 = vld [vmem:[%s6821_s0 + $0x78] sm:$0xff]  }
  0x10   :  { %4078 = vmatpush3.bf16.msra.mxu1 %v4294_v7  ;;  %4143 = vmatprep.subr.bf16.mxu0 %v4299_v10  ;;  %v4326_v41 = vld [vmem:[%s6821_s0 + $0x168] sm:$0xff]   ;;  %v4354_v45 = vld [vmem:[%s6820_s1 + $0x60] sm:$0xff]   ;;  %v4330_v47 = vld [vmem:[%s6821_s0 + $0x178] sm:$0xff]  }
  0x11   :  { %4215 = vmatprep.subr.bf16.mxu1 %v4300_v11  ;;  %v4331_v48 = vld [vmem:[%s6821_s0 + $0x80] sm:$0xff]   ;;  %v4333_v50 = vld [vmem:[%s6821_s0 + $0x88] sm:$0xff]   ;;  %v4337_v52 = vld [vmem:[%s6821_s0 + $0x90] sm:$0xff]  }
  0x12   :  { %4008 = vmatmul.mubr.msk.bf16.vlgmr.msra.gmra.mxu0 %vm271_vm0, %v4297_v12  ;;  %v4332_v49 = vld [vmem:[%s6821_s0 + $0x180] sm:$0xff]   ;;  %v4334_v51 = vld [vmem:[%s6821_s0 + $0x188] sm:$0xff]   ;;  %v4338_v53 = vld [vmem:[%s6821_s0 + $0x190] sm:$0xff]  }
  0x13   :  { %4080 = vmatmul.mubr.msk.bf16.vlgmr.msra.gmra.mxu1 %vm271_vm0, %v4298_v13  ;;  %4144 = vmatpush3.bf16.msra.mxu0 %v4299_v10  ;;  %v4339_v54 = vld [vmem:[%s6821_s0 + $0x98] sm:$0xff]   ;;  %v4341_v56 = vld [vmem:[%s6821_s0 + $0xa0] sm:$0xff]   ;;  %v4343_v58 = vld [vmem:[%s6821_s0 + $0xa8] sm:$0xff]  }
  0x14   :  { %4216 = vmatpush3.bf16.msra.mxu1 %v4300_v11  ;;  %4011 = vmatprep.mubr.msk.bf16.mxu0 %vm271_vm0, %v4301_v14  ;;  %v4340_v55 = vld [vmem:[%s6821_s0 + $0x198] sm:$0xff]   ;;  %v4342_v57 = vld [vmem:[%s6821_s0 + $0x1a0] sm:$0xff]   ;;  %v4344_v59 = vld [vmem:[%s6821_s0 + $0x1a8] sm:$0xff]  }
  0x15   :  { %4083 = vmatprep.mubr.msk.bf16.mxu1 %vm271_vm0, %v4302_v15  ;;  %4145 = vmatprep.subr.bf16.mxu0 %v4317_v23  ;;  %v4345_v60 = vld [vmem:[%s6821_s0 + $0xb0] sm:$0xff]   ;;  %v4347_v62 = vld [vmem:[%s6821_s0 + $0xb8] sm:$0xff]   ;;  %v4349_v0 = vld [vmem:[%s6821_s0 + $0xc0] sm:$0xff]  }
  0x16   :  { %4217 = vmatprep.subr.bf16.mxu1 %v4318_v24  ;;  %v4346_v61 = vld [vmem:[%s6821_s0 + $0x1b0] sm:$0xff]   ;;  %v4348_v63 = vld [vmem:[%s6821_s0 + $0x1b8] sm:$0xff]   ;;  %v4350_v1 = vld [vmem:[%s6821_s0 + $0x1c0] sm:$0xff]  }
  0x17   :  { %4146 = vmatpush3.bf16.msra.mxu0 %v4317_v23  ;;  %v4351_v2 = vld [vmem:[%s6821_s0 + $0xc8] sm:$0xff]   ;;  %v4355_v4 = vld [vmem:[%s6821_s0 + $0xd0] sm:$0xff]   ;;  %v4357_v6 = vld [vmem:[%s6821_s0 + $0xd8] sm:$0xff]  }
  0x18   :  { %4218 = vmatpush3.bf16.msra.mxu1 %v4318_v24  ;;  %4147 = vmatprep.subr.bf16.mxu0 %v4335_v34  ;;  %v4352_v3 = vld [vmem:[%s6821_s0 + $0x1c8] sm:$0xff]   ;;  %v4356_v5 = vld [vmem:[%s6821_s0 + $0x1d0] sm:$0xff]   ;;  %v4358_v7 = vld [vmem:[%s6821_s0 + $0x1d8] sm:$0xff]  }
  0x19   :  { %4219 = vmatprep.subr.bf16.mxu1 %v4336_v35  ;;  %v4359_v8 = vld [vmem:[%s6821_s0 + $0xe0] sm:$0xff]   ;;  %v4361_v10 = vld [vmem:[%s6821_s0 + $0xe8] sm:$0xff]   ;;  %v4363_v12 = vld [vmem:[%s6821_s0 + $0xf0] sm:$0xff]  }
  0x1a   :  { %4012 = vmatmul.mubr.msk.bf16.gmra.mxu0 %vm271_vm0, %v4303_v16  ;;  %v4360_v9 = vld [vmem:[%s6821_s0 + $0x1e0] sm:$0xff]   ;;  %v4362_v11 = vld [vmem:[%s6821_s0 + $0x1e8] sm:$0xff]   ;;  %v4364_v13 = vld [vmem:[%s6821_s0 + $0x1f0] sm:$0xff]  }
  0x1b   :  { %4084 = vmatmul.mubr.msk.bf16.gmra.mxu1 %vm271_vm0, %v4304_v17  ;;  %4015 = vmatprep.mubr.msk.bf16.mxu0 %vm271_vm0, %v4305_v18  ;;  %v4365_v14 = vld [vmem:[%s6821_s0 + $0xf8] sm:$0xff]   ;;  %v4367_v16 = vld [vmem:[%s6821_s0 + $0x200] sm:$0xff]   ;;  %v4369_v18 = vld [vmem:[%s6821_s0 + $0x208] sm:$0xff]  }
  0x1c   :  { %4087 = vmatprep.mubr.msk.bf16.mxu1 %vm271_vm0, %v4306_v19  ;;  %4148 = vmatpush3.bf16.msra.mxu0 %v4335_v34  ;;  %v4366_v15 = vld [vmem:[%s6821_s0 + $0x1f8] sm:$0xff]   ;;  %v4368_v17 = vld [vmem:[%s6821_s0 + $0x300] sm:$0xff]   ;;  %v4370_v19 = vld [vmem:[%s6821_s0 + $0x308] sm:$0xff]  }
  0x1d   :  { %4220 = vmatpush3.bf16.msra.mxu1 %v4336_v35  ;;  %4149 = vmatprep.subr.bf16.mxu0 %v4353_v44  ;;  %v4374_v23 = vld [vmem:[%s6821_s0 + $0x318] sm:$0xff]   ;;  %v4375_v24 = vld [vmem:[%s6821_s0 + $0x220] sm:$0xff]   ;;  %v4385_v34 = vld [vmem:[%s6821_s0 + $0x248] sm:$0xff]  }
  0x1e   :  { %4221 = vmatprep.subr.bf16.mxu1 %v4354_v45  ;;  %v4386_v35 = vld [vmem:[%s6821_s0 + $0x348] sm:$0xff]  }
  0x20   :  { %4150 = vmatpush3.bf16.msra.mxu0 %v4353_v44  ;;  %v4395_v44 = vld [vmem:[%s6821_s0 + $0x270] sm:$0xff]  }
  0x21   :  { %4222 = vmatpush3.bf16.msra.mxu1 %v4354_v45  ;;  %v4396_v45 = vld [vmem:[%s6821_s0 + $0x370] sm:$0xff]  }
  0x22   :  { %4016 = vmatmul.mubr.msk.bf16.gmra.mxu0 %vm271_vm0, %v4307_v20  ;;  %v4371_v20 = vld [vmem:[%s6821_s0 + $0x210] sm:$0xff]  }
  0x23   :  { %4088 = vmatmul.mubr.msk.bf16.gmra.mxu1 %vm271_vm0, %v4308_v21  ;;  %4019 = vmatprep.mubr.msk.bf16.mxu0 %vm271_vm0, %v4309_v22  ;;  %v4372_v21 = vld [vmem:[%s6821_s0 + $0x310] sm:$0xff]   ;;  %v4373_v22 = vld [vmem:[%s6821_s0 + $0x218] sm:$0xff]  }
  0x24   :  { %4091 = vmatprep.mubr.msk.bf16.mxu1 %vm271_vm0, %v4310_v25  ;;  %v4376_v25 = vld [vmem:[%s6821_s0 + $0x320] sm:$0xff]  }
  0x2a   :  { %4020 = vmatmul.mubr.msk.bf16.gmra.mxu0 %vm271_vm0, %v4311_v26  ;;  %v4377_v26 = vld [vmem:[%s6821_s0 + $0x228] sm:$0xff]  }
  0x2b   :  { %4092 = vmatmul.mubr.msk.bf16.gmra.mxu1 %vm271_vm0, %v4312_v27  ;;  %4023 = vmatprep.mubr.msk.bf16.mxu0 %vm271_vm0, %v4313_v28  ;;  %v4378_v27 = vld [vmem:[%s6821_s0 + $0x328] sm:$0xff]   ;;  %v4379_v28 = vld [vmem:[%s6821_s0 + $0x230] sm:$0xff]  }
  0x2c   :  { %4095 = vmatprep.mubr.msk.bf16.mxu1 %vm271_vm0, %v4314_v29  ;;  %v4380_v29 = vld [vmem:[%s6821_s0 + $0x330] sm:$0xff]  }
  0x32   :  { %4024 = vmatmul.mubr.msk.bf16.gmra.mxu0 %vm271_vm0, %v4315_v30  ;;  %v4381_v30 = vld [vmem:[%s6821_s0 + $0x238] sm:$0xff]  }
  0x33   :  { %4096 = vmatmul.mubr.msk.bf16.gmra.mxu1 %vm271_vm0, %v4316_v31  ;;  %4027 = vmatprep.mubr.msk.bf16.mxu0 %vm271_vm0, %v4319_v32  ;;  %v4382_v31 = vld [vmem:[%s6821_s0 + $0x338] sm:$0xff]   ;;  %v4383_v32 = vld [vmem:[%s6821_s0 + $0x240] sm:$0xff]  }
  0x34   :  { %4099 = vmatprep.mubr.msk.bf16.mxu1 %vm271_vm0, %v4320_v33  ;;  %v4384_v33 = vld [vmem:[%s6821_s0 + $0x340] sm:$0xff]  }
  0x3a   :  { %4028 = vmatmul.mubr.msk.bf16.gmra.mxu0 %vm271_vm0, %v4321_v36  ;;  %v4387_v36 = vld [vmem:[%s6821_s0 + $0x250] sm:$0xff]  }
  0x3b   :  { %4100 = vmatmul.mubr.msk.bf16.gmra.mxu1 %vm271_vm0, %v4322_v37  ;;  %4031 = vmatprep.mubr.msk.bf16.mxu0 %vm271_vm0, %v4323_v38  ;;  %v4388_v37 = vld [vmem:[%s6821_s0 + $0x350] sm:$0xff]   ;;  %v4389_v38 = vld [vmem:[%s6821_s0 + $0x258] sm:$0xff]  }
  0x3c   :  { %4103 = vmatprep.mubr.msk.bf16.mxu1 %vm271_vm0, %v4324_v39  ;;  %v4390_v39 = vld [vmem:[%s6821_s0 + $0x358] sm:$0xff]  }
  0x42   :  { %4032 = vmatmul.mubr.msk.bf16.gmra.mxu0 %vm271_vm0, %v4325_v40  ;;  %v4391_v40 = vld [vmem:[%s6821_s0 + $0x260] sm:$0xff]  }
  0x43   :  { %4104 = vmatmul.mubr.msk.bf16.gmra.mxu1 %vm271_vm0, %v4326_v41  ;;  %4035 = vmatprep.mubr.msk.bf16.mxu0 %vm271_vm0, %v4327_v42  ;;  %v4392_v41 = vld [vmem:[%s6821_s0 + $0x360] sm:$0xff]   ;;  %v4393_v42 = vld [vmem:[%s6821_s0 + $0x268] sm:$0xff]  }
  0x44   :  { %4107 = vmatprep.mubr.msk.bf16.mxu1 %vm271_vm0, %v4328_v43  ;;  %v4394_v43 = vld [vmem:[%s6821_s0 + $0x368] sm:$0xff]  }
  0x4a   :  { %4036 = vmatmul.mubr.msk.bf16.gmra.mxu0 %vm271_vm0, %v4329_v46  ;;  %v4397_v46 = vld [vmem:[%s6821_s0 + $0x278] sm:$0xff]  }
  0x4b   :  { %4108 = vmatmul.mubr.msk.bf16.gmra.mxu1 %vm271_vm0, %v4330_v47  ;;  %4039 = vmatprep.mubr.msk.bf16.mxu0 %vm271_vm0, %v4331_v48  ;;  %v4398_v47 = vld [vmem:[%s6821_s0 + $0x378] sm:$0xff]   ;;  %v4399_v48 = vld [vmem:[%s6821_s0 + $0x280] sm:$0xff]  }
  0x4c   :  { %4111 = vmatprep.mubr.msk.bf16.mxu1 %vm271_vm0, %v4332_v49  ;;  %v4400_v49 = vld [vmem:[%s6821_s0 + $0x380] sm:$0xff]  }
  0x52   :  { %4040 = vmatmul.mubr.msk.bf16.gmra.mxu0 %vm271_vm0, %v4333_v50  ;;  %v4401_v50 = vld [vmem:[%s6821_s0 + $0x288] sm:$0xff]  }
  0x53   :  { %4112 = vmatmul.mubr.msk.bf16.gmra.mxu1 %vm271_vm0, %v4334_v51  ;;  %4043 = vmatprep.mubr.msk.bf16.mxu0 %vm271_vm0, %v4337_v52  ;;  %v4402_v51 = vld [vmem:[%s6821_s0 + $0x388] sm:$0xff]   ;;  %v4403_v52 = vld [vmem:[%s6821_s0 + $0x290] sm:$0xff]  }
  0x54   :  { %4115 = vmatprep.mubr.msk.bf16.mxu1 %vm271_vm0, %v4338_v53  ;;  %v5417_v53 = vld [vmem:[%s6822_s2] ss:$0 sm:$0xff] }
  0x5a   :  { %4044 = vmatmul.mubr.msk.bf16.gmra.mxu0 %vm271_vm0, %v4339_v54  ;;  %v4404_v54 = vld [vmem:[%s6821_s0 + $0x390] sm:$0xff]  }
  0x5b   :  { %4116 = vmatmul.mubr.msk.bf16.gmra.mxu1 %vm271_vm0, %v4340_v55  ;;  %4047 = vmatprep.mubr.msk.bf16.mxu0 %vm271_vm0, %v4341_v56 }
  0x5c   :  { %4119 = vmatprep.mubr.msk.bf16.mxu1 %vm271_vm0, %v4342_v57 }
  0x62   :  { %4048 = vmatmul.mubr.msk.bf16.gmra.mxu0 %vm271_vm0, %v4343_v58 }
  0x63   :  { %4120 = vmatmul.mubr.msk.bf16.gmra.mxu1 %vm271_vm0, %v4344_v59  ;;  %4051 = vmatprep.mubr.msk.bf16.mxu0 %vm271_vm0, %v4345_v60 }
  0x64   :  { %4123 = vmatprep.mubr.msk.bf16.mxu1 %vm271_vm0, %v4346_v61 }
  0x6a   :  { %4052 = vmatmul.mubr.msk.bf16.gmra.mxu0 %vm271_vm0, %v4347_v62 }
  0x6b   :  { %4124 = vmatmul.mubr.msk.bf16.gmra.mxu1 %vm271_vm0, %v4348_v63  ;;  %4055 = vmatprep.mubr.msk.bf16.mxu0 %vm271_vm0, %v4349_v0  ;;  %v4405_v0 = vld [vmem:[%s6821_s0 + $0x298] sm:$0xff]  }
  0x6c   :  { %4127 = vmatprep.mubr.msk.bf16.mxu1 %vm271_vm0, %v4350_v1 }
  0x72   :  { %4056 = vmatmul.mubr.msk.bf16.gmra.mxu0 %vm271_vm0, %v4351_v2 }
  0x73   :  { %4128 = vmatmul.mubr.msk.bf16.gmra.mxu1 %vm271_vm0, %v4352_v3  ;;  %4059 = vmatprep.mubr.msk.bf16.mxu0 %vm271_vm0, %v4355_v4  ;;  %v4406_v3 = vld [vmem:[%s6821_s0 + $0x398] sm:$0xff]   ;;  %v4407_v4 = vld [vmem:[%s6821_s0 + $0x2a0] sm:$0xff]  }
  0x74   :  { %4131 = vmatprep.mubr.msk.bf16.mxu1 %vm271_vm0, %v4356_v5 }
  0x7a   :  { %4060 = vmatmul.mubr.msk.bf16.gmra.mxu0 %vm271_vm0, %v4357_v6 }
  0x7b   :  { %4132 = vmatmul.mubr.msk.bf16.gmra.mxu1 %vm271_vm0, %v4358_v7  ;;  %4063 = vmatprep.mubr.msk.bf16.mxu0 %vm271_vm0, %v4359_v8  ;;  %v4408_v7 = vld [vmem:[%s6821_s0 + $0x3a0] sm:$0xff]  }
  0x7c   :  { %4135 = vmatprep.mubr.msk.bf16.mxu1 %vm271_vm0, %v4360_v9 }
  0x82   :  { %4064 = vmatmul.mubr.msk.bf16.gmra.mxu0 %vm271_vm0, %v4361_v10 }
  0x83   :  { %4136 = vmatmul.mubr.msk.bf16.gmra.mxu1 %vm271_vm0, %v4362_v11  ;;  %4067 = vmatprep.mubr.msk.bf16.mxu0 %vm271_vm0, %v4363_v12 }
  0x84   :  { %4139 = vmatprep.mubr.msk.bf16.mxu1 %vm271_vm0, %v4364_v13 }
  0x8a   :  { %4068 = vmatmul.mubr.msk.bf16.gmra.mxu0 %vm271_vm0, %v4365_v14 }
  0x8b   :  { %4140 = vmatmul.mubr.msk.bf16.gmra.mxu1 %vm271_vm0, %v4366_v15  ;;  %4151 = vmatprep.mubr.msk.bf16.mxu0 %vm271_vm0, %v4367_v16 }
  0x8c   :  { %4223 = vmatprep.mubr.msk.bf16.mxu1 %vm271_vm0, %v4368_v17 }
  0x92   :  { %4152 = vmatmul.mubr.msk.bf16.vlgmr.msra.gmra.mxu0 %vm271_vm0, %v4369_v18 }
  0x93   :  { %4224 = vmatmul.mubr.msk.bf16.vlgmr.msra.gmra.mxu1 %vm271_vm0, %v4370_v19  ;;  %4155 = vmatprep.mubr.msk.bf16.mxu0 %vm271_vm0, %v4371_v20  ;;  %v4409_v20 = vld [vmem:[%s6821_s0 + $0x2a8] sm:$0xff]  }
  0x94   :  { %4227 = vmatprep.mubr.msk.bf16.mxu1 %vm271_vm0, %v4372_v21 }
  0x9a   :  { %4156 = vmatmul.mubr.msk.bf16.gmra.mxu0 %vm271_vm0, %v4373_v22 }
  0x9b   :  { %4228 = vmatmul.mubr.msk.bf16.gmra.mxu1 %vm271_vm0, %v4374_v23  ;;  %4159 = vmatprep.mubr.msk.bf16.mxu0 %vm271_vm0, %v4375_v24  ;;  %v4410_v23 = vld [vmem:[%s6821_s0 + $0x3a8] sm:$0xff]   ;;  %v4411_v24 = vld [vmem:[%s6821_s0 + $0x2b0] sm:$0xff]  }
  0x9c   :  { %4231 = vmatprep.mubr.msk.bf16.mxu1 %vm271_vm0, %v4376_v25 }
  0xa2   :  { %4160 = vmatmul.mubr.msk.bf16.gmra.mxu0 %vm271_vm0, %v4377_v26 }
  0xa3   :  { %4232 = vmatmul.mubr.msk.bf16.gmra.mxu1 %vm271_vm0, %v4378_v27  ;;  %4163 = vmatprep.mubr.msk.bf16.mxu0 %vm271_vm0, %v4379_v28  ;;  %v4412_v27 = vld [vmem:[%s6821_s0 + $0x3b0] sm:$0xff]  }
  0xa4   :  { %4235 = vmatprep.mubr.msk.bf16.mxu1 %vm271_vm0, %v4380_v29 }
  0xaa   :  { %4164 = vmatmul.mubr.msk.bf16.gmra.mxu0 %vm271_vm0, %v4381_v30 }
  0xab   :  { %4236 = vmatmul.mubr.msk.bf16.gmra.mxu1 %vm271_vm0, %v4382_v31  ;;  %4167 = vmatprep.mubr.msk.bf16.mxu0 %vm271_vm0, %v4383_v32 }
  0xac   :  { %4239 = vmatprep.mubr.msk.bf16.mxu1 %vm271_vm0, %v4384_v33 }
  0xb2   :  { %4168 = vmatmul.mubr.msk.bf16.gmra.mxu0 %vm271_vm0, %v4385_v34 }
  0xb3   :  { %4240 = vmatmul.mubr.msk.bf16.gmra.mxu1 %vm271_vm0, %v4386_v35  ;;  %4171 = vmatprep.mubr.msk.bf16.mxu0 %vm271_vm0, %v4387_v36 }
  0xb4   :  { %4243 = vmatprep.mubr.msk.bf16.mxu1 %vm271_vm0, %v4388_v37 }
  0xba   :  { %4172 = vmatmul.mubr.msk.bf16.gmra.mxu0 %vm271_vm0, %v4389_v38 }
  0xbb   :  { %4244 = vmatmul.mubr.msk.bf16.gmra.mxu1 %vm271_vm0, %v4390_v39  ;;  %4175 = vmatprep.mubr.msk.bf16.mxu0 %vm271_vm0, %v4391_v40 }
  0xbc   :  { %4247 = vmatprep.mubr.msk.bf16.mxu1 %vm271_vm0, %v4392_v41 }
  0xc2   :  { %4176 = vmatmul.mubr.msk.bf16.gmra.mxu0 %vm271_vm0, %v4393_v42 }
  0xc3   :  { %4248 = vmatmul.mubr.msk.bf16.gmra.mxu1 %vm271_vm0, %v4394_v43  ;;  %4179 = vmatprep.mubr.msk.bf16.mxu0 %vm271_vm0, %v4395_v44 }
  0xc4   :  { %4251 = vmatprep.mubr.msk.bf16.mxu1 %vm271_vm0, %v4396_v45  ;;  %v4413_v45 = vld [vmem:[%s6821_s0 + $0x2b8] sm:$0xff]  }
  0xca   :  { %4180 = vmatmul.mubr.msk.bf16.gmra.mxu0 %vm271_vm0, %v4397_v46 }
  0xcb   :  { %4252 = vmatmul.mubr.msk.bf16.gmra.mxu1 %vm271_vm0, %v4398_v47  ;;  %4183 = vmatprep.mubr.msk.bf16.mxu0 %vm271_vm0, %v4399_v48 }
  0xcc   :  { %4255 = vmatprep.mubr.msk.bf16.mxu1 %vm271_vm0, %v4400_v49  ;;  %v4414_v49 = vld [vmem:[%s6821_s0 + $0x3b8] sm:$0xff]  }
  0xd2   :  { %v4009_v55 = vpop.f32.mrf.mxu0  ;;  %4184 = vmatmul.mubr.msk.bf16.gmra.mxu0 %vm271_vm0, %v4401_v50  ;;  %v4415_v50 = vld [vmem:[%s6821_s0 + $0x2c0] sm:$0xff]  }
  0xd3   :  { %v2595_v56 = vadd.f32 %v4009_v55, %v5417_v53  ;;  %v4081_v57 = vpop.f32.mrf.mxu1  ;;  %4256 = vmatmul.mubr.msk.bf16.gmra.mxu1 %vm271_vm0, %v4402_v51  ;;  %4187 = vmatprep.mubr.msk.bf16.mxu0 %vm271_vm0, %v4403_v52  ;;  %v4416_v55 = vld [vmem:[%s6821_s0 + $0x3c0] sm:$0xff]  }
  0xd4   :  { %v2659_v58 = vadd.f32 %v4081_v57, %v5417_v53  ;;  %v402_v59 = vpop.f32.mrf.mxu0  ;;  %4259 = vmatprep.mubr.msk.bf16.mxu1 %vm271_vm0, %v4404_v54 }
  0xd5   :  { %4431 = vtanh.f32 %v2595_v56  ;;  %v2593_v60 = vadd.f32 %v5417_v53, %v402_v59  ;;  %v1045_v61 = vpop.f32.mrf.mxu1 }
  0xd6   :  { %4433 = vtanh.f32 %v2659_v58  ;;  %v2657_v62 = vadd.f32 %v5417_v53, %v1045_v61  ;;  %v4010_v63 = vpop.f32.mrf.mxu0 }
  0xd7   :  { %4435 = vtanh.f32 %v2593_v60  ;;  %v2596_v1 = vadd.f32 %v4010_v63, %v5417_v53  ;;  %v4082_v2 = vpop.f32.mrf.mxu1 }
  0xd8   :  { %4437 = vtanh.f32 %v2657_v62  ;;  %v2660_v5 = vadd.f32 %v4082_v2, %v5417_v53  ;;  %v405_v6 = vpop.f32.mrf.mxu0 }
  0xd9   :  { %4439 = vtanh.f32 %v2596_v1  ;;  %v2594_v8 = vadd.f32 %v5417_v53, %v405_v6  ;;  %v1048_v9 = vpop.f32.mrf.mxu1 }
  0xda   :  { %4441 = vtanh.f32 %v2660_v5  ;;  %v2658_v10 = vadd.f32 %v5417_v53, %v1048_v9  ;;  %v4013_v11 = vpop.f32.mrf.mxu0  ;;  %4188 = vmatmul.mubr.msk.bf16.gmra.mxu0 %vm271_vm0, %v4405_v0 }
  0xdb   :  { %4443 = vtanh.f32 %v2594_v8  ;;  %v2599_v12 = vadd.f32 %v4013_v11, %v5417_v53  ;;  %v4085_v13 = vpop.f32.mrf.mxu1  ;;  %4260 = vmatmul.mubr.msk.bf16.gmra.mxu1 %vm271_vm0, %v4406_v3  ;;  %4191 = vmatprep.mubr.msk.bf16.mxu0 %vm271_vm0, %v4407_v4 }
  0xdc   :  { %4445 = vtanh.f32 %v2658_v10  ;;  %v2663_v14 = vadd.f32 %v4085_v13, %v5417_v53  ;;  %v418_v15 = vpop.f32.mrf.mxu0  ;;  %4263 = vmatprep.mubr.msk.bf16.mxu1 %vm271_vm0, %v4408_v7  ;;  %v4417_v10 = vld [vmem:[%s6821_s0 + $0x2c8] sm:$0xff]  }
  0xdd   :  { %4447 = vtanh.f32 %v2599_v12  ;;  %v2597_v16 = vadd.f32 %v5417_v53, %v418_v15  ;;  %v1061_v17 = vpop.f32.mrf.mxu1  ;;  %v4419_v15 = vld [vmem:[%s6821_s0 + $0x2d0] sm:$0xff]  }
  0xde   :  { %4449 = vtanh.f32 %v2663_v14  ;;  %v2661_v18 = vadd.f32 %v5417_v53, %v1061_v17  ;;  %v4014_v19 = vpop.f32.mrf.mxu0  ;;  %v4418_v14 = vld [vmem:[%s6821_s0 + $0x3c8] sm:$0xff]  }
  0xdf   :  { %4451 = vtanh.f32 %v2597_v16  ;;  %v2600_v21 = vadd.f32 %v4014_v19, %v5417_v53  ;;  %v4086_v22 = vpop.f32.mrf.mxu1  ;;  %v4420_v19 = vld [vmem:[%s6821_s0 + $0x3d0] sm:$0xff]  }
  0xe0   :  { %4453 = vtanh.f32 %v2661_v18  ;;  %v2664_v25 = vadd.f32 %v4086_v22, %v5417_v53  ;;  %v421_v26 = vpop.f32.mrf.mxu0 }
  0xe1   :  { %4455 = vtanh.f32 %v2600_v21  ;;  %v2598_v28 = vadd.f32 %v5417_v53, %v421_v26  ;;  %v1064_v29 = vpop.f32.mrf.mxu1 }
  0xe2   :  { %v4432_v30 = vpop.eup %4431  ;;  %4457 = vtanh.f32 %v2664_v25  ;;  %v2662_v31 = vadd.f32 %v5417_v53, %v1064_v29  ;;  %v4017_v32 = vpop.f32.mrf.mxu0  ;;  %4192 = vmatmul.mubr.msk.bf16.gmra.mxu0 %vm271_vm0, %v4409_v20 }
  0xe3   :  { %v4434_v33 = vpop.eup %4433  ;;  %3108 = vst.msk [vmem:[%s6823_s3 + $0x10] sm:$0xff] %vm3105_vm1, %v4432_v30  ;;  %4459 = vtanh.f32 %v2598_v28  ;;  %v2603_v34 = vadd.f32 %v4017_v32, %v5417_v53  ;;  %v4089_v35 = vpop.f32.mrf.mxu1  ;;  %4264 = vmatmul.mubr.msk.bf16.gmra.mxu1 %vm271_vm0, %v4410_v23  ;;  %4195 = vmatprep.mubr.msk.bf16.mxu0 %vm271_vm0, %v4411_v24 }
  0xe4   :  { %v4436_v36 = vpop.eup %4435  ;;  %3172 = vst.msk [vmem:[%s6823_s3 + $0x210] sm:$0xff] %vm3105_vm1, %v4434_v33  ;;  %4461 = vtanh.f32 %v2662_v31  ;;  %v2667_v37 = vadd.f32 %v4089_v35, %v5417_v53  ;;  %v434_v38 = vpop.f32.mrf.mxu0  ;;  %4267 = vmatprep.mubr.msk.bf16.mxu1 %vm271_vm0, %v4412_v27 }
  0xe5   :  { %v4438_v39 = vpop.eup %4437  ;;  %3106 = vst.msk [vmem:[%s6823_s3] sm:$0xff] %vm3105_vm1, %v4436_v36  ;;  %4463 = vtanh.f32 %v2603_v34  ;;  %v2601_v40 = vadd.f32 %v5417_v53, %v434_v38  ;;  %v1077_v41 = vpop.f32.mrf.mxu1  ;;  %v4421_v38 = vld [vmem:[%s6821_s0 + $0x2d8] sm:$0xff]  }
  0xe6   :  { %v4440_v42 = vpop.eup %4439  ;;  %3170 = vst.msk [vmem:[%s6823_s3 + $0x200] sm:$0xff] %vm3105_vm1, %v4438_v39  ;;  %4465 = vtanh.f32 %v2667_v37  ;;  %v2665_v43 = vadd.f32 %v5417_v53, %v1077_v41  ;;  %v4018_v44 = vpop.f32.mrf.mxu0 }
  0xe7   :  { %v4442_v46 = vpop.eup %4441  ;;  %3109 = vst.msk [vmem:[%s6823_s3 + $0x18] sm:$0xff] %vm3105_vm1, %v4440_v42  ;;  %4467 = vtanh.f32 %v2601_v40  ;;  %v2604_v47 = vadd.f32 %v4018_v44, %v5417_v53  ;;  %v4090_v48 = vpop.f32.mrf.mxu1  ;;  %v4422_v42 = vld [vmem:[%s6821_s0 + $0x3d8] sm:$0xff]  }
  0xe8   :  { %v4444_v51 = vpop.eup %4443  ;;  %3173 = vst.msk [vmem:[%s6823_s3 + $0x218] sm:$0xff] %vm3105_vm1, %v4442_v46  ;;  %4469 = vtanh.f32 %v2665_v43  ;;  %v2668_v52 = vadd.f32 %v4090_v48, %v5417_v53  ;;  %v437_v54 = vpop.f32.mrf.mxu0  ;;  %v4423_v43 = vld [vmem:[%s6821_s0 + $0x2e0] sm:$0xff]  }
  0xe9   :  { %v4446_v56 = vpop.eup %4445  ;;  %3107 = vst.msk [vmem:[%s6823_s3 + $0x8] sm:$0xff] %vm3105_vm1, %v4444_v51  ;;  %4471 = vtanh.f32 %v2604_v47  ;;  %v2602_v57 = vadd.f32 %v5417_v53, %v437_v54  ;;  %v1080_v58 = vpop.f32.mrf.mxu1  ;;  %v4424_v47 = vld [vmem:[%s6821_s0 + $0x3e0] sm:$0xff]  }
  0xea   :  { %v4448_v59 = vpop.eup %4447  ;;  %3171 = vst.msk [vmem:[%s6823_s3 + $0x208] sm:$0xff] %vm3105_vm1, %v4446_v56  ;;  %4473 = vtanh.f32 %v2668_v52  ;;  %v2666_v60 = vadd.f32 %v5417_v53, %v1080_v58  ;;  %v4021_v61 = vpop.f32.mrf.mxu0  ;;  %4196 = vmatmul.mubr.msk.bf16.gmra.mxu0 %vm271_vm0, %v4413_v45 }
  0xeb   :  { %v4450_v62 = vpop.eup %4449  ;;  %3112 = vst.msk [vmem:[%s6823_s3 + $0x30] sm:$0xff] %vm3105_vm1, %v4448_v59  ;;  %4475 = vtanh.f32 %v2602_v57  ;;  %v2607_v63 = vadd.f32 %v4021_v61, %v5417_v53  ;;  %v4093_v0 = vpop.f32.mrf.mxu1  ;;  %4268 = vmatmul.mubr.msk.bf16.gmra.mxu1 %vm271_vm0, %v4414_v49  ;;  %4199 = vmatprep.mubr.msk.bf16.mxu0 %vm271_vm0, %v4415_v50 }
  0xec   :  { %v4452_v1 = vpop.eup %4451  ;;  %3176 = vst.msk [vmem:[%s6823_s3 + $0x230] sm:$0xff] %vm3105_vm1, %v4450_v62  ;;  %4477 = vtanh.f32 %v2666_v60  ;;  %v2671_v2 = vadd.f32 %v4093_v0, %v5417_v53  ;;  %v450_v3 = vpop.f32.mrf.mxu0  ;;  %4271 = vmatprep.mubr.msk.bf16.mxu1 %vm271_vm0, %v4416_v55 }
  0xed   :  { %v4454_v4 = vpop.eup %4453  ;;  %3110 = vst.msk [vmem:[%s6823_s3 + $0x20] sm:$0xff] %vm3105_vm1, %v4452_v1  ;;  %4479 = vtanh.f32 %v2607_v63  ;;  %v2605_v5 = vadd.f32 %v5417_v53, %v450_v3  ;;  %v1093_v6 = vpop.f32.mrf.mxu1  ;;  %v4425_v3 = vld [vmem:[%s6821_s0 + $0x2e8] sm:$0xff]  }
  0xee   :  { %v4456_v7 = vpop.eup %4455  ;;  %3174 = vst.msk [vmem:[%s6823_s3 + $0x220] sm:$0xff] %vm3105_vm1, %v4454_v4  ;;  %4481 = vtanh.f32 %v2671_v2  ;;  %v2669_v8 = vadd.f32 %v5417_v53, %v1093_v6  ;;  %v4022_v9 = vpop.f32.mrf.mxu0 }
  0xef   :  { %v4458_v11 = vpop.eup %4457  ;;  %3113 = vst.msk [vmem:[%s6823_s3 + $0x38] sm:$0xff] %vm3105_vm1, %v4456_v7  ;;  %4483 = vtanh.f32 %v2605_v5  ;;  %v2608_v12 = vadd.f32 %v4022_v9, %v5417_v53  ;;  %v4094_v13 = vpop.f32.mrf.mxu1  ;;  %v4426_v7 = vld [vmem:[%s6821_s0 + $0x3e8] sm:$0xff]  }
  0xf0   :  { %v4460_v16 = vpop.eup %4459  ;;  %3177 = vst.msk [vmem:[%s6823_s3 + $0x238] sm:$0xff] %vm3105_vm1, %v4458_v11  ;;  %4485 = vtanh.f32 %v2669_v8  ;;  %v2672_v17 = vadd.f32 %v4094_v13, %v5417_v53  ;;  %v453_v18 = vpop.f32.mrf.mxu0  ;;  %v4427_v8 = vld [vmem:[%s6821_s0 + $0x2f0] sm:$0xff]  }
  0xf1   :  { %v4462_v20 = vpop.eup %4461  ;;  %3111 = vst.msk [vmem:[%s6823_s3 + $0x28] sm:$0xff] %vm3105_vm1, %v4460_v16  ;;  %4487 = vtanh.f32 %v2608_v12  ;;  %v2606_v21 = vadd.f32 %v5417_v53, %v453_v18  ;;  %v1096_v22 = vpop.f32.mrf.mxu1  ;;  %v4428_v12 = vld [vmem:[%s6821_s0 + $0x3f0] sm:$0xff]  }
  0xf2   :  { %v4464_v23 = vpop.eup %4463  ;;  %3175 = vst.msk [vmem:[%s6823_s3 + $0x228] sm:$0xff] %vm3105_vm1, %v4462_v20  ;;  %4489 = vtanh.f32 %v2672_v17  ;;  %v2670_v24 = vadd.f32 %v5417_v53, %v1096_v22  ;;  %v4025_v25 = vpop.f32.mrf.mxu0  ;;  %4200 = vmatmul.mubr.msk.bf16.gmra.mxu0 %vm271_vm0, %v4417_v10 }
  0xf3   :  { %v4466_v26 = vpop.eup %4465  ;;  %3116 = vst.msk [vmem:[%s6823_s3 + $0x50] sm:$0xff] %vm3105_vm1, %v4464_v23  ;;  %4491 = vtanh.f32 %v2606_v21  ;;  %v2611_v27 = vadd.f32 %v4025_v25, %v5417_v53  ;;  %v4097_v28 = vpop.f32.mrf.mxu1  ;;  %4272 = vmatmul.mubr.msk.bf16.gmra.mxu1 %vm271_vm0, %v4418_v14  ;;  %4203 = vmatprep.mubr.msk.bf16.mxu0 %vm271_vm0, %v4419_v15 }
  0xf4   :  { %v4468_v29 = vpop.eup %4467  ;;  %3180 = vst.msk [vmem:[%s6823_s3 + $0x250] sm:$0xff] %vm3105_vm1, %v4466_v26  ;;  %4493 = vtanh.f32 %v2670_v24  ;;  %v2675_v30 = vadd.f32 %v4097_v28, %v5417_v53  ;;  %v466_v31 = vpop.f32.mrf.mxu0  ;;  %4275 = vmatprep.mubr.msk.bf16.mxu1 %vm271_vm0, %v4420_v19 }
  0xf5   :  { %v4470_v32 = vpop.eup %4469  ;;  %3114 = vst.msk [vmem:[%s6823_s3 + $0x40] sm:$0xff] %vm3105_vm1, %v4468_v29  ;;  %4495 = vtanh.f32 %v2611_v27  ;;  %v2609_v33 = vadd.f32 %v5417_v53, %v466_v31  ;;  %v1109_v34 = vpop.f32.mrf.mxu1  ;;  %v4429_v31 = vld [vmem:[%s6821_s0 + $0x2f8] sm:$0xff]  }
  0xf6   :  { %v4472_v35 = vpop.eup %4471  ;;  %3178 = vst.msk [vmem:[%s6823_s3 + $0x240] sm:$0xff] %vm3105_vm1, %v4470_v32  ;;  %4497 = vtanh.f32 %v2675_v30  ;;  %v2673_v36 = vadd.f32 %v5417_v53, %v1109_v34  ;;  %v4026_v37 = vpop.f32.mrf.mxu0 }
  0xf7   :  { %v4474_v39 = vpop.eup %4473  ;;  %3117 = vst.msk [vmem:[%s6823_s3 + $0x58] sm:$0xff] %vm3105_vm1, %v4472_v35  ;;  %4499 = vtanh.f32 %v2609_v33  ;;  %v2612_v40 = vadd.f32 %v4026_v37, %v5417_v53  ;;  %v4098_v41 = vpop.f32.mrf.mxu1  ;;  %v4430_v35 = vld [vmem:[%s6821_s0 + $0x3f8] sm:$0xff]  }
  0xf8   :  { %v4476_v44 = vpop.eup %4475  ;;  %3181 = vst.msk [vmem:[%s6823_s3 + $0x258] sm:$0xff] %vm3105_vm1, %v4474_v39  ;;  %4501 = vtanh.f32 %v2673_v36  ;;  %v2676_v45 = vadd.f32 %v4098_v41, %v5417_v53  ;;  %v469_v46 = vpop.f32.mrf.mxu0 }
  0xf9   :  { %v4478_v48 = vpop.eup %4477  ;;  %3115 = vst.msk [vmem:[%s6823_s3 + $0x48] sm:$0xff] %vm3105_vm1, %v4476_v44  ;;  %4503 = vtanh.f32 %v2612_v40  ;;  %v2610_v49 = vadd.f32 %v5417_v53, %v469_v46  ;;  %v1112_v50 = vpop.f32.mrf.mxu1 }
  0xfa   :  { %v4480_v51 = vpop.eup %4479  ;;  %3179 = vst.msk [vmem:[%s6823_s3 + $0x248] sm:$0xff] %vm3105_vm1, %v4478_v48  ;;  %4505 = vtanh.f32 %v2676_v45  ;;  %v2674_v52 = vadd.f32 %v5417_v53, %v1112_v50  ;;  %v4029_v54 = vpop.f32.mrf.mxu0  ;;  %4204 = vmatmul.mubr.msk.bf16.gmra.mxu0 %vm271_vm0, %v4421_v38 }
  0xfb   :  { %v4482_v55 = vpop.eup %4481  ;;  %3120 = vst.msk [vmem:[%s6823_s3 + $0x70] sm:$0xff] %vm3105_vm1, %v4480_v51  ;;  %4507 = vtanh.f32 %v2610_v49  ;;  %v2615_v56 = vadd.f32 %v4029_v54, %v5417_v53  ;;  %v4101_v57 = vpop.f32.mrf.mxu1  ;;  %4276 = vmatmul.mubr.msk.bf16.gmra.mxu1 %vm271_vm0, %v4422_v42  ;;  %4207 = vmatprep.mubr.msk.bf16.mxu0 %vm271_vm0, %v4423_v43 }
  0xfc   :  { %v4484_v58 = vpop.eup %4483  ;;  %3184 = vst.msk [vmem:[%s6823_s3 + $0x270] sm:$0xff] %vm3105_vm1, %v4482_v55  ;;  %4509 = vtanh.f32 %v2674_v52  ;;  %v2679_v59 = vadd.f32 %v4101_v57, %v5417_v53  ;;  %v482_v60 = vpop.f32.mrf.mxu0  ;;  %4279 = vmatprep.mubr.msk.bf16.mxu1 %vm271_vm0, %v4424_v47 }
  0xfd   :  { %v4486_v61 = vpop.eup %4485  ;;  %3118 = vst.msk [vmem:[%s6823_s3 + $0x60] sm:$0xff] %vm3105_vm1, %v4484_v58  ;;  %4511 = vtanh.f32 %v2615_v56  ;;  %v2613_v62 = vadd.f32 %v5417_v53, %v482_v60  ;;  %v1125_v63 = vpop.f32.mrf.mxu1 }
  0xfe   :  { %v4488_v0 = vpop.eup %4487  ;;  %3182 = vst.msk [vmem:[%s6823_s3 + $0x260] sm:$0xff] %vm3105_vm1, %v4486_v61  ;;  %4513 = vtanh.f32 %v2679_v59  ;;  %v2677_v1 = vadd.f32 %v5417_v53, %v1125_v63  ;;  %v4030_v2 = vpop.f32.mrf.mxu0 }
  0xff   :  { %v4490_v4 = vpop.eup %4489  ;;  %3121 = vst.msk [vmem:[%s6823_s3 + $0x78] sm:$0xff] %vm3105_vm1, %v4488_v0  ;;  %4515 = vtanh.f32 %v2613_v62  ;;  %v2616_v5 = vadd.f32 %v4030_v2, %v5417_v53  ;;  %v4102_v6 = vpop.f32.mrf.mxu1 }
 0x100   :  { %v4492_v9 = vpop.eup %4491  ;;  %3185 = vst.msk [vmem:[%s6823_s3 + $0x278] sm:$0xff] %vm3105_vm1, %v4490_v4  ;;  %4517 = vtanh.f32 %v2677_v1  ;;  %v2680_v10 = vadd.f32 %v4102_v6, %v5417_v53  ;;  %v485_v11 = vpop.f32.mrf.mxu0 }
 0x101   :  { %v4494_v13 = vpop.eup %4493  ;;  %3119 = vst.msk [vmem:[%s6823_s3 + $0x68] sm:$0xff] %vm3105_vm1, %v4492_v9  ;;  %4519 = vtanh.f32 %v2616_v5  ;;  %v2614_v14 = vadd.f32 %v5417_v53, %v485_v11  ;;  %v1128_v15 = vpop.f32.mrf.mxu1 }
 0x102   :  { %v4496_v16 = vpop.eup %4495  ;;  %3183 = vst.msk [vmem:[%s6823_s3 + $0x268] sm:$0xff] %vm3105_vm1, %v4494_v13  ;;  %4521 = vtanh.f32 %v2680_v10  ;;  %v2678_v17 = vadd.f32 %v5417_v53, %v1128_v15  ;;  %v4033_v18 = vpop.f32.mrf.mxu0  ;;  %4208 = vmatmul.mubr.msk.bf16.gmra.mxu0 %vm271_vm0, %v4425_v3 }
 0x103   :  { %v4498_v19 = vpop.eup %4497  ;;  %3124 = vst.msk [vmem:[%s6823_s3 + $0x90] sm:$0xff] %vm3105_vm1, %v4496_v16  ;;  %4523 = vtanh.f32 %v2614_v14  ;;  %v2619_v20 = vadd.f32 %v4033_v18, %v5417_v53  ;;  %v4105_v21 = vpop.f32.mrf.mxu1  ;;  %4280 = vmatmul.mubr.msk.bf16.gmra.mxu1 %vm271_vm0, %v4426_v7  ;;  %4211 = vmatprep.mubr.msk.bf16.mxu0 %vm271_vm0, %v4427_v8 }
 0x104   :  { %v4500_v22 = vpop.eup %4499  ;;  %3188 = vst.msk [vmem:[%s6823_s3 + $0x290] sm:$0xff] %vm3105_vm1, %v4498_v19  ;;  %4525 = vtanh.f32 %v2678_v17  ;;  %v2683_v23 = vadd.f32 %v4105_v21, %v5417_v53  ;;  %v498_v24 = vpop.f32.mrf.mxu0  ;;  %4283 = vmatprep.mubr.msk.bf16.mxu1 %vm271_vm0, %v4428_v12 }
 0x105   :  { %v4502_v25 = vpop.eup %4501  ;;  %3122 = vst.msk [vmem:[%s6823_s3 + $0x80] sm:$0xff] %vm3105_vm1, %v4500_v22  ;;  %4527 = vtanh.f32 %v2619_v20  ;;  %v2617_v26 = vadd.f32 %v5417_v53, %v498_v24  ;;  %v1141_v27 = vpop.f32.mrf.mxu1 }
 0x106   :  { %v4504_v28 = vpop.eup %4503  ;;  %3186 = vst.msk [vmem:[%s6823_s3 + $0x280] sm:$0xff] %vm3105_vm1, %v4502_v25  ;;  %4529 = vtanh.f32 %v2683_v23  ;;  %v2681_v29 = vadd.f32 %v5417_v53, %v1141_v27  ;;  %v4034_v30 = vpop.f32.mrf.mxu0 }
 0x107   :  { %v4506_v32 = vpop.eup %4505  ;;  %3125 = vst.msk [vmem:[%s6823_s3 + $0x98] sm:$0xff] %vm3105_vm1, %v4504_v28  ;;  %4531 = vtanh.f32 %v2617_v26  ;;  %v2620_v33 = vadd.f32 %v4034_v30, %v5417_v53  ;;  %v4106_v34 = vpop.f32.mrf.mxu1 }
 0x108   :  { %v4508_v36 = vpop.eup %4507  ;;  %3189 = vst.msk [vmem:[%s6823_s3 + $0x298] sm:$0xff] %vm3105_vm1, %v4506_v32  ;;  %4533 = vtanh.f32 %v2681_v29  ;;  %v2684_v37 = vadd.f32 %v4106_v34, %v5417_v53  ;;  %v501_v38 = vpop.f32.mrf.mxu0 }
 0x109   :  { %v4510_v39 = vpop.eup %4509  ;;  %3123 = vst.msk [vmem:[%s6823_s3 + $0x88] sm:$0xff] %vm3105_vm1, %v4508_v36  ;;  %4535 = vtanh.f32 %v2620_v33  ;;  %v2618_v40 = vadd.f32 %v5417_v53, %v501_v38  ;;  %v1144_v41 = vpop.f32.mrf.mxu1 }
 0x10a   :  { %v4512_v42 = vpop.eup %4511  ;;  %3187 = vst.msk [vmem:[%s6823_s3 + $0x288] sm:$0xff] %vm3105_vm1, %v4510_v39  ;;  %4537 = vtanh.f32 %v2684_v37  ;;  %v2682_v43 = vadd.f32 %v5417_v53, %v1144_v41  ;;  %v4037_v44 = vpop.f32.mrf.mxu0  ;;  %4212 = vmatmul.mubr.msk.bf16.gmra.mxu0 %vm271_vm0, %v4429_v31 }
 0x10b   :  { %v4514_v45 = vpop.eup %4513  ;;  %3128 = vst.msk [vmem:[%s6823_s3 + $0xb0] sm:$0xff] %vm3105_vm1, %v4512_v42  ;;  %4539 = vtanh.f32 %v2618_v40  ;;  %v2623_v46 = vadd.f32 %v4037_v44, %v5417_v53  ;;  %v4109_v47 = vpop.f32.mrf.mxu1  ;;  %4284 = vmatmul.mubr.msk.bf16.gmra.mxu1 %vm271_vm0, %v4430_v35 }
 0x10c   :  { %v4516_v48 = vpop.eup %4515  ;;  %3192 = vst.msk [vmem:[%s6823_s3 + $0x2b0] sm:$0xff] %vm3105_vm1, %v4514_v45  ;;  %4541 = vtanh.f32 %v2682_v43  ;;  %v2687_v49 = vadd.f32 %v4109_v47, %v5417_v53  ;;  %v514_v50 = vpop.f32.mrf.mxu0 }
 0x10d   :  { %v4518_v51 = vpop.eup %4517  ;;  %3126 = vst.msk [vmem:[%s6823_s3 + $0xa0] sm:$0xff] %vm3105_vm1, %v4516_v48  ;;  %4543 = vtanh.f32 %v2623_v46  ;;  %v2621_v52 = vadd.f32 %v5417_v53, %v514_v50  ;;  %v1157_v54 = vpop.f32.mrf.mxu1 }
 0x10e   :  { %v4520_v55 = vpop.eup %4519  ;;  %3190 = vst.msk [vmem:[%s6823_s3 + $0x2a0] sm:$0xff] %vm3105_vm1, %v4518_v51  ;;  %4545 = vtanh.f32 %v2687_v49  ;;  %v2685_v56 = vadd.f32 %v5417_v53, %v1157_v54  ;;  %v4038_v57 = vpop.f32.mrf.mxu0 }
 0x10f   :  { %v4522_v58 = vpop.eup %4521  ;;  %3129 = vst.msk [vmem:[%s6823_s3 + $0xb8] sm:$0xff] %vm3105_vm1, %v4520_v55  ;;  %4547 = vtanh.f32 %v2621_v52  ;;  %v2624_v59 = vadd.f32 %v4038_v57, %v5417_v53  ;;  %v4110_v60 = vpop.f32.mrf.mxu1 }
 0x110   :  { %v4524_v61 = vpop.eup %4523  ;;  %3193 = vst.msk [vmem:[%s6823_s3 + $0x2b8] sm:$0xff] %vm3105_vm1, %v4522_v58  ;;  %4549 = vtanh.f32 %v2685_v56  ;;  %v2688_v62 = vadd.f32 %v4110_v60, %v5417_v53  ;;  %v517_v63 = vpop.f32.mrf.mxu0 }
 0x111   :  { %v4526_v0 = vpop.eup %4525  ;;  %3127 = vst.msk [vmem:[%s6823_s3 + $0xa8] sm:$0xff] %vm3105_vm1, %v4524_v61  ;;  %4551 = vtanh.f32 %v2624_v59  ;;  %v2622_v1 = vadd.f32 %v5417_v53, %v517_v63  ;;  %v1160_v2 = vpop.f32.mrf.mxu1 }
 0x112   :  { %v4528_v3 = vpop.eup %4527  ;;  %3191 = vst.msk [vmem:[%s6823_s3 + $0x2a8] sm:$0xff] %vm3105_vm1, %v4526_v0  ;;  %4553 = vtanh.f32 %v2688_v62  ;;  %v2686_v4 = vadd.f32 %v5417_v53, %v1160_v2  ;;  %v4041_v5 = vpop.f32.mrf.mxu0 }
 0x113   :  { %v4530_v6 = vpop.eup %4529  ;;  %3132 = vst.msk [vmem:[%s6823_s3 + $0xd0] sm:$0xff] %vm3105_vm1, %v4528_v3  ;;  %4555 = vtanh.f32 %v2622_v1  ;;  %v2627_v7 = vadd.f32 %v4041_v5, %v5417_v53  ;;  %v4113_v8 = vpop.f32.mrf.mxu1 }
 0x114   :  { %v4532_v9 = vpop.eup %4531  ;;  %3196 = vst.msk [vmem:[%s6823_s3 + $0x2d0] sm:$0xff] %vm3105_vm1, %v4530_v6  ;;  %4557 = vtanh.f32 %v2686_v4  ;;  %v2691_v10 = vadd.f32 %v4113_v8, %v5417_v53  ;;  %v530_v11 = vpop.f32.mrf.mxu0 }
 0x115   :  { %v4534_v12 = vpop.eup %4533  ;;  %3130 = vst.msk [vmem:[%s6823_s3 + $0xc0] sm:$0xff] %vm3105_vm1, %v4532_v9  ;;  %4559 = vtanh.f32 %v2627_v7  ;;  %v2625_v13 = vadd.f32 %v5417_v53, %v530_v11  ;;  %v1173_v14 = vpop.f32.mrf.mxu1 }
 0x116   :  { %v4536_v15 = vpop.eup %4535  ;;  %3194 = vst.msk [vmem:[%s6823_s3 + $0x2c0] sm:$0xff] %vm3105_vm1, %v4534_v12  ;;  %4561 = vtanh.f32 %v2691_v10  ;;  %v2689_v16 = vadd.f32 %v5417_v53, %v1173_v14  ;;  %v4042_v17 = vpop.f32.mrf.mxu0 }
 0x117   :  { %v4538_v18 = vpop.eup %4537  ;;  %3133 = vst.msk [vmem:[%s6823_s3 + $0xd8] sm:$0xff] %vm3105_vm1, %v4536_v15  ;;  %4563 = vtanh.f32 %v2625_v13  ;;  %v2628_v19 = vadd.f32 %v4042_v17, %v5417_v53  ;;  %v4114_v20 = vpop.f32.mrf.mxu1 }
 0x118   :  { %v4540_v21 = vpop.eup %4539  ;;  %3197 = vst.msk [vmem:[%s6823_s3 + $0x2d8] sm:$0xff] %vm3105_vm1, %v4538_v18  ;;  %4565 = vtanh.f32 %v2689_v16  ;;  %v2692_v22 = vadd.f32 %v4114_v20, %v5417_v53  ;;  %v533_v23 = vpop.f32.mrf.mxu0 }
 0x119   :  { %v4542_v24 = vpop.eup %4541  ;;  %3131 = vst.msk [vmem:[%s6823_s3 + $0xc8] sm:$0xff] %vm3105_vm1, %v4540_v21  ;;  %4567 = vtanh.f32 %v2628_v19  ;;  %v2626_v25 = vadd.f32 %v5417_v53, %v533_v23  ;;  %v1176_v26 = vpop.f32.mrf.mxu1 }
 0x11a   :  { %v4544_v27 = vpop.eup %4543  ;;  %3195 = vst.msk [vmem:[%s6823_s3 + $0x2c8] sm:$0xff] %vm3105_vm1, %v4542_v24  ;;  %4569 = vtanh.f32 %v2692_v22  ;;  %v2690_v28 = vadd.f32 %v5417_v53, %v1176_v26  ;;  %v4045_v29 = vpop.f32.mrf.mxu0 }
 0x11b   :  { %v4546_v30 = vpop.eup %4545  ;;  %3136 = vst.msk [vmem:[%s6823_s3 + $0xf0] sm:$0xff] %vm3105_vm1, %v4544_v27  ;;  %4571 = vtanh.f32 %v2626_v25  ;;  %v2631_v31 = vadd.f32 %v4045_v29, %v5417_v53  ;;  %v4117_v32 = vpop.f32.mrf.mxu1 }
 0x11c   :  { %v4548_v33 = vpop.eup %4547  ;;  %3200 = vst.msk [vmem:[%s6823_s3 + $0x2f0] sm:$0xff] %vm3105_vm1, %v4546_v30  ;;  %4573 = vtanh.f32 %v2690_v28  ;;  %v2695_v34 = vadd.f32 %v4117_v32, %v5417_v53  ;;  %v546_v35 = vpop.f32.mrf.mxu0 }
 0x11d   :  { %v4550_v36 = vpop.eup %4549  ;;  %3134 = vst.msk [vmem:[%s6823_s3 + $0xe0] sm:$0xff] %vm3105_vm1, %v4548_v33  ;;  %4575 = vtanh.f32 %v2631_v31  ;;  %v2629_v37 = vadd.f32 %v5417_v53, %v546_v35  ;;  %v1189_v38 = vpop.f32.mrf.mxu1 }
 0x11e   :  { %v4552_v39 = vpop.eup %4551  ;;  %3198 = vst.msk [vmem:[%s6823_s3 + $0x2e0] sm:$0xff] %vm3105_vm1, %v4550_v36  ;;  %4577 = vtanh.f32 %v2695_v34  ;;  %v2693_v40 = vadd.f32 %v5417_v53, %v1189_v38  ;;  %v4046_v41 = vpop.f32.mrf.mxu0 }
 0x11f   :  { %v4554_v42 = vpop.eup %4553  ;;  %3137 = vst.msk [vmem:[%s6823_s3 + $0xf8] sm:$0xff] %vm3105_vm1, %v4552_v39  ;;  %4579 = vtanh.f32 %v2629_v37  ;;  %v2632_v43 = vadd.f32 %v4046_v41, %v5417_v53  ;;  %v4118_v44 = vpop.f32.mrf.mxu1 }
 0x120   :  { %v4556_v45 = vpop.eup %4555  ;;  %3201 = vst.msk [vmem:[%s6823_s3 + $0x2f8] sm:$0xff] %vm3105_vm1, %v4554_v42  ;;  %4581 = vtanh.f32 %v2693_v40  ;;  %v2696_v46 = vadd.f32 %v4118_v44, %v5417_v53  ;;  %v549_v47 = vpop.f32.mrf.mxu0 }
 0x121   :  { %v4558_v48 = vpop.eup %4557  ;;  %3135 = vst.msk [vmem:[%s6823_s3 + $0xe8] sm:$0xff] %vm3105_vm1, %v4556_v45  ;;  %4583 = vtanh.f32 %v2632_v43  ;;  %v2630_v49 = vadd.f32 %v5417_v53, %v549_v47  ;;  %v1192_v50 = vpop.f32.mrf.mxu1  ;;  %v5958_v43 = vld [vmem:[%s6822_s2] ss:$0 sm:$0xff] }
 0x122   :  { %v4560_v51 = vpop.eup %4559  ;;  %3199 = vst.msk [vmem:[%s6823_s3 + $0x2e8] sm:$0xff] %vm3105_vm1, %v4558_v48  ;;  %4585 = vtanh.f32 %v2696_v46  ;;  %v2694_v52 = vadd.f32 %v5417_v53, %v1192_v50  ;;  %v4049_v54 = vpop.f32.mrf.mxu0 }
 0x123   :  { %v4562_v55 = vpop.eup %4561  ;;  %3140 = vst.msk [vmem:[%s6823_s3 + $0x110] sm:$0xff] %vm3105_vm1, %v4560_v51  ;;  %4587 = vtanh.f32 %v2630_v49  ;;  %v2635_v56 = vadd.f32 %v4049_v54, %v5417_v53  ;;  %v4121_v57 = vpop.f32.mrf.mxu1 }
 0x124   :  { %v4564_v58 = vpop.eup %4563  ;;  %3204 = vst.msk [vmem:[%s6823_s3 + $0x310] sm:$0xff] %vm3105_vm1, %v4562_v55  ;;  %4589 = vtanh.f32 %v2694_v52  ;;  %v2699_v59 = vadd.f32 %v4121_v57, %v5417_v53  ;;  %v562_v60 = vpop.f32.mrf.mxu0 }
 0x125   :  { %v4566_v61 = vpop.eup %4565  ;;  %3138 = vst.msk [vmem:[%s6823_s3 + $0x100] sm:$0xff] %vm3105_vm1, %v4564_v58  ;;  %4591 = vtanh.f32 %v2635_v56  ;;  %v2633_v62 = vadd.f32 %v5417_v53, %v562_v60  ;;  %v1205_v63 = vpop.f32.mrf.mxu1 }
 0x126   :  { %v4568_v0 = vpop.eup %4567  ;;  %3202 = vst.msk [vmem:[%s6823_s3 + $0x300] sm:$0xff] %vm3105_vm1, %v4566_v61  ;;  %4593 = vtanh.f32 %v2699_v59  ;;  %v2697_v1 = vadd.f32 %v5417_v53, %v1205_v63  ;;  %v4050_v2 = vpop.f32.mrf.mxu0 }
 0x127   :  { %v4570_v3 = vpop.eup %4569  ;;  %3141 = vst.msk [vmem:[%s6823_s3 + $0x118] sm:$0xff] %vm3105_vm1, %v4568_v0  ;;  %4595 = vtanh.f32 %v2633_v62  ;;  %v2636_v4 = vadd.f32 %v4050_v2, %v5417_v53  ;;  %v4122_v5 = vpop.f32.mrf.mxu1 }
 0x128   :  { %v4572_v6 = vpop.eup %4571  ;;  %3205 = vst.msk [vmem:[%s6823_s3 + $0x318] sm:$0xff] %vm3105_vm1, %v4570_v3  ;;  %4597 = vtanh.f32 %v2697_v1  ;;  %v2700_v7 = vadd.f32 %v4122_v5, %v5417_v53  ;;  %v565_v8 = vpop.f32.mrf.mxu0 }
 0x129   :  { %v4574_v9 = vpop.eup %4573  ;;  %3139 = vst.msk [vmem:[%s6823_s3 + $0x108] sm:$0xff] %vm3105_vm1, %v4572_v6  ;;  %4599 = vtanh.f32 %v2636_v4  ;;  %v2634_v10 = vadd.f32 %v5417_v53, %v565_v8  ;;  %v1208_v11 = vpop.f32.mrf.mxu1 }
 0x12a   :  { %v4576_v12 = vpop.eup %4575  ;;  %3203 = vst.msk [vmem:[%s6823_s3 + $0x308] sm:$0xff] %vm3105_vm1, %v4574_v9  ;;  %4601 = vtanh.f32 %v2700_v7  ;;  %v2698_v13 = vadd.f32 %v5417_v53, %v1208_v11  ;;  %v4053_v14 = vpop.f32.mrf.mxu0 }
 0x12b   :  { %v4578_v15 = vpop.eup %4577  ;;  %3144 = vst.msk [vmem:[%s6823_s3 + $0x130] sm:$0xff] %vm3105_vm1, %v4576_v12  ;;  %4603 = vtanh.f32 %v2634_v10  ;;  %v2639_v16 = vadd.f32 %v4053_v14, %v5417_v53  ;;  %v4125_v17 = vpop.f32.mrf.mxu1 }
 0x12c   :  { %v4580_v18 = vpop.eup %4579  ;;  %3208 = vst.msk [vmem:[%s6823_s3 + $0x330] sm:$0xff] %vm3105_vm1, %v4578_v15  ;;  %4605 = vtanh.f32 %v2698_v13  ;;  %v2703_v19 = vadd.f32 %v4125_v17, %v5417_v53  ;;  %v578_v20 = vpop.f32.mrf.mxu0 }
 0x12d   :  { %v4582_v21 = vpop.eup %4581  ;;  %3142 = vst.msk [vmem:[%s6823_s3 + $0x120] sm:$0xff] %vm3105_vm1, %v4580_v18  ;;  %4607 = vtanh.f32 %v2639_v16  ;;  %v2637_v22 = vadd.f32 %v5417_v53, %v578_v20  ;;  %v1221_v23 = vpop.f32.mrf.mxu1 }
 0x12e   :  { %v4584_v24 = vpop.eup %4583  ;;  %3206 = vst.msk [vmem:[%s6823_s3 + $0x320] sm:$0xff] %vm3105_vm1, %v4582_v21  ;;  %4609 = vtanh.f32 %v2703_v19  ;;  %v2701_v25 = vadd.f32 %v5417_v53, %v1221_v23  ;;  %v4054_v26 = vpop.f32.mrf.mxu0 }
 0x12f   :  { %v4586_v27 = vpop.eup %4585  ;;  %3145 = vst.msk [vmem:[%s6823_s3 + $0x138] sm:$0xff] %vm3105_vm1, %v4584_v24  ;;  %4611 = vtanh.f32 %v2637_v22  ;;  %v2640_v28 = vadd.f32 %v4054_v26, %v5417_v53  ;;  %v4126_v29 = vpop.f32.mrf.mxu1 }
 0x130   :  { %v4588_v30 = vpop.eup %4587  ;;  %3209 = vst.msk [vmem:[%s6823_s3 + $0x338] sm:$0xff] %vm3105_vm1, %v4586_v27  ;;  %4613 = vtanh.f32 %v2701_v25  ;;  %v2704_v31 = vadd.f32 %v4126_v29, %v5417_v53  ;;  %v581_v32 = vpop.f32.mrf.mxu0 }
 0x131   :  { %v4590_v33 = vpop.eup %4589  ;;  %3143 = vst.msk [vmem:[%s6823_s3 + $0x128] sm:$0xff] %vm3105_vm1, %v4588_v30  ;;  %4615 = vtanh.f32 %v2640_v28  ;;  %v2638_v34 = vadd.f32 %v5417_v53, %v581_v32  ;;  %v1224_v35 = vpop.f32.mrf.mxu1 }
 0x132   :  { %v4592_v36 = vpop.eup %4591  ;;  %3207 = vst.msk [vmem:[%s6823_s3 + $0x328] sm:$0xff] %vm3105_vm1, %v4590_v33  ;;  %4617 = vtanh.f32 %v2704_v31  ;;  %v2702_v37 = vadd.f32 %v5417_v53, %v1224_v35  ;;  %v4057_v38 = vpop.f32.mrf.mxu0 }
 0x133   :  { %v4594_v39 = vpop.eup %4593  ;;  %3148 = vst.msk [vmem:[%s6823_s3 + $0x150] sm:$0xff] %vm3105_vm1, %v4592_v36  ;;  %4619 = vtanh.f32 %v2638_v34  ;;  %v2643_v40 = vadd.f32 %v4057_v38, %v5417_v53  ;;  %v4129_v41 = vpop.f32.mrf.mxu1 }
 0x134   :  { %v4596_v42 = vpop.eup %4595  ;;  %3212 = vst.msk [vmem:[%s6823_s3 + $0x350] sm:$0xff] %vm3105_vm1, %v4594_v39  ;;  %4621 = vtanh.f32 %v2702_v37  ;;  %v2707_v44 = vadd.f32 %v5958_v43, %v4129_v41  ;;  %v594_v45 = vpop.f32.mrf.mxu0 }
 0x135   :  { %v4598_v46 = vpop.eup %4597  ;;  %3146 = vst.msk [vmem:[%s6823_s3 + $0x140] sm:$0xff] %vm3105_vm1, %v4596_v42  ;;  %4623 = vtanh.f32 %v2643_v40  ;;  %v2641_v53 = vadd.f32 %v5958_v43, %v594_v45  ;;  %v1237_v47 = vpop.f32.mrf.mxu1 }
 0x136   :  { %v4600_v48 = vpop.eup %4599  ;;  %3210 = vst.msk [vmem:[%s6823_s3 + $0x340] sm:$0xff] %vm3105_vm1, %v4598_v46  ;;  %4625 = vtanh.f32 %v2707_v44  ;;  %v2705_v49 = vadd.f32 %v5958_v43, %v1237_v47  ;;  %v4058_v50 = vpop.f32.mrf.mxu0 }
 0x137   :  { %v4602_v51 = vpop.eup %4601  ;;  %3149 = vst.msk [vmem:[%s6823_s3 + $0x158] sm:$0xff] %vm3105_vm1, %v4600_v48  ;;  %4627 = vtanh.f32 %v2641_v53  ;;  %v2644_v52 = vadd.f32 %v5958_v43, %v4058_v50  ;;  %v4130_v54 = vpop.f32.mrf.mxu1 }
 0x138   :  { %v4604_v55 = vpop.eup %4603  ;;  %3213 = vst.msk [vmem:[%s6823_s3 + $0x358] sm:$0xff] %vm3105_vm1, %v4602_v51  ;;  %4629 = vtanh.f32 %v2705_v49  ;;  %v2708_v56 = vadd.f32 %v5958_v43, %v4130_v54  ;;  %v597_v57 = vpop.f32.mrf.mxu0 }
 0x139   :  { %v4606_v58 = vpop.eup %4605  ;;  %3147 = vst.msk [vmem:[%s6823_s3 + $0x148] sm:$0xff] %vm3105_vm1, %v4604_v55  ;;  %4631 = vtanh.f32 %v2644_v52  ;;  %v2642_v59 = vadd.f32 %v5958_v43, %v597_v57  ;;  %v1240_v60 = vpop.f32.mrf.mxu1 }
 0x13a   :  { %v4608_v61 = vpop.eup %4607  ;;  %3211 = vst.msk [vmem:[%s6823_s3 + $0x348] sm:$0xff] %vm3105_vm1, %v4606_v58  ;;  %4633 = vtanh.f32 %v2708_v56  ;;  %v2706_v62 = vadd.f32 %v5958_v43, %v1240_v60  ;;  %v4061_v63 = vpop.f32.mrf.mxu0 }
 0x13b   :  { %v4610_v0 = vpop.eup %4609  ;;  %3152 = vst.msk [vmem:[%s6823_s3 + $0x170] sm:$0xff] %vm3105_vm1, %v4608_v61  ;;  %4635 = vtanh.f32 %v2642_v59  ;;  %v2647_v1 = vadd.f32 %v5958_v43, %v4061_v63  ;;  %v4133_v2 = vpop.f32.mrf.mxu1 }
 0x13c   :  { %v4612_v3 = vpop.eup %4611  ;;  %3216 = vst.msk [vmem:[%s6823_s3 + $0x370] sm:$0xff] %vm3105_vm1, %v4610_v0  ;;  %4637 = vtanh.f32 %v2706_v62  ;;  %v2711_v4 = vadd.f32 %v5958_v43, %v4133_v2  ;;  %v610_v5 = vpop.f32.mrf.mxu0 }
 0x13d   :  { %v4614_v6 = vpop.eup %4613  ;;  %3150 = vst.msk [vmem:[%s6823_s3 + $0x160] sm:$0xff] %vm3105_vm1, %v4612_v3  ;;  %4639 = vtanh.f32 %v2647_v1  ;;  %v2645_v7 = vadd.f32 %v5958_v43, %v610_v5  ;;  %v1253_v8 = vpop.f32.mrf.mxu1 }
 0x13e   :  { %v4616_v9 = vpop.eup %4615  ;;  %3214 = vst.msk [vmem:[%s6823_s3 + $0x360] sm:$0xff] %vm3105_vm1, %v4614_v6  ;;  %4641 = vtanh.f32 %v2711_v4  ;;  %v2709_v10 = vadd.f32 %v5958_v43, %v1253_v8  ;;  %v4062_v11 = vpop.f32.mrf.mxu0 }
 0x13f   :  { %v4618_v12 = vpop.eup %4617  ;;  %3153 = vst.msk [vmem:[%s6823_s3 + $0x178] sm:$0xff] %vm3105_vm1, %v4616_v9  ;;  %4643 = vtanh.f32 %v2645_v7  ;;  %v2648_v13 = vadd.f32 %v5958_v43, %v4062_v11  ;;  %v4134_v14 = vpop.f32.mrf.mxu1 }
 0x140   :  { %v4620_v15 = vpop.eup %4619  ;;  %3217 = vst.msk [vmem:[%s6823_s3 + $0x378] sm:$0xff] %vm3105_vm1, %v4618_v12  ;;  %4645 = vtanh.f32 %v2709_v10  ;;  %v2712_v16 = vadd.f32 %v5958_v43, %v4134_v14  ;;  %v613_v17 = vpop.f32.mrf.mxu0 }
 0x141   :  { %v4622_v18 = vpop.eup %4621  ;;  %3151 = vst.msk [vmem:[%s6823_s3 + $0x168] sm:$0xff] %vm3105_vm1, %v4620_v15  ;;  %4647 = vtanh.f32 %v2648_v13  ;;  %v2646_v19 = vadd.f32 %v5958_v43, %v613_v17  ;;  %v1256_v20 = vpop.f32.mrf.mxu1 }
 0x142   :  { %v4624_v21 = vpop.eup %4623  ;;  %3215 = vst.msk [vmem:[%s6823_s3 + $0x368] sm:$0xff] %vm3105_vm1, %v4622_v18  ;;  %4649 = vtanh.f32 %v2712_v16  ;;  %v2710_v22 = vadd.f32 %v5958_v43, %v1256_v20  ;;  %v4065_v23 = vpop.f32.mrf.mxu0 }
 0x143   :  { %v4626_v24 = vpop.eup %4625  ;;  %3156 = vst.msk [vmem:[%s6823_s3 + $0x190] sm:$0xff] %vm3105_vm1, %v4624_v21  ;;  %4651 = vtanh.f32 %v2646_v19  ;;  %v2651_v25 = vadd.f32 %v5958_v43, %v4065_v23  ;;  %v4137_v26 = vpop.f32.mrf.mxu1 }
 0x144   :  { %v4628_v27 = vpop.eup %4627  ;;  %3220 = vst.msk [vmem:[%s6823_s3 + $0x390] sm:$0xff] %vm3105_vm1, %v4626_v24  ;;  %4653 = vtanh.f32 %v2710_v22  ;;  %v2715_v28 = vadd.f32 %v5958_v43, %v4137_v26  ;;  %v626_v29 = vpop.f32.mrf.mxu0 }
 0x145   :  { %v4630_v30 = vpop.eup %4629  ;;  %3154 = vst.msk [vmem:[%s6823_s3 + $0x180] sm:$0xff] %vm3105_vm1, %v4628_v27  ;;  %4655 = vtanh.f32 %v2651_v25  ;;  %v2649_v31 = vadd.f32 %v5958_v43, %v626_v29  ;;  %v1269_v32 = vpop.f32.mrf.mxu1 }
 0x146   :  { %v4632_v33 = vpop.eup %4631  ;;  %3218 = vst.msk [vmem:[%s6823_s3 + $0x380] sm:$0xff] %vm3105_vm1, %v4630_v30  ;;  %4657 = vtanh.f32 %v2715_v28  ;;  %v2713_v34 = vadd.f32 %v5958_v43, %v1269_v32  ;;  %v4066_v35 = vpop.f32.mrf.mxu0 }
 0x147   :  { %v4634_v36 = vpop.eup %4633  ;;  %3157 = vst.msk [vmem:[%s6823_s3 + $0x198] sm:$0xff] %vm3105_vm1, %v4632_v33  ;;  %4659 = vtanh.f32 %v2649_v31  ;;  %v2652_v37 = vadd.f32 %v5958_v43, %v4066_v35  ;;  %v4138_v38 = vpop.f32.mrf.mxu1 }
 0x148   :  { %v4636_v39 = vpop.eup %4635  ;;  %3221 = vst.msk [vmem:[%s6823_s3 + $0x398] sm:$0xff] %vm3105_vm1, %v4634_v36  ;;  %4661 = vtanh.f32 %v2713_v34  ;;  %v2716_v40 = vadd.f32 %v5958_v43, %v4138_v38  ;;  %v629_v41 = vpop.f32.mrf.mxu0 }
 0x149   :  { %v4638_v42 = vpop.eup %4637  ;;  %3155 = vst.msk [vmem:[%s6823_s3 + $0x188] sm:$0xff] %vm3105_vm1, %v4636_v39  ;;  %4663 = vtanh.f32 %v2652_v37  ;;  %v2650_v44 = vadd.f32 %v5958_v43, %v629_v41  ;;  %v1272_v45 = vpop.f32.mrf.mxu1 }
 0x14a   :  { %v4640_v46 = vpop.eup %4639  ;;  %3219 = vst.msk [vmem:[%s6823_s3 + $0x388] sm:$0xff] %vm3105_vm1, %v4638_v42  ;;  %4665 = vtanh.f32 %v2716_v40  ;;  %v2714_v53 = vadd.f32 %v5958_v43, %v1272_v45  ;;  %v4069_v47 = vpop.f32.mrf.mxu0 }
 0x14b   :  { %v4642_v48 = vpop.eup %4641  ;;  %3160 = vst.msk [vmem:[%s6823_s3 + $0x1b0] sm:$0xff] %vm3105_vm1, %v4640_v46  ;;  %4667 = vtanh.f32 %v2650_v44  ;;  %v2655_v49 = vadd.f32 %v5958_v43, %v4069_v47  ;;  %v4141_v50 = vpop.f32.mrf.mxu1 }
 0x14c   :  { %v4644_v51 = vpop.eup %4643  ;;  %3224 = vst.msk [vmem:[%s6823_s3 + $0x3b0] sm:$0xff] %vm3105_vm1, %v4642_v48  ;;  %4669 = vtanh.f32 %v2714_v53  ;;  %v2719_v52 = vadd.f32 %v5958_v43, %v4141_v50  ;;  %v642_v54 = vpop.f32.mrf.mxu0 }
 0x14d   :  { %v4646_v55 = vpop.eup %4645  ;;  %3158 = vst.msk [vmem:[%s6823_s3 + $0x1a0] sm:$0xff] %vm3105_vm1, %v4644_v51  ;;  %4671 = vtanh.f32 %v2655_v49  ;;  %v2653_v56 = vadd.f32 %v5958_v43, %v642_v54  ;;  %v1285_v57 = vpop.f32.mrf.mxu1 }
 0x14e   :  { %v4648_v58 = vpop.eup %4647  ;;  %3222 = vst.msk [vmem:[%s6823_s3 + $0x3a0] sm:$0xff] %vm3105_vm1, %v4646_v55  ;;  %4673 = vtanh.f32 %v2719_v52  ;;  %v2717_v59 = vadd.f32 %v5958_v43, %v1285_v57  ;;  %v4070_v60 = vpop.f32.mrf.mxu0 }
 0x14f   :  { %v4650_v61 = vpop.eup %4649  ;;  %3161 = vst.msk [vmem:[%s6823_s3 + $0x1b8] sm:$0xff] %vm3105_vm1, %v4648_v58  ;;  %4675 = vtanh.f32 %v2653_v56  ;;  %v2656_v62 = vadd.f32 %v5958_v43, %v4070_v60  ;;  %v4142_v63 = vpop.f32.mrf.mxu1 }
 0x150   :  { %v4652_v0 = vpop.eup %4651  ;;  %3225 = vst.msk [vmem:[%s6823_s3 + $0x3b8] sm:$0xff] %vm3105_vm1, %v4650_v61  ;;  %4677 = vtanh.f32 %v2717_v59  ;;  %v2720_v1 = vadd.f32 %v5958_v43, %v4142_v63  ;;  %v645_v2 = vpop.f32.mrf.mxu0 }
 0x151   :  { %v4654_v3 = vpop.eup %4653  ;;  %3159 = vst.msk [vmem:[%s6823_s3 + $0x1a8] sm:$0xff] %vm3105_vm1, %v4652_v0  ;;  %4679 = vtanh.f32 %v2656_v62  ;;  %v2654_v4 = vadd.f32 %v5958_v43, %v645_v2  ;;  %v1288_v5 = vpop.f32.mrf.mxu1 }
 0x152   :  { %v4656_v6 = vpop.eup %4655  ;;  %3223 = vst.msk [vmem:[%s6823_s3 + $0x3a8] sm:$0xff] %vm3105_vm1, %v4654_v3  ;;  %4681 = vtanh.f32 %v2720_v1  ;;  %v2718_v7 = vadd.f32 %v5958_v43, %v1288_v5  ;;  %v4153_v8 = vpop.f32.mrf.mxu0 }
 0x153   :  { %v4658_v9 = vpop.eup %4657  ;;  %3164 = vst.msk [vmem:[%s6823_s3 + $0x1d0] sm:$0xff] %vm3105_vm1, %v4656_v6  ;;  %4683 = vtanh.f32 %v2654_v4  ;;  %v2723_v10 = vadd.f32 %v5958_v43, %v4153_v8  ;;  %v4225_v11 = vpop.f32.mrf.mxu1 }
 0x154   :  { %v4660_v12 = vpop.eup %4659  ;;  %3228 = vst.msk [vmem:[%s6823_s3 + $0x3d0] sm:$0xff] %vm3105_vm1, %v4658_v9  ;;  %4685 = vtanh.f32 %v2718_v7  ;;  %v2787_v13 = vadd.f32 %v5958_v43, %v4225_v11  ;;  %v1688_v14 = vpop.f32.mrf.mxu0 }
 0x155   :  { %v4662_v15 = vpop.eup %4661  ;;  %3162 = vst.msk [vmem:[%s6823_s3 + $0x1c0] sm:$0xff] %vm3105_vm1, %v4660_v12  ;;  %4687 = vtanh.f32 %v2723_v10  ;;  %v2721_v16 = vadd.f32 %v5958_v43, %v1688_v14  ;;  %v2331_v17 = vpop.f32.mrf.mxu1 }
 0x156   :  { %v4664_v18 = vpop.eup %4663  ;;  %3226 = vst.msk [vmem:[%s6823_s3 + $0x3c0] sm:$0xff] %vm3105_vm1, %v4662_v15  ;;  %4689 = vtanh.f32 %v2787_v13  ;;  %v2785_v19 = vadd.f32 %v5958_v43, %v2331_v17  ;;  %v4154_v20 = vpop.f32.mrf.mxu0 }
 0x157   :  { %v4666_v21 = vpop.eup %4665  ;;  %3165 = vst.msk [vmem:[%s6823_s3 + $0x1d8] sm:$0xff] %vm3105_vm1, %v4664_v18  ;;  %4691 = vtanh.f32 %v2721_v16  ;;  %v2724_v22 = vadd.f32 %v5958_v43, %v4154_v20  ;;  %v4226_v23 = vpop.f32.mrf.mxu1 }
 0x158   :  { %v4668_v24 = vpop.eup %4667  ;;  %3229 = vst.msk [vmem:[%s6823_s3 + $0x3d8] sm:$0xff] %vm3105_vm1, %v4666_v21  ;;  %4693 = vtanh.f32 %v2785_v19  ;;  %v2788_v25 = vadd.f32 %v5958_v43, %v4226_v23  ;;  %v1691_v26 = vpop.f32.mrf.mxu0 }
 0x159   :  { %v4670_v27 = vpop.eup %4669  ;;  %3163 = vst.msk [vmem:[%s6823_s3 + $0x1c8] sm:$0xff] %vm3105_vm1, %v4668_v24  ;;  %4695 = vtanh.f32 %v2724_v22  ;;  %v2722_v28 = vadd.f32 %v5958_v43, %v1691_v26  ;;  %v2334_v29 = vpop.f32.mrf.mxu1 }
 0x15a   :  { %v4672_v30 = vpop.eup %4671  ;;  %3227 = vst.msk [vmem:[%s6823_s3 + $0x3c8] sm:$0xff] %vm3105_vm1, %v4670_v27  ;;  %4697 = vtanh.f32 %v2788_v25  ;;  %v2786_v31 = vadd.f32 %v5958_v43, %v2334_v29  ;;  %v4157_v32 = vpop.f32.mrf.mxu0 }
 0x15b   :  { %v4674_v33 = vpop.eup %4673  ;;  %3168 = vst.msk [vmem:[%s6823_s3 + $0x1f0] sm:$0xff] %vm3105_vm1, %v4672_v30  ;;  %4699 = vtanh.f32 %v2722_v28  ;;  %v2727_v34 = vadd.f32 %v5958_v43, %v4157_v32  ;;  %v4229_v35 = vpop.f32.mrf.mxu1 }
 0x15c   :  { %v4676_v36 = vpop.eup %4675  ;;  %3232 = vst.msk [vmem:[%s6823_s3 + $0x3f0] sm:$0xff] %vm3105_vm1, %v4674_v33  ;;  %4701 = vtanh.f32 %v2786_v31  ;;  %v2791_v37 = vadd.f32 %v5958_v43, %v4229_v35  ;;  %v1704_v38 = vpop.f32.mrf.mxu0 }
 0x15d   :  { %v4678_v39 = vpop.eup %4677  ;;  %3166 = vst.msk [vmem:[%s6823_s3 + $0x1e0] sm:$0xff] %vm3105_vm1, %v4676_v36  ;;  %4703 = vtanh.f32 %v2727_v34  ;;  %v2725_v40 = vadd.f32 %v5958_v43, %v1704_v38  ;;  %v2347_v41 = vpop.f32.mrf.mxu1 }
 0x15e   :  { %v4680_v42 = vpop.eup %4679  ;;  %3230 = vst.msk [vmem:[%s6823_s3 + $0x3e0] sm:$0xff] %vm3105_vm1, %v4678_v39  ;;  %4705 = vtanh.f32 %v2791_v37  ;;  %v2789_v44 = vadd.f32 %v5958_v43, %v2347_v41  ;;  %v4158_v45 = vpop.f32.mrf.mxu0 }
 0x15f   :  { %v4682_v46 = vpop.eup %4681  ;;  %3169 = vst.msk [vmem:[%s6823_s3 + $0x1f8] sm:$0xff] %vm3105_vm1, %v4680_v42  ;;  %4707 = vtanh.f32 %v2725_v40  ;;  %v2728_v53 = vadd.f32 %v5958_v43, %v4158_v45  ;;  %v4230_v47 = vpop.f32.mrf.mxu1 }
 0x160   :  { %v4684_v48 = vpop.eup %4683  ;;  %3233 = vst.msk [vmem:[%s6823_s3 + $0x3f8] sm:$0xff] %vm3105_vm1, %v4682_v46  ;;  %4709 = vtanh.f32 %v2789_v44  ;;  %v2792_v49 = vadd.f32 %v5958_v43, %v4230_v47  ;;  %v1707_v50 = vpop.f32.mrf.mxu0 }
 0x161   :  { %v4686_v51 = vpop.eup %4685  ;;  %3167 = vst.msk [vmem:[%s6823_s3 + $0x1e8] sm:$0xff] %vm3105_vm1, %v4684_v48  ;;  %4711 = vtanh.f32 %v2728_v53  ;;  %v2726_v52 = vadd.f32 %v5958_v43, %v1707_v50  ;;  %v2350_v54 = vpop.f32.mrf.mxu1 }
 0x162   :  { %v4688_v55 = vpop.eup %4687  ;;  %3231 = vst.msk [vmem:[%s6823_s3 + $0x3e8] sm:$0xff] %vm3105_vm1, %v4686_v51  ;;  %4713 = vtanh.f32 %v2792_v49  ;;  %v2790_v56 = vadd.f32 %v5958_v43, %v2350_v54  ;;  %v4161_v57 = vpop.f32.mrf.mxu0 }
 0x163   :  { %v4690_v58 = vpop.eup %4689  ;;  %3236 = vst.msk [vmem:[%s6823_s3 + $0x410] sm:$0xff] %vm3105_vm1, %v4688_v55  ;;  %4715 = vtanh.f32 %v2726_v52  ;;  %v2731_v59 = vadd.f32 %v5958_v43, %v4161_v57  ;;  %v4233_v60 = vpop.f32.mrf.mxu1 }
 0x164   :  { %v4692_v61 = vpop.eup %4691  ;;  %3300 = vst.msk [vmem:[%s6823_s3 + $0x610] sm:$0xff] %vm3105_vm1, %v4690_v58  ;;  %4717 = vtanh.f32 %v2790_v56  ;;  %v2795_v62 = vadd.f32 %v5958_v43, %v4233_v60  ;;  %v1720_v63 = vpop.f32.mrf.mxu0 }
 0x165   :  { %v4694_v0 = vpop.eup %4693  ;;  %3234 = vst.msk [vmem:[%s6823_s3 + $0x400] sm:$0xff] %vm3105_vm1, %v4692_v61  ;;  %4719 = vtanh.f32 %v2731_v59  ;;  %v2729_v1 = vadd.f32 %v5958_v43, %v1720_v63  ;;  %v2363_v2 = vpop.f32.mrf.mxu1 }
 0x166   :  { %v4696_v3 = vpop.eup %4695  ;;  %3298 = vst.msk [vmem:[%s6823_s3 + $0x600] sm:$0xff] %vm3105_vm1, %v4694_v0  ;;  %4721 = vtanh.f32 %v2795_v62  ;;  %v2793_v4 = vadd.f32 %v5958_v43, %v2363_v2  ;;  %v4162_v5 = vpop.f32.mrf.mxu0 }
 0x167   :  { %v4698_v6 = vpop.eup %4697  ;;  %3237 = vst.msk [vmem:[%s6823_s3 + $0x418] sm:$0xff] %vm3105_vm1, %v4696_v3  ;;  %4723 = vtanh.f32 %v2729_v1  ;;  %v2732_v7 = vadd.f32 %v5958_v43, %v4162_v5  ;;  %v4234_v8 = vpop.f32.mrf.mxu1 }
 0x168   :  { %v4700_v9 = vpop.eup %4699  ;;  %3301 = vst.msk [vmem:[%s6823_s3 + $0x618] sm:$0xff] %vm3105_vm1, %v4698_v6  ;;  %4725 = vtanh.f32 %v2793_v4  ;;  %v2796_v10 = vadd.f32 %v5958_v43, %v4234_v8  ;;  %v1723_v11 = vpop.f32.mrf.mxu0 }
 0x169   :  { %v4702_v12 = vpop.eup %4701  ;;  %3235 = vst.msk [vmem:[%s6823_s3 + $0x408] sm:$0xff] %vm3105_vm1, %v4700_v9  ;;  %4727 = vtanh.f32 %v2732_v7  ;;  %v2730_v13 = vadd.f32 %v5958_v43, %v1723_v11  ;;  %v2366_v14 = vpop.f32.mrf.mxu1 }
 0x16a   :  { %v4704_v15 = vpop.eup %4703  ;;  %3299 = vst.msk [vmem:[%s6823_s3 + $0x608] sm:$0xff] %vm3105_vm1, %v4702_v12  ;;  %4729 = vtanh.f32 %v2796_v10  ;;  %v2794_v16 = vadd.f32 %v5958_v43, %v2366_v14  ;;  %v4165_v17 = vpop.f32.mrf.mxu0 }
 0x16b   :  { %v4706_v18 = vpop.eup %4705  ;;  %3240 = vst.msk [vmem:[%s6823_s3 + $0x430] sm:$0xff] %vm3105_vm1, %v4704_v15  ;;  %4731 = vtanh.f32 %v2730_v13  ;;  %v2735_v19 = vadd.f32 %v5958_v43, %v4165_v17  ;;  %v4237_v20 = vpop.f32.mrf.mxu1 }
 0x16c   :  { %v4708_v21 = vpop.eup %4707  ;;  %3304 = vst.msk [vmem:[%s6823_s3 + $0x630] sm:$0xff] %vm3105_vm1, %v4706_v18  ;;  %4733 = vtanh.f32 %v2794_v16  ;;  %v2799_v22 = vadd.f32 %v5958_v43, %v4237_v20  ;;  %v1736_v23 = vpop.f32.mrf.mxu0 }
 0x16d   :  { %v4710_v24 = vpop.eup %4709  ;;  %3238 = vst.msk [vmem:[%s6823_s3 + $0x420] sm:$0xff] %vm3105_vm1, %v4708_v21  ;;  %4735 = vtanh.f32 %v2735_v19  ;;  %v2733_v25 = vadd.f32 %v5958_v43, %v1736_v23  ;;  %v2379_v26 = vpop.f32.mrf.mxu1 }
 0x16e   :  { %v4712_v27 = vpop.eup %4711  ;;  %3302 = vst.msk [vmem:[%s6823_s3 + $0x620] sm:$0xff] %vm3105_vm1, %v4710_v24  ;;  %4737 = vtanh.f32 %v2799_v22  ;;  %v2797_v28 = vadd.f32 %v5958_v43, %v2379_v26  ;;  %v4166_v29 = vpop.f32.mrf.mxu0 }
 0x16f   :  { %v4714_v30 = vpop.eup %4713  ;;  %3241 = vst.msk [vmem:[%s6823_s3 + $0x438] sm:$0xff] %vm3105_vm1, %v4712_v27  ;;  %4739 = vtanh.f32 %v2733_v25  ;;  %v2736_v31 = vadd.f32 %v5958_v43, %v4166_v29  ;;  %v4238_v32 = vpop.f32.mrf.mxu1 }
 0x170   :  { %v4716_v33 = vpop.eup %4715  ;;  %3305 = vst.msk [vmem:[%s6823_s3 + $0x638] sm:$0xff] %vm3105_vm1, %v4714_v30  ;;  %4741 = vtanh.f32 %v2797_v28  ;;  %v2800_v34 = vadd.f32 %v5958_v43, %v4238_v32  ;;  %v1739_v35 = vpop.f32.mrf.mxu0 }
 0x171   :  { %v4718_v36 = vpop.eup %4717  ;;  %3239 = vst.msk [vmem:[%s6823_s3 + $0x428] sm:$0xff] %vm3105_vm1, %v4716_v33  ;;  %4743 = vtanh.f32 %v2736_v31  ;;  %v2734_v37 = vadd.f32 %v5958_v43, %v1739_v35  ;;  %v2382_v38 = vpop.f32.mrf.mxu1 }
 0x172   :  { %v4720_v39 = vpop.eup %4719  ;;  %3303 = vst.msk [vmem:[%s6823_s3 + $0x628] sm:$0xff] %vm3105_vm1, %v4718_v36  ;;  %4745 = vtanh.f32 %v2800_v34  ;;  %v2798_v40 = vadd.f32 %v5958_v43, %v2382_v38  ;;  %v4169_v41 = vpop.f32.mrf.mxu0 }
 0x173   :  { %v4722_v42 = vpop.eup %4721  ;;  %3244 = vst.msk [vmem:[%s6823_s3 + $0x450] sm:$0xff] %vm3105_vm1, %v4720_v39  ;;  %4747 = vtanh.f32 %v2734_v37  ;;  %v2739_v44 = vadd.f32 %v5958_v43, %v4169_v41  ;;  %v4241_v45 = vpop.f32.mrf.mxu1 }
 0x174   :  { %v4724_v46 = vpop.eup %4723  ;;  %3308 = vst.msk [vmem:[%s6823_s3 + $0x650] sm:$0xff] %vm3105_vm1, %v4722_v42  ;;  %4749 = vtanh.f32 %v2798_v40  ;;  %v2803_v53 = vadd.f32 %v5958_v43, %v4241_v45  ;;  %v1752_v47 = vpop.f32.mrf.mxu0 }
 0x175   :  { %v4726_v48 = vpop.eup %4725  ;;  %3242 = vst.msk [vmem:[%s6823_s3 + $0x440] sm:$0xff] %vm3105_vm1, %v4724_v46  ;;  %4751 = vtanh.f32 %v2739_v44  ;;  %v2737_v49 = vadd.f32 %v5958_v43, %v1752_v47  ;;  %v2395_v50 = vpop.f32.mrf.mxu1 }
 0x176   :  { %v4728_v51 = vpop.eup %4727  ;;  %3306 = vst.msk [vmem:[%s6823_s3 + $0x640] sm:$0xff] %vm3105_vm1, %v4726_v48  ;;  %4753 = vtanh.f32 %v2803_v53  ;;  %v2801_v52 = vadd.f32 %v5958_v43, %v2395_v50  ;;  %v4170_v54 = vpop.f32.mrf.mxu0 }
 0x177   :  { %v4730_v55 = vpop.eup %4729  ;;  %3245 = vst.msk [vmem:[%s6823_s3 + $0x458] sm:$0xff] %vm3105_vm1, %v4728_v51  ;;  %4755 = vtanh.f32 %v2737_v49  ;;  %v2740_v56 = vadd.f32 %v5958_v43, %v4170_v54  ;;  %v4242_v57 = vpop.f32.mrf.mxu1 }
 0x178   :  { %v4732_v58 = vpop.eup %4731  ;;  %3309 = vst.msk [vmem:[%s6823_s3 + $0x658] sm:$0xff] %vm3105_vm1, %v4730_v55  ;;  %4757 = vtanh.f32 %v2801_v52  ;;  %v2804_v59 = vadd.f32 %v5958_v43, %v4242_v57  ;;  %v1755_v60 = vpop.f32.mrf.mxu0 }
 0x179   :  { %v4734_v61 = vpop.eup %4733  ;;  %3243 = vst.msk [vmem:[%s6823_s3 + $0x448] sm:$0xff] %vm3105_vm1, %v4732_v58  ;;  %4759 = vtanh.f32 %v2740_v56  ;;  %v2738_v62 = vadd.f32 %v5958_v43, %v1755_v60  ;;  %v2398_v63 = vpop.f32.mrf.mxu1 }
 0x17a   :  { %v4736_v0 = vpop.eup %4735  ;;  %3307 = vst.msk [vmem:[%s6823_s3 + $0x648] sm:$0xff] %vm3105_vm1, %v4734_v61  ;;  %4761 = vtanh.f32 %v2804_v59  ;;  %v2802_v1 = vadd.f32 %v5958_v43, %v2398_v63  ;;  %v4173_v2 = vpop.f32.mrf.mxu0 }
 0x17b   :  { %v4738_v3 = vpop.eup %4737  ;;  %3248 = vst.msk [vmem:[%s6823_s3 + $0x470] sm:$0xff] %vm3105_vm1, %v4736_v0  ;;  %4763 = vtanh.f32 %v2738_v62  ;;  %v2743_v4 = vadd.f32 %v5958_v43, %v4173_v2  ;;  %v4245_v5 = vpop.f32.mrf.mxu1 }
 0x17c   :  { %v4740_v6 = vpop.eup %4739  ;;  %3312 = vst.msk [vmem:[%s6823_s3 + $0x670] sm:$0xff] %vm3105_vm1, %v4738_v3  ;;  %4765 = vtanh.f32 %v2802_v1  ;;  %v2807_v7 = vadd.f32 %v5958_v43, %v4245_v5  ;;  %v1768_v8 = vpop.f32.mrf.mxu0 }
 0x17d   :  { %v4742_v9 = vpop.eup %4741  ;;  %3246 = vst.msk [vmem:[%s6823_s3 + $0x460] sm:$0xff] %vm3105_vm1, %v4740_v6  ;;  %4767 = vtanh.f32 %v2743_v4  ;;  %v2741_v10 = vadd.f32 %v5958_v43, %v1768_v8  ;;  %v2411_v11 = vpop.f32.mrf.mxu1 }
 0x17e   :  { %v4744_v12 = vpop.eup %4743  ;;  %3310 = vst.msk [vmem:[%s6823_s3 + $0x660] sm:$0xff] %vm3105_vm1, %v4742_v9  ;;  %4769 = vtanh.f32 %v2807_v7  ;;  %v2805_v13 = vadd.f32 %v5958_v43, %v2411_v11  ;;  %v4174_v14 = vpop.f32.mrf.mxu0 }
 0x17f   :  { %v4746_v15 = vpop.eup %4745  ;;  %3249 = vst.msk [vmem:[%s6823_s3 + $0x478] sm:$0xff] %vm3105_vm1, %v4744_v12  ;;  %4771 = vtanh.f32 %v2741_v10  ;;  %v2744_v16 = vadd.f32 %v5958_v43, %v4174_v14  ;;  %v4246_v17 = vpop.f32.mrf.mxu1 }
 0x180   :  { %v4748_v18 = vpop.eup %4747  ;;  %3313 = vst.msk [vmem:[%s6823_s3 + $0x678] sm:$0xff] %vm3105_vm1, %v4746_v15  ;;  %4773 = vtanh.f32 %v2805_v13  ;;  %v2808_v19 = vadd.f32 %v5958_v43, %v4246_v17  ;;  %v1771_v20 = vpop.f32.mrf.mxu0 }
 0x181   :  { %v4750_v21 = vpop.eup %4749  ;;  %3247 = vst.msk [vmem:[%s6823_s3 + $0x468] sm:$0xff] %vm3105_vm1, %v4748_v18  ;;  %4775 = vtanh.f32 %v2744_v16  ;;  %v2742_v22 = vadd.f32 %v5958_v43, %v1771_v20  ;;  %v2414_v23 = vpop.f32.mrf.mxu1 }
 0x182   :  { %v4752_v24 = vpop.eup %4751  ;;  %3311 = vst.msk [vmem:[%s6823_s3 + $0x668] sm:$0xff] %vm3105_vm1, %v4750_v21  ;;  %4777 = vtanh.f32 %v2808_v19  ;;  %v2806_v25 = vadd.f32 %v5958_v43, %v2414_v23  ;;  %v4177_v26 = vpop.f32.mrf.mxu0 }
 0x183   :  { %v4754_v27 = vpop.eup %4753  ;;  %3252 = vst.msk [vmem:[%s6823_s3 + $0x490] sm:$0xff] %vm3105_vm1, %v4752_v24  ;;  %4779 = vtanh.f32 %v2742_v22  ;;  %v2747_v28 = vadd.f32 %v5958_v43, %v4177_v26  ;;  %v4249_v29 = vpop.f32.mrf.mxu1 }
 0x184   :  { %v4756_v30 = vpop.eup %4755  ;;  %3316 = vst.msk [vmem:[%s6823_s3 + $0x690] sm:$0xff] %vm3105_vm1, %v4754_v27  ;;  %4781 = vtanh.f32 %v2806_v25  ;;  %v2811_v31 = vadd.f32 %v5958_v43, %v4249_v29  ;;  %v1784_v32 = vpop.f32.mrf.mxu0 }
 0x185   :  { %v4758_v33 = vpop.eup %4757  ;;  %3250 = vst.msk [vmem:[%s6823_s3 + $0x480] sm:$0xff] %vm3105_vm1, %v4756_v30  ;;  %4783 = vtanh.f32 %v2747_v28  ;;  %v2745_v34 = vadd.f32 %v5958_v43, %v1784_v32  ;;  %v2427_v35 = vpop.f32.mrf.mxu1 }
 0x186   :  { %v4760_v36 = vpop.eup %4759  ;;  %3314 = vst.msk [vmem:[%s6823_s3 + $0x680] sm:$0xff] %vm3105_vm1, %v4758_v33  ;;  %4785 = vtanh.f32 %v2811_v31  ;;  %v2809_v37 = vadd.f32 %v5958_v43, %v2427_v35  ;;  %v4178_v38 = vpop.f32.mrf.mxu0 }
 0x187   :  { %v4762_v39 = vpop.eup %4761  ;;  %3253 = vst.msk [vmem:[%s6823_s3 + $0x498] sm:$0xff] %vm3105_vm1, %v4760_v36  ;;  %4787 = vtanh.f32 %v2745_v34  ;;  %v2748_v40 = vadd.f32 %v5958_v43, %v4178_v38  ;;  %v4250_v41 = vpop.f32.mrf.mxu1 }
 0x188   :  { %v4764_v42 = vpop.eup %4763  ;;  %3317 = vst.msk [vmem:[%s6823_s3 + $0x698] sm:$0xff] %vm3105_vm1, %v4762_v39  ;;  %4789 = vtanh.f32 %v2809_v37  ;;  %v2812_v44 = vadd.f32 %v5958_v43, %v4250_v41  ;;  %v1787_v45 = vpop.f32.mrf.mxu0  ;;  %v6478_v37 = vld [vmem:[%s6822_s2] ss:$0 sm:$0xff] }
 0x189   :  { %v4766_v46 = vpop.eup %4765  ;;  %3251 = vst.msk [vmem:[%s6823_s3 + $0x488] sm:$0xff] %vm3105_vm1, %v4764_v42  ;;  %4791 = vtanh.f32 %v2748_v40  ;;  %v2746_v53 = vadd.f32 %v5958_v43, %v1787_v45  ;;  %v2430_v47 = vpop.f32.mrf.mxu1 }
 0x18a   :  { %v4768_v48 = vpop.eup %4767  ;;  %3315 = vst.msk [vmem:[%s6823_s3 + $0x688] sm:$0xff] %vm3105_vm1, %v4766_v46  ;;  %4793 = vtanh.f32 %v2812_v44  ;;  %v2810_v49 = vadd.f32 %v5958_v43, %v2430_v47  ;;  %v4181_v50 = vpop.f32.mrf.mxu0 }
 0x18b   :  { %v4770_v51 = vpop.eup %4769  ;;  %3256 = vst.msk [vmem:[%s6823_s3 + $0x4b0] sm:$0xff] %vm3105_vm1, %v4768_v48  ;;  %4795 = vtanh.f32 %v2746_v53  ;;  %v2751_v52 = vadd.f32 %v5958_v43, %v4181_v50  ;;  %v4253_v54 = vpop.f32.mrf.mxu1 }
 0x18c   :  { %v4772_v55 = vpop.eup %4771  ;;  %3320 = vst.msk [vmem:[%s6823_s3 + $0x6b0] sm:$0xff] %vm3105_vm1, %v4770_v51  ;;  %4797 = vtanh.f32 %v2810_v49  ;;  %v2815_v56 = vadd.f32 %v5958_v43, %v4253_v54  ;;  %v1800_v57 = vpop.f32.mrf.mxu0 }
 0x18d   :  { %v4774_v58 = vpop.eup %4773  ;;  %3254 = vst.msk [vmem:[%s6823_s3 + $0x4a0] sm:$0xff] %vm3105_vm1, %v4772_v55  ;;  %4799 = vtanh.f32 %v2751_v52  ;;  %v2749_v59 = vadd.f32 %v5958_v43, %v1800_v57  ;;  %v2443_v60 = vpop.f32.mrf.mxu1 }
 0x18e   :  { %v4776_v61 = vpop.eup %4775  ;;  %3318 = vst.msk [vmem:[%s6823_s3 + $0x6a0] sm:$0xff] %vm3105_vm1, %v4774_v58  ;;  %4801 = vtanh.f32 %v2815_v56  ;;  %v2813_v62 = vadd.f32 %v5958_v43, %v2443_v60  ;;  %v4182_v63 = vpop.f32.mrf.mxu0 }
 0x18f   :  { %v4778_v0 = vpop.eup %4777  ;;  %3257 = vst.msk [vmem:[%s6823_s3 + $0x4b8] sm:$0xff] %vm3105_vm1, %v4776_v61  ;;  %4803 = vtanh.f32 %v2749_v59  ;;  %v2752_v1 = vadd.f32 %v5958_v43, %v4182_v63  ;;  %v4254_v2 = vpop.f32.mrf.mxu1 }
 0x190   :  { %v4780_v3 = vpop.eup %4779  ;;  %3321 = vst.msk [vmem:[%s6823_s3 + $0x6b8] sm:$0xff] %vm3105_vm1, %v4778_v0  ;;  %4805 = vtanh.f32 %v2813_v62  ;;  %v2816_v4 = vadd.f32 %v5958_v43, %v4254_v2  ;;  %v1803_v5 = vpop.f32.mrf.mxu0 }
 0x191   :  { %v4782_v6 = vpop.eup %4781  ;;  %3255 = vst.msk [vmem:[%s6823_s3 + $0x4a8] sm:$0xff] %vm3105_vm1, %v4780_v3  ;;  %4807 = vtanh.f32 %v2752_v1  ;;  %v2750_v7 = vadd.f32 %v5958_v43, %v1803_v5  ;;  %v2446_v8 = vpop.f32.mrf.mxu1 }
 0x192   :  { %v4784_v9 = vpop.eup %4783  ;;  %3319 = vst.msk [vmem:[%s6823_s3 + $0x6a8] sm:$0xff] %vm3105_vm1, %v4782_v6  ;;  %4809 = vtanh.f32 %v2816_v4  ;;  %v2814_v10 = vadd.f32 %v5958_v43, %v2446_v8  ;;  %v4185_v11 = vpop.f32.mrf.mxu0 }
 0x193   :  { %v4786_v12 = vpop.eup %4785  ;;  %3260 = vst.msk [vmem:[%s6823_s3 + $0x4d0] sm:$0xff] %vm3105_vm1, %v4784_v9  ;;  %4811 = vtanh.f32 %v2750_v7  ;;  %v2755_v13 = vadd.f32 %v5958_v43, %v4185_v11  ;;  %v4257_v14 = vpop.f32.mrf.mxu1 }
 0x194   :  { %v4788_v15 = vpop.eup %4787  ;;  %3324 = vst.msk [vmem:[%s6823_s3 + $0x6d0] sm:$0xff] %vm3105_vm1, %v4786_v12  ;;  %4813 = vtanh.f32 %v2814_v10  ;;  %v2819_v16 = vadd.f32 %v5958_v43, %v4257_v14  ;;  %v1816_v17 = vpop.f32.mrf.mxu0 }
 0x195   :  { %v4790_v18 = vpop.eup %4789  ;;  %3258 = vst.msk [vmem:[%s6823_s3 + $0x4c0] sm:$0xff] %vm3105_vm1, %v4788_v15  ;;  %4815 = vtanh.f32 %v2755_v13  ;;  %v2753_v19 = vadd.f32 %v5958_v43, %v1816_v17  ;;  %v2459_v20 = vpop.f32.mrf.mxu1 }
 0x196   :  { %v4792_v21 = vpop.eup %4791  ;;  %3322 = vst.msk [vmem:[%s6823_s3 + $0x6c0] sm:$0xff] %vm3105_vm1, %v4790_v18  ;;  %4817 = vtanh.f32 %v2819_v16  ;;  %v2817_v22 = vadd.f32 %v5958_v43, %v2459_v20  ;;  %v4186_v23 = vpop.f32.mrf.mxu0 }
 0x197   :  { %v4794_v24 = vpop.eup %4793  ;;  %3261 = vst.msk [vmem:[%s6823_s3 + $0x4d8] sm:$0xff] %vm3105_vm1, %v4792_v21  ;;  %4819 = vtanh.f32 %v2753_v19  ;;  %v2756_v25 = vadd.f32 %v5958_v43, %v4186_v23  ;;  %v4258_v26 = vpop.f32.mrf.mxu1 }
 0x198   :  { %v4796_v27 = vpop.eup %4795  ;;  %3325 = vst.msk [vmem:[%s6823_s3 + $0x6d8] sm:$0xff] %vm3105_vm1, %v4794_v24  ;;  %4821 = vtanh.f32 %v2817_v22  ;;  %v2820_v28 = vadd.f32 %v5958_v43, %v4258_v26  ;;  %v1819_v29 = vpop.f32.mrf.mxu0 }
 0x199   :  { %v4798_v30 = vpop.eup %4797  ;;  %3259 = vst.msk [vmem:[%s6823_s3 + $0x4c8] sm:$0xff] %vm3105_vm1, %v4796_v27  ;;  %4823 = vtanh.f32 %v2756_v25  ;;  %v2754_v31 = vadd.f32 %v5958_v43, %v1819_v29  ;;  %v2462_v32 = vpop.f32.mrf.mxu1 }
 0x19a   :  { %v4800_v33 = vpop.eup %4799  ;;  %3323 = vst.msk [vmem:[%s6823_s3 + $0x6c8] sm:$0xff] %vm3105_vm1, %v4798_v30  ;;  %4825 = vtanh.f32 %v2820_v28  ;;  %v2818_v34 = vadd.f32 %v5958_v43, %v2462_v32  ;;  %v4189_v35 = vpop.f32.mrf.mxu0 }
 0x19b   :  { %v4802_v36 = vpop.eup %4801  ;;  %3264 = vst.msk [vmem:[%s6823_s3 + $0x4f0] sm:$0xff] %vm3105_vm1, %v4800_v33  ;;  %4827 = vtanh.f32 %v2754_v31  ;;  %v2759_v38 = vadd.f32 %v6478_v37, %v4189_v35  ;;  %v4261_v39 = vpop.f32.mrf.mxu1 }
 0x19c   :  { %v4804_v40 = vpop.eup %4803  ;;  %3328 = vst.msk [vmem:[%s6823_s3 + $0x6f0] sm:$0xff] %vm3105_vm1, %v4802_v36  ;;  %4829 = vtanh.f32 %v2818_v34  ;;  %v2823_v43 = vadd.f32 %v6478_v37, %v4261_v39  ;;  %v1832_v41 = vpop.f32.mrf.mxu0 }
 0x19d   :  { %v4806_v42 = vpop.eup %4805  ;;  %3262 = vst.msk [vmem:[%s6823_s3 + $0x4e0] sm:$0xff] %vm3105_vm1, %v4804_v40  ;;  %4831 = vtanh.f32 %v2759_v38  ;;  %v2757_v44 = vadd.f32 %v6478_v37, %v1832_v41  ;;  %v2475_v45 = vpop.f32.mrf.mxu1 }
 0x19e   :  { %v4808_v46 = vpop.eup %4807  ;;  %3326 = vst.msk [vmem:[%s6823_s3 + $0x6e0] sm:$0xff] %vm3105_vm1, %v4806_v42  ;;  %4833 = vtanh.f32 %v2823_v43  ;;  %v2821_v53 = vadd.f32 %v6478_v37, %v2475_v45  ;;  %v4190_v47 = vpop.f32.mrf.mxu0 }
 0x19f   :  { %v4810_v48 = vpop.eup %4809  ;;  %3265 = vst.msk [vmem:[%s6823_s3 + $0x4f8] sm:$0xff] %vm3105_vm1, %v4808_v46  ;;  %4835 = vtanh.f32 %v2757_v44  ;;  %v2760_v49 = vadd.f32 %v6478_v37, %v4190_v47  ;;  %v4262_v50 = vpop.f32.mrf.mxu1 }
 0x1a0   :  { %v4812_v51 = vpop.eup %4811  ;;  %3329 = vst.msk [vmem:[%s6823_s3 + $0x6f8] sm:$0xff] %vm3105_vm1, %v4810_v48  ;;  %4837 = vtanh.f32 %v2821_v53  ;;  %v2824_v52 = vadd.f32 %v6478_v37, %v4262_v50  ;;  %v1835_v54 = vpop.f32.mrf.mxu0 }
 0x1a1   :  { %v4814_v55 = vpop.eup %4813  ;;  %3263 = vst.msk [vmem:[%s6823_s3 + $0x4e8] sm:$0xff] %vm3105_vm1, %v4812_v51  ;;  %4839 = vtanh.f32 %v2760_v49  ;;  %v2758_v56 = vadd.f32 %v6478_v37, %v1835_v54  ;;  %v2478_v57 = vpop.f32.mrf.mxu1 }
 0x1a2   :  { %v4816_v58 = vpop.eup %4815  ;;  %3327 = vst.msk [vmem:[%s6823_s3 + $0x6e8] sm:$0xff] %vm3105_vm1, %v4814_v55  ;;  %4841 = vtanh.f32 %v2824_v52  ;;  %v2822_v59 = vadd.f32 %v6478_v37, %v2478_v57  ;;  %v4193_v60 = vpop.f32.mrf.mxu0 }
 0x1a3   :  { %v4818_v61 = vpop.eup %4817  ;;  %3268 = vst.msk [vmem:[%s6823_s3 + $0x510] sm:$0xff] %vm3105_vm1, %v4816_v58  ;;  %4843 = vtanh.f32 %v2758_v56  ;;  %v2763_v62 = vadd.f32 %v6478_v37, %v4193_v60  ;;  %v4265_v63 = vpop.f32.mrf.mxu1 }
 0x1a4   :  { %v4820_v0 = vpop.eup %4819  ;;  %3332 = vst.msk [vmem:[%s6823_s3 + $0x710] sm:$0xff] %vm3105_vm1, %v4818_v61  ;;  %4845 = vtanh.f32 %v2822_v59  ;;  %v2827_v1 = vadd.f32 %v6478_v37, %v4265_v63  ;;  %v1848_v2 = vpop.f32.mrf.mxu0 }
 0x1a5   :  { %v4822_v3 = vpop.eup %4821  ;;  %3266 = vst.msk [vmem:[%s6823_s3 + $0x500] sm:$0xff] %vm3105_vm1, %v4820_v0  ;;  %4847 = vtanh.f32 %v2763_v62  ;;  %v2761_v4 = vadd.f32 %v6478_v37, %v1848_v2  ;;  %v2491_v5 = vpop.f32.mrf.mxu1 }
 0x1a6   :  { %v4824_v6 = vpop.eup %4823  ;;  %3330 = vst.msk [vmem:[%s6823_s3 + $0x700] sm:$0xff] %vm3105_vm1, %v4822_v3  ;;  %4849 = vtanh.f32 %v2827_v1  ;;  %v2825_v7 = vadd.f32 %v6478_v37, %v2491_v5  ;;  %v4194_v8 = vpop.f32.mrf.mxu0 }
 0x1a7   :  { %v4826_v9 = vpop.eup %4825  ;;  %3269 = vst.msk [vmem:[%s6823_s3 + $0x518] sm:$0xff] %vm3105_vm1, %v4824_v6  ;;  %4851 = vtanh.f32 %v2761_v4  ;;  %v2764_v10 = vadd.f32 %v6478_v37, %v4194_v8  ;;  %v4266_v11 = vpop.f32.mrf.mxu1 }
 0x1a8   :  { %v4828_v12 = vpop.eup %4827  ;;  %3333 = vst.msk [vmem:[%s6823_s3 + $0x718] sm:$0xff] %vm3105_vm1, %v4826_v9  ;;  %4853 = vtanh.f32 %v2825_v7  ;;  %v2828_v13 = vadd.f32 %v6478_v37, %v4266_v11  ;;  %v1851_v14 = vpop.f32.mrf.mxu0 }
 0x1a9   :  { %v4830_v15 = vpop.eup %4829  ;;  %3267 = vst.msk [vmem:[%s6823_s3 + $0x508] sm:$0xff] %vm3105_vm1, %v4828_v12  ;;  %4855 = vtanh.f32 %v2764_v10  ;;  %v2762_v16 = vadd.f32 %v6478_v37, %v1851_v14  ;;  %v2494_v17 = vpop.f32.mrf.mxu1 }
 0x1aa   :  { %v4832_v18 = vpop.eup %4831  ;;  %3331 = vst.msk [vmem:[%s6823_s3 + $0x708] sm:$0xff] %vm3105_vm1, %v4830_v15  ;;  %4857 = vtanh.f32 %v2828_v13  ;;  %v2826_v19 = vadd.f32 %v6478_v37, %v2494_v17  ;;  %v4197_v20 = vpop.f32.mrf.mxu0 }
 0x1ab   :  { %v4834_v21 = vpop.eup %4833  ;;  %3272 = vst.msk [vmem:[%s6823_s3 + $0x530] sm:$0xff] %vm3105_vm1, %v4832_v18  ;;  %4859 = vtanh.f32 %v2762_v16  ;;  %v2767_v22 = vadd.f32 %v6478_v37, %v4197_v20  ;;  %v4269_v23 = vpop.f32.mrf.mxu1 }
 0x1ac   :  { %v4836_v24 = vpop.eup %4835  ;;  %3336 = vst.msk [vmem:[%s6823_s3 + $0x730] sm:$0xff] %vm3105_vm1, %v4834_v21  ;;  %4861 = vtanh.f32 %v2826_v19  ;;  %v2831_v25 = vadd.f32 %v6478_v37, %v4269_v23  ;;  %v1864_v26 = vpop.f32.mrf.mxu0 }
 0x1ad   :  { %v4838_v27 = vpop.eup %4837  ;;  %3270 = vst.msk [vmem:[%s6823_s3 + $0x520] sm:$0xff] %vm3105_vm1, %v4836_v24  ;;  %4863 = vtanh.f32 %v2767_v22  ;;  %v2765_v28 = vadd.f32 %v6478_v37, %v1864_v26  ;;  %v2507_v29 = vpop.f32.mrf.mxu1 }
 0x1ae   :  { %v4840_v30 = vpop.eup %4839  ;;  %3334 = vst.msk [vmem:[%s6823_s3 + $0x720] sm:$0xff] %vm3105_vm1, %v4838_v27  ;;  %4865 = vtanh.f32 %v2831_v25  ;;  %v2829_v31 = vadd.f32 %v6478_v37, %v2507_v29  ;;  %v4198_v32 = vpop.f32.mrf.mxu0 }
 0x1af   :  { %v4842_v33 = vpop.eup %4841  ;;  %3273 = vst.msk [vmem:[%s6823_s3 + $0x538] sm:$0xff] %vm3105_vm1, %v4840_v30  ;;  %4867 = vtanh.f32 %v2765_v28  ;;  %v2768_v34 = vadd.f32 %v6478_v37, %v4198_v32  ;;  %v4270_v35 = vpop.f32.mrf.mxu1 }
 0x1b0   :  { %v4844_v36 = vpop.eup %4843  ;;  %3337 = vst.msk [vmem:[%s6823_s3 + $0x738] sm:$0xff] %vm3105_vm1, %v4842_v33  ;;  %4869 = vtanh.f32 %v2829_v31  ;;  %v2832_v38 = vadd.f32 %v6478_v37, %v4270_v35  ;;  %v1867_v39 = vpop.f32.mrf.mxu0 }
 0x1b1   :  { %v4846_v40 = vpop.eup %4845  ;;  %3271 = vst.msk [vmem:[%s6823_s3 + $0x528] sm:$0xff] %vm3105_vm1, %v4844_v36  ;;  %4871 = vtanh.f32 %v2768_v34  ;;  %v2766_v43 = vadd.f32 %v6478_v37, %v1867_v39  ;;  %v2510_v41 = vpop.f32.mrf.mxu1 }
 0x1b2   :  { %v4848_v42 = vpop.eup %4847  ;;  %3335 = vst.msk [vmem:[%s6823_s3 + $0x728] sm:$0xff] %vm3105_vm1, %v4846_v40  ;;  %4873 = vtanh.f32 %v2832_v38  ;;  %v2830_v44 = vadd.f32 %v6478_v37, %v2510_v41  ;;  %v4201_v45 = vpop.f32.mrf.mxu0 }
 0x1b3   :  { %v4850_v46 = vpop.eup %4849  ;;  %3276 = vst.msk [vmem:[%s6823_s3 + $0x550] sm:$0xff] %vm3105_vm1, %v4848_v42  ;;  %4875 = vtanh.f32 %v2766_v43  ;;  %v2771_v53 = vadd.f32 %v6478_v37, %v4201_v45  ;;  %v4273_v47 = vpop.f32.mrf.mxu1 }
 0x1b4   :  { %v4852_v48 = vpop.eup %4851  ;;  %3340 = vst.msk [vmem:[%s6823_s3 + $0x750] sm:$0xff] %vm3105_vm1, %v4850_v46  ;;  %4877 = vtanh.f32 %v2830_v44  ;;  %v2835_v49 = vadd.f32 %v6478_v37, %v4273_v47  ;;  %v1880_v50 = vpop.f32.mrf.mxu0 }
 0x1b5   :  { %v4854_v51 = vpop.eup %4853  ;;  %3274 = vst.msk [vmem:[%s6823_s3 + $0x540] sm:$0xff] %vm3105_vm1, %v4852_v48  ;;  %4879 = vtanh.f32 %v2771_v53  ;;  %v2769_v52 = vadd.f32 %v6478_v37, %v1880_v50  ;;  %v2523_v54 = vpop.f32.mrf.mxu1 }
 0x1b6   :  { %v4856_v55 = vpop.eup %4855  ;;  %3338 = vst.msk [vmem:[%s6823_s3 + $0x740] sm:$0xff] %vm3105_vm1, %v4854_v51  ;;  %4881 = vtanh.f32 %v2835_v49  ;;  %v2833_v56 = vadd.f32 %v6478_v37, %v2523_v54  ;;  %v4202_v57 = vpop.f32.mrf.mxu0 }
 0x1b7   :  { %v4858_v58 = vpop.eup %4857  ;;  %3277 = vst.msk [vmem:[%s6823_s3 + $0x558] sm:$0xff] %vm3105_vm1, %v4856_v55  ;;  %4883 = vtanh.f32 %v2769_v52  ;;  %v2772_v59 = vadd.f32 %v6478_v37, %v4202_v57  ;;  %v4274_v60 = vpop.f32.mrf.mxu1 }
 0x1b8   :  { %v4860_v61 = vpop.eup %4859  ;;  %3341 = vst.msk [vmem:[%s6823_s3 + $0x758] sm:$0xff] %vm3105_vm1, %v4858_v58  ;;  %4885 = vtanh.f32 %v2833_v56  ;;  %v2836_v62 = vadd.f32 %v6478_v37, %v4274_v60  ;;  %v1883_v63 = vpop.f32.mrf.mxu0 }
 0x1b9   :  { %v4862_v0 = vpop.eup %4861  ;;  %3275 = vst.msk [vmem:[%s6823_s3 + $0x548] sm:$0xff] %vm3105_vm1, %v4860_v61  ;;  %4887 = vtanh.f32 %v2772_v59  ;;  %v2770_v1 = vadd.f32 %v6478_v37, %v1883_v63  ;;  %v2526_v2 = vpop.f32.mrf.mxu1 }
 0x1ba   :  { %v4864_v3 = vpop.eup %4863  ;;  %3339 = vst.msk [vmem:[%s6823_s3 + $0x748] sm:$0xff] %vm3105_vm1, %v4862_v0  ;;  %4889 = vtanh.f32 %v2836_v62  ;;  %v2834_v4 = vadd.f32 %v6478_v37, %v2526_v2  ;;  %v4205_v5 = vpop.f32.mrf.mxu0 }
 0x1bb   :  { %v4866_v6 = vpop.eup %4865  ;;  %3280 = vst.msk [vmem:[%s6823_s3 + $0x570] sm:$0xff] %vm3105_vm1, %v4864_v3  ;;  %4891 = vtanh.f32 %v2770_v1  ;;  %v2775_v7 = vadd.f32 %v6478_v37, %v4205_v5  ;;  %v4277_v8 = vpop.f32.mrf.mxu1 }
 0x1bc   :  { %v4868_v9 = vpop.eup %4867  ;;  %3344 = vst.msk [vmem:[%s6823_s3 + $0x770] sm:$0xff] %vm3105_vm1, %v4866_v6  ;;  %4893 = vtanh.f32 %v2834_v4  ;;  %v2839_v10 = vadd.f32 %v6478_v37, %v4277_v8  ;;  %v1896_v11 = vpop.f32.mrf.mxu0 }
 0x1bd   :  { %v4870_v12 = vpop.eup %4869  ;;  %3278 = vst.msk [vmem:[%s6823_s3 + $0x560] sm:$0xff] %vm3105_vm1, %v4868_v9  ;;  %4895 = vtanh.f32 %v2775_v7  ;;  %v2773_v13 = vadd.f32 %v6478_v37, %v1896_v11  ;;  %v2539_v14 = vpop.f32.mrf.mxu1 }
 0x1be   :  { %v4872_v15 = vpop.eup %4871  ;;  %3342 = vst.msk [vmem:[%s6823_s3 + $0x760] sm:$0xff] %vm3105_vm1, %v4870_v12  ;;  %4897 = vtanh.f32 %v2839_v10  ;;  %v2837_v16 = vadd.f32 %v6478_v37, %v2539_v14  ;;  %v4206_v17 = vpop.f32.mrf.mxu0 }
 0x1bf   :  { %v4874_v18 = vpop.eup %4873  ;;  %3281 = vst.msk [vmem:[%s6823_s3 + $0x578] sm:$0xff] %vm3105_vm1, %v4872_v15  ;;  %4899 = vtanh.f32 %v2773_v13  ;;  %v2776_v19 = vadd.f32 %v6478_v37, %v4206_v17  ;;  %v4278_v20 = vpop.f32.mrf.mxu1 }
 0x1c0   :  { %v4876_v21 = vpop.eup %4875  ;;  %3345 = vst.msk [vmem:[%s6823_s3 + $0x778] sm:$0xff] %vm3105_vm1, %v4874_v18  ;;  %4901 = vtanh.f32 %v2837_v16  ;;  %v2840_v22 = vadd.f32 %v6478_v37, %v4278_v20  ;;  %v1899_v23 = vpop.f32.mrf.mxu0 }
 0x1c1   :  { %v4878_v24 = vpop.eup %4877  ;;  %3279 = vst.msk [vmem:[%s6823_s3 + $0x568] sm:$0xff] %vm3105_vm1, %v4876_v21  ;;  %4903 = vtanh.f32 %v2776_v19  ;;  %v2774_v25 = vadd.f32 %v6478_v37, %v1899_v23  ;;  %v2542_v26 = vpop.f32.mrf.mxu1 }
 0x1c2   :  { %v4880_v27 = vpop.eup %4879  ;;  %3343 = vst.msk [vmem:[%s6823_s3 + $0x768] sm:$0xff] %vm3105_vm1, %v4878_v24  ;;  %4905 = vtanh.f32 %v2840_v22  ;;  %v2838_v28 = vadd.f32 %v6478_v37, %v2542_v26  ;;  %v4209_v29 = vpop.f32.mrf.mxu0 }
 0x1c3   :  { %v4882_v30 = vpop.eup %4881  ;;  %3284 = vst.msk [vmem:[%s6823_s3 + $0x590] sm:$0xff] %vm3105_vm1, %v4880_v27  ;;  %4907 = vtanh.f32 %v2774_v25  ;;  %v2779_v31 = vadd.f32 %v6478_v37, %v4209_v29  ;;  %v4281_v32 = vpop.f32.mrf.mxu1 }
 0x1c4   :  { %v4884_v33 = vpop.eup %4883  ;;  %3348 = vst.msk [vmem:[%s6823_s3 + $0x790] sm:$0xff] %vm3105_vm1, %v4882_v30  ;;  %4909 = vtanh.f32 %v2838_v28  ;;  %v2843_v34 = vadd.f32 %v6478_v37, %v4281_v32  ;;  %v1912_v35 = vpop.f32.mrf.mxu0 }
 0x1c5   :  { %v4886_v36 = vpop.eup %4885  ;;  %3282 = vst.msk [vmem:[%s6823_s3 + $0x580] sm:$0xff] %vm3105_vm1, %v4884_v33  ;;  %4911 = vtanh.f32 %v2779_v31  ;;  %v2777_v38 = vadd.f32 %v6478_v37, %v1912_v35  ;;  %v2555_v39 = vpop.f32.mrf.mxu1 }
 0x1c6   :  { %v4888_v40 = vpop.eup %4887  ;;  %3346 = vst.msk [vmem:[%s6823_s3 + $0x780] sm:$0xff] %vm3105_vm1, %v4886_v36  ;;  %4913 = vtanh.f32 %v2843_v34  ;;  %v2841_v43 = vadd.f32 %v6478_v37, %v2555_v39  ;;  %v4210_v41 = vpop.f32.mrf.mxu0 }
 0x1c7   :  { %v4890_v42 = vpop.eup %4889  ;;  %3285 = vst.msk [vmem:[%s6823_s3 + $0x598] sm:$0xff] %vm3105_vm1, %v4888_v40  ;;  %4915 = vtanh.f32 %v2777_v38  ;;  %v2780_v44 = vadd.f32 %v6478_v37, %v4210_v41  ;;  %v4282_v45 = vpop.f32.mrf.mxu1 }
 0x1c8   :  { %v4892_v46 = vpop.eup %4891  ;;  %3349 = vst.msk [vmem:[%s6823_s3 + $0x798] sm:$0xff] %vm3105_vm1, %v4890_v42  ;;  %4917 = vtanh.f32 %v2841_v43  ;;  %v2844_v53 = vadd.f32 %v6478_v37, %v4282_v45  ;;  %v1915_v47 = vpop.f32.mrf.mxu0 }
 0x1c9   :  { %v4894_v48 = vpop.eup %4893  ;;  %3283 = vst.msk [vmem:[%s6823_s3 + $0x588] sm:$0xff] %vm3105_vm1, %v4892_v46  ;;  %4919 = vtanh.f32 %v2780_v44  ;;  %v2778_v49 = vadd.f32 %v6478_v37, %v1915_v47  ;;  %v2558_v50 = vpop.f32.mrf.mxu1 }
 0x1ca   :  { %v4896_v51 = vpop.eup %4895  ;;  %3347 = vst.msk [vmem:[%s6823_s3 + $0x788] sm:$0xff] %vm3105_vm1, %v4894_v48  ;;  %4921 = vtanh.f32 %v2844_v53  ;;  %v2842_v52 = vadd.f32 %v6478_v37, %v2558_v50  ;;  %v4213_v54 = vpop.f32.mrf.mxu0 }
 0x1cb   :  { %v4898_v55 = vpop.eup %4897  ;;  %3288 = vst.msk [vmem:[%s6823_s3 + $0x5b0] sm:$0xff] %vm3105_vm1, %v4896_v51  ;;  %4923 = vtanh.f32 %v2778_v49  ;;  %v2783_v56 = vadd.f32 %v6478_v37, %v4213_v54  ;;  %v4285_v57 = vpop.f32.mrf.mxu1 }
 0x1cc   :  { %v4900_v58 = vpop.eup %4899  ;;  %3352 = vst.msk [vmem:[%s6823_s3 + $0x7b0] sm:$0xff] %vm3105_vm1, %v4898_v55  ;;  %4925 = vtanh.f32 %v2842_v52  ;;  %v2847_v59 = vadd.f32 %v6478_v37, %v4285_v57  ;;  %v1928_v60 = vpop.f32.mrf.mxu0 }
 0x1cd   :  { %v4902_v61 = vpop.eup %4901  ;;  %3286 = vst.msk [vmem:[%s6823_s3 + $0x5a0] sm:$0xff] %vm3105_vm1, %v4900_v58  ;;  %4927 = vtanh.f32 %v2783_v56  ;;  %v2781_v62 = vadd.f32 %v6478_v37, %v1928_v60  ;;  %v2571_v63 = vpop.f32.mrf.mxu1 }
 0x1ce   :  { %v4904_v0 = vpop.eup %4903  ;;  %3350 = vst.msk [vmem:[%s6823_s3 + $0x7a0] sm:$0xff] %vm3105_vm1, %v4902_v61  ;;  %4929 = vtanh.f32 %v2847_v59  ;;  %v2845_v1 = vadd.f32 %v6478_v37, %v2571_v63  ;;  %v4214_v2 = vpop.f32.mrf.mxu0 }
 0x1cf   :  { %v4906_v3 = vpop.eup %4905  ;;  %3289 = vst.msk [vmem:[%s6823_s3 + $0x5b8] sm:$0xff] %vm3105_vm1, %v4904_v0  ;;  %4931 = vtanh.f32 %v2781_v62  ;;  %v2784_v4 = vadd.f32 %v6478_v37, %v4214_v2  ;;  %v4286_v5 = vpop.f32.mrf.mxu1 }
 0x1d0   :  { %v4908_v6 = vpop.eup %4907  ;;  %3353 = vst.msk [vmem:[%s6823_s3 + $0x7b8] sm:$0xff] %vm3105_vm1, %v4906_v3  ;;  %4933 = vtanh.f32 %v2845_v1  ;;  %v2848_v7 = vadd.f32 %v6478_v37, %v4286_v5  ;;  %v1931_v8 = vpop.f32.mrf.mxu0 }
 0x1d1   :  { %v4910_v9 = vpop.eup %4909  ;;  %3287 = vst.msk [vmem:[%s6823_s3 + $0x5a8] sm:$0xff] %vm3105_vm1, %v4908_v6  ;;  %4935 = vtanh.f32 %v2784_v4  ;;  %v2782_v10 = vadd.f32 %v6478_v37, %v1931_v8  ;;  %v2574_v11 = vpop.f32.mrf.mxu1 }
 0x1d2   :  { %v4912_v12 = vpop.eup %4911  ;;  %3351 = vst.msk [vmem:[%s6823_s3 + $0x7a8] sm:$0xff] %vm3105_vm1, %v4910_v9  ;;  %4937 = vtanh.f32 %v2848_v7  ;;  %v2846_v13 = vadd.f32 %v6478_v37, %v2574_v11 }
 0x1d3   :  { %v4914_v14 = vpop.eup %4913  ;;  %3292 = vst.msk [vmem:[%s6823_s3 + $0x5d0] sm:$0xff] %vm3105_vm1, %v4912_v12  ;;  %4939 = vtanh.f32 %v2782_v10 }
 0x1d4   :  { %v4916_v15 = vpop.eup %4915  ;;  %3356 = vst.msk [vmem:[%s6823_s3 + $0x7d0] sm:$0xff] %vm3105_vm1, %v4914_v14  ;;  %4941 = vtanh.f32 %v2846_v13 }
 0x1d5   :  { %v4918_v16 = vpop.eup %4917  ;;  %3290 = vst.msk [vmem:[%s6823_s3 + $0x5c0] sm:$0xff] %vm3105_vm1, %v4916_v15 }
 0x1d6   :  { %v4920_v37 = vpop.eup %4919  ;;  %3354 = vst.msk [vmem:[%s6823_s3 + $0x7c0] sm:$0xff] %vm3105_vm1, %v4918_v16 }
 0x1d7   :  { %v4922_v17 = vpop.eup %4921  ;;  %3293 = vst.msk [vmem:[%s6823_s3 + $0x5d8] sm:$0xff] %vm3105_vm1, %v4920_v37 }
 0x1d8   :  { %v4924_v18 = vpop.eup %4923  ;;  %3357 = vst.msk [vmem:[%s6823_s3 + $0x7d8] sm:$0xff] %vm3105_vm1, %v4922_v17 }
 0x1d9   :  { %v4926_v19 = vpop.eup %4925  ;;  %3291 = vst.msk [vmem:[%s6823_s3 + $0x5c8] sm:$0xff] %vm3105_vm1, %v4924_v18 }
 0x1da   :  { %v4928_v20 = vpop.eup %4927  ;;  %3355 = vst.msk [vmem:[%s6823_s3 + $0x7c8] sm:$0xff] %vm3105_vm1, %v4926_v19 }
 0x1db   :  { %v4930_v21 = vpop.eup %4929  ;;  %3296 = vst.msk [vmem:[%s6823_s3 + $0x5f0] sm:$0xff] %vm3105_vm1, %v4928_v20 }
 0x1dc   :  { %v4932_v22 = vpop.eup %4931  ;;  %3360 = vst.msk [vmem:[%s6823_s3 + $0x7f0] sm:$0xff] %vm3105_vm1, %v4930_v21 }
 0x1dd   :  { %v4934_v23 = vpop.eup %4933  ;;  %3294 = vst.msk [vmem:[%s6823_s3 + $0x5e0] sm:$0xff] %vm3105_vm1, %v4932_v22 }
 0x1de   :  { %v4936_v24 = vpop.eup %4935  ;;  %3358 = vst.msk [vmem:[%s6823_s3 + $0x7e0] sm:$0xff] %vm3105_vm1, %v4934_v23 }
 0x1df   :  { %v4938_v25 = vpop.eup %4937  ;;  %3297 = vst.msk [vmem:[%s6823_s3 + $0x5f8] sm:$0xff] %vm3105_vm1, %v4936_v24 }
 0x1e0   :  { %v4940_v26 = vpop.eup %4939  ;;  %3361 = vst.msk [vmem:[%s6823_s3 + $0x7f8] sm:$0xff] %vm3105_vm1, %v4938_v25 }
 0x1e1   :  { %v4942_v27 = vpop.eup %4941  ;;  %3295 = vst.msk [vmem:[%s6823_s3 + $0x5e8] sm:$0xff] %vm3105_vm1, %v4940_v26 }
 0x1e2   :  { %3359 = vst.msk [vmem:[%s6823_s3 + $0x7e8] sm:$0xff] %vm3105_vm1, %v4942_v27 }

</bundles_post_ra>
